<compile_context>
chip_gen: v5e
topology: v5e:2x2
jax: 0.10.0
libtpu: 0.0.40
codegen_flags: <defaults>
</compile_context>

<pallas_src>
import functools

import jax
import jax.numpy as jnp
from jax.experimental import pallas as pl
from jax.experimental.pallas import tpu as pltpu

INPUT_DIM = 2048       # input_dim of Fc_ClassBlock (ResNet-50 feature width)
NUM_BOTTLENECK = 512   # default num_bottleneck
LEAKY_SLOPE = 0.1
BN_EPS = 1e-5


def _rup(x, m):
    return (x + m - 1) // m * m


# --------------------------------------------------------------------------
# Pallas kernel: fused  leaky_relu(x @ W1_folded + shift) @ W2 + b2
# --------------------------------------------------------------------------
def _fc_class_kernel(x_ref, w1_ref, shift_ref, w2_ref, b2_ref, o_ref, *, slope):
    # add_block: Linear (bf16 inputs, f32 MXU accumulation) + folded eval-BN1d
    h = jnp.dot(x_ref[...], w1_ref[...], preferred_element_type=jnp.float32)
    h = h + shift_ref[...]
    # LeakyReLU(0.1)
    h = jnp.where(h >= 0, h, h * slope)
    # TODO(synk): Dropout(p=0.5) is treated as eval-mode identity (no mask).
    # classifier: Linear kept in f32 (weights have std=0.001)
    o_ref[...] = (
        jnp.dot(h, w2_ref[...], preferred_element_type=jnp.float32) + b2_ref[...]
    )


def fc_class_block_forward(params, x, *, tm_max=256):
    """Forward of Fc_ClassBlock. x: (B, input_dim) f32 -> (B, class_num) f32."""
    B, K = x.shape
    w1f = params["w1_folded"]     # (K, N1) bf16, BN scale folded in
    shift = params["shift"]       # (1, N1) f32, BN-folded bias
    w2p = params["w2_padded"]     # (N1, N2p) f32, lane-padded classifier weight
    b2p = params["b2_padded"]     # (1, N2p) f32
    N1 = w1f.shape[1]
    N2p = w2p.shape[1]
    class_num = params["w2"].shape[1]

    # Pad batch only to the sublane multiple / batch tile (no 128-padding).
    Mp = _rup(B, 8)
    tm = min(tm_max, Mp)
    Mp = _rup(Mp, tm)
    x_p = jnp.pad(x, ((0, Mp - B), (0, 0))).astype(jnp.bfloat16)

    out = pl.pallas_call(
        functools.partial(_fc_class_kernel, slope=LEAKY_SLOPE),
        out_shape=jax.ShapeDtypeStruct((Mp, N2p), jnp.float32),
        grid_spec=pltpu.PrefetchScalarGridSpec(
            num_scalar_prefetch=0,
            grid=(Mp // tm,),
            in_specs=[
                pl.BlockSpec((tm, K), lambda i: (i, 0)),      # x tile (bf16)
                pl.BlockSpec((K, N1), lambda i: (0, 0)),      # folded fc weight
                pl.BlockSpec((1, N1), lambda i: (0, 0)),      # folded shift
                pl.BlockSpec((N1, N2p), lambda i: (0, 0)),    # classifier weight
                pl.BlockSpec((1, N2p), lambda i: (0, 0)),     # classifier bias
            ],
            out_specs=pl.BlockSpec((tm, N2p), lambda i: (i, 0)),
        ),
        compiler_params=pltpu.CompilerParams(
            dimension_semantics=("parallel",)),
    )(x_p, w1f, shift, w2p, b2p)
    return out[:B, :class_num]


# --------------------------------------------------------------------------
# Parameter init (matches the PyTorch init functions) + BN folding / padding
# --------------------------------------------------------------------------
def init_params(key, class_num, input_dim=INPUT_DIM, num_bottleneck=NUM_BOTTLENECK):
    k1, k2, k3 = (jax.random.fold_in(key, i) for i in range(3))

    # add_block Linear: kaiming_normal, a=0, mode='fan_out' -> std = sqrt(2/out)
    w1 = ((2.0 / num_bottleneck) ** 0.5) * jax.random.normal(
        k1, (input_dim, num_bottleneck), jnp.float32)
    b1 = jnp.zeros((num_bottleneck,), jnp.float32)

    # BatchNorm1d: weight ~ N(1, 0.02), bias 0; eval mode with
    # running_mean = 0, running_var = 1 folded to an affine.
    gamma = 1.0 + 0.02 * jax.random.normal(k2, (num_bottleneck,), jnp.float32)
    beta = jnp.zeros((num_bottleneck,), jnp.float32)
    scale = gamma / jnp.sqrt(1.0 + BN_EPS)

    # Fold BN into the Linear:  (x @ w1 + b1) * scale + beta
    w1_folded = (w1 * scale[None, :]).astype(jnp.bfloat16)
    shift = (b1 * scale + beta).reshape(1, num_bottleneck)

    # classifier Linear: weight std = 0.001, bias 0; pre-padded once to a
    # lane-dense (multiple-of-128) output width.
    w2 = 0.001 * jax.random.normal(k3, (num_bottleneck, class_num), jnp.float32)
    b2 = jnp.zeros((class_num,), jnp.float32)
    n2p = _rup(class_num, 128)
    w2_padded = jnp.pad(w2, ((0, 0), (0, n2p - class_num)))
    b2_padded = jnp.pad(b2, (0, n2p - class_num)).reshape(1, n2p)

    return dict(
        w1=w1, b1=b1, gamma=gamma, beta=beta,          # raw params (reference)
        w1_folded=w1_folded, shift=shift,              # kernel params
        w2=w2, b2=b2, w2_padded=w2_padded, b2_padded=b2_padded,
    )


# --------------------------------------------------------------------------
# Pure-JAX reference (f32, highest precision) for a correctness check
# --------------------------------------------------------------------------
def reference_forward(params, x):
    scale = params["gamma"] / jnp.sqrt(1.0 + BN_EPS)
    h = jnp.dot(x, params["w1"], precision=jax.lax.Precision.HIGHEST) + params["b1"]
    h = h * scale + params["beta"]
    h = jnp.where(h >= 0, h, h * LEAKY_SLOPE)
    return jnp.dot(h, params["w2"], precision=jax.lax.Precision.HIGHEST) + params["b2"]


# --------------------------------------------------------------------------
if __name__ == "__main__":
    key = jax.random.PRNGKey(0)
    class_num = 10
    batch = 2

    params = init_params(jax.random.fold_in(key, 1), class_num)
    x = jax.random.normal(jax.random.fold_in(key, 2), (batch, INPUT_DIM), jnp.float32)

    fwd = jax.jit(fc_class_block_forward)
    out = jax.block_until_ready(fwd(params, x))

    assert out.shape == (batch, class_num), out.shape
    assert bool(jnp.all(jnp.isfinite(out)))

    ref = reference_forward(params, x)
    assert bool(jnp.allclose(out, ref, atol=5e-3, rtol=5e-2)), (
        float(jnp.max(jnp.abs(out - ref))))

    print("KERNEL_OK")
</pallas_src>

<mosaic_0001>
module attributes {stable_mosaic.version = 11 : i64} {
  func.func @_fc_class_kernel(%arg0: i32, %arg1: memref<8x2048xbf16, #tpu.memory_space<vmem>>, %arg2: memref<2048x512xbf16, #tpu.memory_space<vmem>>, %arg3: memref<1x512xf32, #tpu.memory_space<vmem>>, %arg4: memref<512x128xf32, #tpu.memory_space<vmem>>, %arg5: memref<1x128xf32, #tpu.memory_space<vmem>>, %arg6: memref<8x128xf32, #tpu.memory_space<vmem>>) attributes {dimension_semantics = [#tpu.dimension_semantics<parallel>], iteration_bounds = array<i64: 1>, scalar_prefetch = 0 : i64, scratch_operands = 0 : i64, tpu.core_type = #tpu.core_type<tc>, window_params = [{transform_indices = @transform_0, window_bounds = array<i64: 8, 2048>}, {pipeline_mode = #tpu.pipeline_mode<synchronous>, transform_indices = @transform_1, window_bounds = array<i64: 2048, 512>}, {pipeline_mode = #tpu.pipeline_mode<synchronous>, transform_indices = @transform_2, window_bounds = array<i64: 1, 512>}, {pipeline_mode = #tpu.pipeline_mode<synchronous>, transform_indices = @transform_3, window_bounds = array<i64: 512, 128>}, {pipeline_mode = #tpu.pipeline_mode<synchronous>, transform_indices = @transform_4, window_bounds = array<i64: 1, 128>}, {transform_indices = @transform_5, window_bounds = array<i64: 8, 128>}]} {
    %c0 = arith.constant 0 : index
    %c0_0 = arith.constant 0 : index
    %0 = vector.load %arg1[%c0, %c0_0] : memref<8x2048xbf16, #tpu.memory_space<vmem>>, vector<8x2048xbf16>
    %c0_1 = arith.constant 0 : index
    %c0_2 = arith.constant 0 : index
    %1 = vector.load %arg2[%c0_1, %c0_2] : memref<2048x512xbf16, #tpu.memory_space<vmem>>, vector<2048x512xbf16>
    %cst = arith.constant dense<0.000000e+00> : vector<8x512xf32>
    %2 = tpu.matmul %0, %1, %cst {dimension_numbers = #tpu.dot_dimension_numbers<[1], [0], [0], [1], [0, 0, 1, 1], [], []>} : vector<8x2048xbf16>, vector<2048x512xbf16>, vector<8x512xf32> -> vector<8x512xf32>
    %c0_3 = arith.constant 0 : index
    %c0_4 = arith.constant 0 : index
    %3 = vector.load %arg3[%c0_3, %c0_4] : memref<1x512xf32, #tpu.memory_space<vmem>>, vector<1x512xf32>
    %4 = vector.broadcast %3 : vector<1x512xf32> to vector<8x512xf32>
    %5 = arith.addf %2, %4 : vector<8x512xf32>
    %cst_5 = arith.constant 0.000000e+00 : f32
    %6 = vector.broadcast %cst_5 : f32 to vector<8x512xf32>
    %7 = arith.cmpf oge, %5, %6 : vector<8x512xf32>
    %cst_6 = arith.constant 1.000000e-01 : f32
    %8 = vector.broadcast %cst_6 : f32 to vector<8x512xf32>
    %9 = arith.mulf %5, %8 : vector<8x512xf32>
    %10 = arith.select %7, %5, %9 : vector<8x512xi1>, vector<8x512xf32>
    %c0_7 = arith.constant 0 : index
    %c0_8 = arith.constant 0 : index
    %11 = vector.load %arg4[%c0_7, %c0_8] : memref<512x128xf32, #tpu.memory_space<vmem>>, vector<512x128xf32>
    %cst_9 = arith.constant dense<0.000000e+00> : vector<8x128xf32>
    %12 = tpu.matmul %10, %11, %cst_9 {dimension_numbers = #tpu.dot_dimension_numbers<[1], [0], [0], [1], [0, 0, 1, 1], [], []>} : vector<8x512xf32>, vector<512x128xf32>, vector<8x128xf32> -> vector<8x128xf32>
    %c0_10 = arith.constant 0 : index
    %c0_11 = arith.constant 0 : index
    %13 = vector.load %arg5[%c0_10, %c0_11] : memref<1x128xf32, #tpu.memory_space<vmem>>, vector<1x128xf32>
    %14 = vector.broadcast %13 : vector<1x128xf32> to vector<8x128xf32>
    %15 = arith.addf %12, %14 : vector<8x128xf32>
    %c0_12 = arith.constant 0 : index
    %c0_13 = arith.constant 0 : index
    %16 = vector.load %arg6[%c0_12, %c0_13] : memref<8x128xf32, #tpu.memory_space<vmem>>, vector<8x128xf32>
    tpu.vector_store %arg6[%c0_12, %c0_13], %15 {strides = array<i32>} : memref<8x128xf32, #tpu.memory_space<vmem>>, vector<8x128xf32>,
    return
  }
  func.func @transform_0(%arg0: i32) -> (i32, i32) {
    %c0_i32 = arith.constant 0 : i32
    %c0_i32_0 = arith.constant 0 : i32
    return %arg0, %c0_i32 : i32, i32
  }
  func.func @transform_1(%arg0: i32) -> (i32, i32) {
    %c0_i32 = arith.constant 0 : i32
    %c0_i32_0 = arith.constant 0 : i32
    %c0_i32_1 = arith.constant 0 : i32
    return %c0_i32, %c0_i32_0 : i32, i32
  }
  func.func @transform_2(%arg0: i32) -> (i32, i32) {
    %c0_i32 = arith.constant 0 : i32
    %c0_i32_0 = arith.constant 0 : i32
    %c0_i32_1 = arith.constant 0 : i32
    return %c0_i32, %c0_i32_0 : i32, i32
  }
  func.func @transform_3(%arg0: i32) -> (i32, i32) {
    %c0_i32 = arith.constant 0 : i32
    %c0_i32_0 = arith.constant 0 : i32
    %c0_i32_1 = arith.constant 0 : i32
    return %c0_i32, %c0_i32_0 : i32, i32
  }
  func.func @transform_4(%arg0: i32) -> (i32, i32) {
    %c0_i32 = arith.constant 0 : i32
    %c0_i32_0 = arith.constant 0 : i32
    %c0_i32_1 = arith.constant 0 : i32
    return %c0_i32, %c0_i32_0 : i32, i32
  }
  func.func @transform_5(%arg0: i32) -> (i32, i32) {
    %c0_i32 = arith.constant 0 : i32
    %c0_i32_0 = arith.constant 0 : i32
    return %arg0, %c0_i32 : i32, i32
  }
}

</mosaic_0001>

<bundles_post_ra>
// kernel: fc_class_block_forward.1
= control target key start
LH: loop header
LB: loop body
LE: loop exit
PB: predicated region body
PF: predicated region fallthrough
CT: control target
= control target key end

     0   :  { %10 = vsyncpa [#allocation3], 0  ;;  %s7141_s0 = inlined_call_operand.vmem [shape: bf16[8,2048], index: 0, kind: input, shape index: {}]   ;;  %s7142_s1 = inlined_call_operand.hbm [shape: bf16[2048,512], index: 1, kind: input, shape index: {}]   ;;  %s7143_s2 = inlined_call_operand.hbm [shape: f32[1,512], index: 2, kind: input, shape index: {}]   ;;  %s7144_s3 = inlined_call_operand.hbm [shape: f32[512,128], index: 3, kind: input, shape index: {}]   ;;  %s7145_s4 = inlined_call_operand.hbm [shape: f32[1,128], index: 4, kind: input, shape index: {}]   ;;  %s7146_s5 = inlined_call_operand.vmem [shape: f32[8,128], index: 5, kind: output, shape index: {}]  }
   0x1   :  { %11 = vsyncpa [#allocation5], 0  ;;  %s33_s20 = sshll.u32 %s7143_s2, 4  ;;  %s34_s20 = int_to_ptr.hbm [resolvable:$true] %s33_s20 }
   0x2   :  { %12 = vsyncpa [#allocation8], 0  ;;  %s6898_s21 = smov [#allocation4]   ;;  %s19_s25 = sshll.u32 %s7142_s1, 4  ;;  %s20_s25 = int_to_ptr.hbm [resolvable:$true] %s19_s25 }
   0x3   :  { %s35_s22 = sshll.u32 %s6898_s21, 4  ;;  %s6899_s26 = smov [#allocation2]   ;;  %s36_s22 = int_to_ptr.vmem [resolvable:$true] %s35_s22 }
   0x4   :  { %38 = dma.hbm_to_vmem [thread:$0]  %s34_s20, 64, %s36_s22, [#allocation5]  }
   0x5   :  { %s21_s27 = sshll.u32 %s6899_s26, 4  ;;  %s6900_s28 = smov 256   ;;  %s22_s27 = int_to_ptr.vmem [resolvable:$true] %s21_s27 }
   0x6   :  { %s6901_s29 = smov 16   ;;  %s43_s2 = sshll.u32 %s7144_s3, 4  ;;  %s44_s2 = int_to_ptr.hbm [resolvable:$true] %s43_s2 }
   0x7   :  { %27 = dma.hbm_to_vmem [thread:$0]  %s20_s25, 65536, %s22_s27, [#allocation3], %s6900_s28, %s6900_s28, %s6901_s29  }
   0x8   :  { %s6902_s7 = smov [#allocation6]   ;;  %s57_s1 = sshll.u32 %s7145_s4, 4  ;;  %s58_s1 = int_to_ptr.hbm [resolvable:$true] %s57_s1 }
   0x9   :  { %s45_s8 = sshll.u32 %s6902_s7, 4  ;;  %s6903_s11 = smov 128   ;;  %s46_s8 = int_to_ptr.vmem [resolvable:$true] %s45_s8 }
   0xa   :  { %s6904_s12 = smov 8   ;;  %s6905_s13 = smov [#allocation7]  }
   0xb   :  { %51 = dma.hbm_to_vmem [thread:$0]  %s44_s2, 8192, %s46_s8, [#allocation5], %s6903_s11, %s6903_s11, %s6904_s12  }
   0xc   :  { %s59_s14 = sshll.u32 %s6905_s13, 4  ;;  %s60_s14 = int_to_ptr.vmem [resolvable:$true] %s59_s14 }
   0xd   :  { %62 = dma.hbm_to_vmem [thread:$0]  %s58_s1, 16, %s60_s14, [#allocation8]  }
   0xe   :  { %6892 = dma.done.wait [#allocation3], 65536  }
   0xf   :  { %6893 = vsyncadd [#allocation3], 4294901760 }
  0x10   :  { %6894 = dma.done.wait [#allocation5], 8256  }
  0x11   :  { %6895 = vsyncadd [#allocation5], 4294959040 }
  0x12   :  { %6896 = dma.done.wait [#allocation8], 16  }
  0x13   :  { %6897 = vsyncadd [#allocation8], 4294967280  ;;  %v4339_v0 = vld [vmem:[#allocation2 + $0xe0] sm:$0xf]  ;;  %v6303_v1 = vld [vmem:[#allocation2 + $0xec] sm:$0xf0] }
  0x14   :  { %v4467_v2 = vld [vmem:[#allocation2 + $0x1e0] sm:$0xf]  ;;  %v4340_v3 = vor.u32 %v6303_v1, %v4339_v0  ;;  %v6335_v4 = vld [vmem:[#allocation2 + $0x1ec] sm:$0xf0] }
  0x15   :  { %v4595_v5 = vld [vmem:[#allocation2 + $0x2e0] sm:$0xf]  ;;  %v6367_v6 = vld [vmem:[#allocation2 + $0x2ec] sm:$0xf0]  ;;  %v4468_v7 = vor.u32 %v6335_v4, %v4467_v2 }
  0x16   :  { %v4596_v8 = vor.u32 %v6367_v6, %v4595_v5  ;;  %v4723_v9 = vld [vmem:[#allocation2 + $0x3e0] sm:$0xf]  ;;  %v6399_v10 = vld [vmem:[#allocation2 + $0x3ec] sm:$0xf0]  ;;  %3225 = vmatpush.bf16.msra.mxu0 %v4340_v3 }
  0x17   :  { %v4323_v11 = vld [vmem:[#allocation2 + $0xc0] sm:$0xf]  ;;  %v4724_v12 = vor.u32 %v6399_v10, %v4723_v9  ;;  %v6299_v13 = vld [vmem:[#allocation2 + $0xcc] sm:$0xf0]  ;;  %3238 = vmatpush.bf16.msra.mxu1 %v4468_v7 }
  0x18   :  { %v4451_v14 = vld [vmem:[#allocation2 + $0x1c0] sm:$0xf]  ;;  %v6331_v15 = vld [vmem:[#allocation2 + $0x1cc] sm:$0xf0]  ;;  %3251 = vmatpush.bf16.msra.mxu2 %v4596_v8  ;;  %v4324_v16 = vor.u32 %v6299_v13, %v4323_v11 }
  0x19   :  { %v4452_v17 = vor.u32 %v6331_v15, %v4451_v14  ;;  %v4579_v18 = vld [vmem:[#allocation2 + $0x2c0] sm:$0xf]  ;;  %v6363_v19 = vld [vmem:[#allocation2 + $0x2cc] sm:$0xf0]  ;;  %3264 = vmatpush.bf16.msra.mxu3 %v4724_v12 }
  0x1a   :  { %v4707_v20 = vld [vmem:[#allocation2 + $0x3c0] sm:$0xf]  ;;  %v4580_v21 = vor.u32 %v6363_v19, %v4579_v18  ;;  %v6395_v22 = vld [vmem:[#allocation2 + $0x3cc] sm:$0xf0]  ;;  %3226 = vmatpush.bf16.msra.mxu0 %v4324_v16 }
  0x1b   :  { %v4307_v23 = vld [vmem:[#allocation2 + $0xa0] sm:$0xf]  ;;  %v6295_v24 = vld [vmem:[#allocation2 + $0xac] sm:$0xf0]  ;;  %v4708_v25 = vor.u32 %v6395_v22, %v4707_v20  ;;  %3239 = vmatpush.bf16.msra.mxu1 %v4452_v17 }
  0x1c   :  { %v4435_v26 = vld [vmem:[#allocation2 + $0x1a0] sm:$0xf]  ;;  %v6327_v27 = vld [vmem:[#allocation2 + $0x1ac] sm:$0xf0]  ;;  %v4308_v29 = vor.u32 %v6295_v24, %v4307_v23  ;;  %3252 = vmatpush.bf16.msra.mxu2 %v4580_v21 }
  0x1d   :  { %v4563_v28 = vld [vmem:[#allocation2 + $0x2a0] sm:$0xf]  ;;  %v6359_v30 = vld [vmem:[#allocation2 + $0x2ac] sm:$0xf0]  ;;  %v4436_v33 = vor.u32 %v6327_v27, %v4435_v26  ;;  %3265 = vmatpush.bf16.msra.mxu3 %v4708_v25 }
  0x1e   :  { %v4691_v31 = vld [vmem:[#allocation2 + $0x3a0] sm:$0xf]  ;;  %v6391_v32 = vld [vmem:[#allocation2 + $0x3ac] sm:$0xf0]  ;;  %v4564_v34 = vor.u32 %v6359_v30, %v4563_v28  ;;  %3227 = vmatpush.bf16.msra.mxu0 %v4308_v29 }
  0x1f   :  { %v4291_v35 = vld [vmem:[#allocation2 + $0x80] sm:$0xf]  ;;  %v6291_v36 = vld [vmem:[#allocation2 + $0x8c] sm:$0xf0]  ;;  %v4692_v38 = vor.u32 %v6391_v32, %v4691_v31  ;;  %3240 = vmatpush.bf16.msra.mxu1 %v4436_v33 }
  0x20   :  { %v4419_v37 = vld [vmem:[#allocation2 + $0x180] sm:$0xf]  ;;  %v6323_v39 = vld [vmem:[#allocation2 + $0x18c] sm:$0xf0]  ;;  %v4292_v44 = vor.u32 %v6291_v36, %v4291_v35  ;;  %3253 = vmatpush.bf16.msra.mxu2 %v4564_v34 }
  0x21   :  { %v4547_v40 = vld [vmem:[#allocation2 + $0x280] sm:$0xf]  ;;  %v6355_v41 = vld [vmem:[#allocation2 + $0x28c] sm:$0xf0]  ;;  %v4420_v45 = vor.u32 %v6323_v39, %v4419_v37  ;;  %3266 = vmatpush.bf16.msra.mxu3 %v4692_v38 }
  0x22   :  { %v4675_v42 = vld [vmem:[#allocation2 + $0x380] sm:$0xf]  ;;  %v6387_v43 = vld [vmem:[#allocation2 + $0x38c] sm:$0xf0]  ;;  %v4548_v46 = vor.u32 %v6355_v41, %v4547_v40  ;;  %3228 = vmatpush.bf16.msra.mxu0 %v4292_v44 }
  0x23   :  { %v4275_v47 = vld [vmem:[#allocation2 + $0x60] sm:$0xf]  ;;  %v6287_v48 = vld [vmem:[#allocation2 + $0x6c] sm:$0xf0]  ;;  %v4676_v50 = vor.u32 %v6387_v43, %v4675_v42  ;;  %3241 = vmatpush.bf16.msra.mxu1 %v4420_v45 }
  0x24   :  { %v4403_v49 = vld [vmem:[#allocation2 + $0x160] sm:$0xf]  ;;  %v6319_v51 = vld [vmem:[#allocation2 + $0x16c] sm:$0xf0]  ;;  %v4276_v56 = vor.u32 %v6287_v48, %v4275_v47  ;;  %3254 = vmatpush.bf16.msra.mxu2 %v4548_v46 }
  0x25   :  { %v4531_v52 = vld [vmem:[#allocation2 + $0x260] sm:$0xf]  ;;  %v6351_v53 = vld [vmem:[#allocation2 + $0x26c] sm:$0xf0]  ;;  %v4404_v57 = vor.u32 %v6319_v51, %v4403_v49  ;;  %3267 = vmatpush.bf16.msra.mxu3 %v4676_v50 }
  0x26   :  { %v4659_v54 = vld [vmem:[#allocation2 + $0x360] sm:$0xf]  ;;  %v6383_v55 = vld [vmem:[#allocation2 + $0x36c] sm:$0xf0]  ;;  %v4532_v58 = vor.u32 %v6351_v53, %v4531_v52  ;;  %3229 = vmatpush.bf16.msra.mxu0 %v4276_v56 }
  0x27   :  { %v4259_v59 = vld [vmem:[#allocation2 + $0x40] sm:$0xf]  ;;  %v6283_v60 = vld [vmem:[#allocation2 + $0x4c] sm:$0xf0]  ;;  %v4660_v62 = vor.u32 %v6383_v55, %v4659_v54  ;;  %3242 = vmatpush.bf16.msra.mxu1 %v4404_v57 }
  0x28   :  { %v4387_v61 = vld [vmem:[#allocation2 + $0x140] sm:$0xf]  ;;  %v6315_v63 = vld [vmem:[#allocation2 + $0x14c] sm:$0xf0]  ;;  %v4260_v4 = vor.u32 %v6283_v60, %v4259_v59  ;;  %3255 = vmatpush.bf16.msra.mxu2 %v4532_v58 }
  0x29   :  { %v4515_v0 = vld [vmem:[#allocation2 + $0x240] sm:$0xf]  ;;  %v6347_v1 = vld [vmem:[#allocation2 + $0x24c] sm:$0xf0]  ;;  %v4388_v5 = vor.u32 %v6315_v63, %v4387_v61  ;;  %3268 = vmatpush.bf16.msra.mxu3 %v4660_v62 }
  0x2a   :  { %v4643_v2 = vld [vmem:[#allocation2 + $0x340] sm:$0xf]  ;;  %v6379_v3 = vld [vmem:[#allocation2 + $0x34c] sm:$0xf0]  ;;  %v4516_v6 = vor.u32 %v6347_v1, %v4515_v0  ;;  %3230 = vmatpush.bf16.msra.mxu0 %v4260_v4 }
  0x2b   :  { %v4243_v7 = vld [vmem:[#allocation2 + $0x20] sm:$0xf]  ;;  %v6279_v8 = vld [vmem:[#allocation2 + $0x2c] sm:$0xf0]  ;;  %v4644_v10 = vor.u32 %v6379_v3, %v4643_v2  ;;  %3243 = vmatpush.bf16.msra.mxu1 %v4388_v5  ;;  %v80_v2 = vld [vmem:[%s7141_s0 + $0x8] sm:$0xff] }
  0x2c   :  { %v4371_v9 = vld [vmem:[#allocation2 + $0x120] sm:$0xf]  ;;  %v6311_v11 = vld [vmem:[#allocation2 + $0x12c] sm:$0xf0]  ;;  %v4244_v16 = vor.u32 %v6279_v8, %v4243_v7  ;;  %3256 = vmatpush.bf16.msra.mxu2 %v4516_v6  ;;  %v619_v8 = vunpack.c.l.b16 %v80_v2 }
  0x2d   :  { %v4499_v12 = vld [vmem:[#allocation2 + $0x220] sm:$0xf]  ;;  %v6343_v13 = vld [vmem:[#allocation2 + $0x22c] sm:$0xf0]  ;;  %v4372_v19 = vor.u32 %v6311_v11, %v4371_v9  ;;  %3269 = vmatpush.bf16.msra.mxu3 %v4644_v10  ;;  %v620_v10 = vunpack.c.h.b16 %v80_v2 }
  0x2e   :  { %v4627_v14 = vld [vmem:[#allocation2 + $0x320] sm:$0xf]  ;;  %v6375_v15 = vld [vmem:[#allocation2 + $0x32c] sm:$0xf0]  ;;  %v4500_v20 = vor.u32 %v6343_v13, %v4499_v12  ;;  %3231 = vmatpush.bf16.msra.mxu0 %v4244_v16 }
  0x2f   :  { %v4227_v17 = vld [vmem:[#allocation2] sm:$0xf]  ;;  %v6275_v18 = vld [vmem:[#allocation2 + $0xc] sm:$0xf0]  ;;  %v4628_v24 = vor.u32 %v6375_v15, %v4627_v14  ;;  %3244 = vmatpush.bf16.msra.mxu1 %v4372_v19 }
  0x30   :  { %v4355_v21 = vld [vmem:[#allocation2 + $0x100] sm:$0xf]  ;;  %v6307_v22 = vld [vmem:[#allocation2 + $0x10c] sm:$0xf0]  ;;  %v4228_v31 = vor.u32 %v6275_v18, %v4227_v17  ;;  %3257 = vmatpush.bf16.msra.mxu2 %v4500_v20  ;;  %v6954_v18 = vpack.c.b16 %v619_v8, %v619_v8  ;;  %v6958_v20 = vpack.c.b16 %v620_v10, %v620_v10 }
  0x31   :  { %v4483_v23 = vld [vmem:[#allocation2 + $0x200] sm:$0xf]  ;;  %v6339_v25 = vld [vmem:[#allocation2 + $0x20c] sm:$0xf0]  ;;  %v4356_v35 = vor.u32 %v6307_v22, %v4355_v21  ;;  %3270 = vmatpush.bf16.msra.mxu3 %v4628_v24 }
  0x32   :  { %v4611_v26 = vld [vmem:[#allocation2 + $0x300] sm:$0xf]  ;;  %v6371_v27 = vld [vmem:[#allocation2 + $0x30c] sm:$0xf0]  ;;  %v4484_v36 = vor.u32 %v6339_v25, %v4483_v23  ;;  %3232 = vmatpush.bf16.msra.mxu0 %v4228_v31 }
  0x33   :  { %v4851_v28 = vld [vmem:[#allocation2 + $0x4e0] sm:$0xf]  ;;  %v6431_v29 = vld [vmem:[#allocation2 + $0x4ec] sm:$0xf0]  ;;  %v4612_v39 = vor.u32 %v6371_v27, %v4611_v26  ;;  %3245 = vmatpush.bf16.msra.mxu1 %v4356_v35 }
  0x34   :  { %v4979_v30 = vld [vmem:[#allocation2 + $0x5e0] sm:$0xf]  ;;  %v6463_v32 = vld [vmem:[#allocation2 + $0x5ec] sm:$0xf0]  ;;  %v4852_v40 = vor.u32 %v6431_v29, %v4851_v28  ;;  %3258 = vmatpush.bf16.msra.mxu2 %v4484_v36 }
  0x35   :  { %v5107_v33 = vld [vmem:[#allocation2 + $0x6e0] sm:$0xf]  ;;  %v6495_v34 = vld [vmem:[#allocation2 + $0x6ec] sm:$0xf0]  ;;  %v4980_v41 = vor.u32 %v6463_v32, %v4979_v30  ;;  %3271 = vmatpush.bf16.msra.mxu3 %v4612_v39 }
  0x36   :  { %v5235_v37 = vld [vmem:[#allocation2 + $0x7e0] sm:$0xf]  ;;  %v6527_v38 = vld [vmem:[#allocation2 + $0x7ec] sm:$0xf0]  ;;  %v5108_v42 = vor.u32 %v6495_v34, %v5107_v33  ;;  %3277 = vmatpush.bf16.msrb.mxu0 %v4852_v40 }
  0x37   :  { %v4835_v43 = vld [vmem:[#allocation2 + $0x4c0] sm:$0xf]  ;;  %v6427_v44 = vld [vmem:[#allocation2 + $0x4cc] sm:$0xf0]  ;;  %v5236_v46 = vor.u32 %v6527_v38, %v5235_v37  ;;  %3290 = vmatpush.bf16.msrb.mxu1 %v4980_v41  ;;  %3259 = vmatmul.bf16.vlgmr.msra.gmra.mxu2 %v6954_v18 }
  0x38   :  { %v4963_v45 = vld [vmem:[#allocation2 + $0x5c0] sm:$0xf]  ;;  %v6459_v47 = vld [vmem:[#allocation2 + $0x5cc] sm:$0xf0]  ;;  %v4836_v52 = vor.u32 %v6427_v44, %v4835_v43  ;;  %3303 = vmatpush.bf16.msrb.mxu2 %v5108_v42  ;;  %3272 = vmatmul.bf16.vlgmr.msra.gmra.mxu3 %v6958_v20 }
  0x39   :  { %v5091_v48 = vld [vmem:[#allocation2 + $0x6c0] sm:$0xf]  ;;  %v6491_v49 = vld [vmem:[#allocation2 + $0x6cc] sm:$0xf0]  ;;  %v4964_v54 = vor.u32 %v6459_v47, %v4963_v45  ;;  %3316 = vmatpush.bf16.msrb.mxu3 %v5236_v46 }
  0x3a   :  { %v5219_v50 = vld [vmem:[#allocation2 + $0x7c0] sm:$0xf]  ;;  %v6523_v51 = vld [vmem:[#allocation2 + $0x7cc] sm:$0xf0]  ;;  %v5092_v55 = vor.u32 %v6491_v49, %v5091_v48  ;;  %3278 = vmatpush.bf16.msrb.mxu0 %v4836_v52 }
  0x3b   :  { %v4819_v53 = vld [vmem:[#allocation2 + $0x4a0] sm:$0xf]  ;;  %v6423_v56 = vld [vmem:[#allocation2 + $0x4ac] sm:$0xf0]  ;;  %v5220_v59 = vor.u32 %v6523_v51, %v5219_v50  ;;  %3291 = vmatpush.bf16.msrb.mxu1 %v4964_v54 }
  0x3c   :  { %v4947_v57 = vld [vmem:[#allocation2 + $0x5a0] sm:$0xf]  ;;  %v6455_v58 = vld [vmem:[#allocation2 + $0x5ac] sm:$0xf0]  ;;  %v4820_v0 = vor.u32 %v6423_v56, %v4819_v53  ;;  %3304 = vmatpush.bf16.msrb.mxu2 %v5092_v55 }
  0x3d   :  { %v5075_v60 = vld [vmem:[#allocation2 + $0x6a0] sm:$0xf]  ;;  %v6487_v61 = vld [vmem:[#allocation2 + $0x6ac] sm:$0xf0]  ;;  %v4948_v1 = vor.u32 %v6455_v58, %v4947_v57  ;;  %3317 = vmatpush.bf16.msrb.mxu3 %v5220_v59 }
  0x3e   :  { %v5203_v62 = vld [vmem:[#allocation2 + $0x7a0] sm:$0xf]  ;;  %v6519_v63 = vld [vmem:[#allocation2 + $0x7ac] sm:$0xf0]  ;;  %v5076_v4 = vor.u32 %v6487_v61, %v5075_v60  ;;  %3279 = vmatpush.bf16.msrb.mxu0 %v4820_v0 }
  0x3f   :  { %v79_v3 = vld [vmem:[%s7141_s0] sm:$0xff]  ;;  %v6419_v6 = vld [vmem:[#allocation2 + $0x48c] sm:$0xf0]  ;;  %v5204_v11 = vor.u32 %v6519_v63, %v5203_v62  ;;  %3292 = vmatpush.bf16.msrb.mxu1 %v4948_v1 }
  0x40   :  { %v4803_v5 = vld [vmem:[#allocation2 + $0x480] sm:$0xf]  ;;  %v617_v9 = vunpack.c.l.b16 %v79_v3  ;;  %v6451_v12 = vld [vmem:[#allocation2 + $0x58c] sm:$0xf0]  ;;  %v618_v15 = vunpack.c.h.b16 %v79_v3  ;;  %3305 = vmatpush.bf16.msrb.mxu2 %v5076_v4  ;;  %v82_v3 = vld [vmem:[%s7141_s0 + $0x18] sm:$0xff] }
  0x41   :  { %v4931_v7 = vld [vmem:[#allocation2 + $0x580] sm:$0xf]  ;;  %v6483_v14 = vld [vmem:[#allocation2 + $0x68c] sm:$0xf0]  ;;  %v4804_v21 = vor.u32 %v6419_v6, %v4803_v5  ;;  %3318 = vmatpush.bf16.msrb.mxu3 %v5204_v11 }
  0x42   :  { %v5059_v13 = vld [vmem:[#allocation2 + $0x680] sm:$0xf]  ;;  %v6515_v17 = vld [vmem:[#allocation2 + $0x78c] sm:$0xf0]  ;;  %v6956_v19 = vpack.c.b16 %v617_v9, %v617_v9  ;;  %v6960_v22 = vpack.c.b16 %v618_v15, %v618_v15  ;;  %v4932_v23 = vor.u32 %v6451_v12, %v4931_v7  ;;  %v623_v15 = vunpack.c.l.b16 %v82_v3 }
  0x43   :  { %v5187_v16 = vld [vmem:[#allocation2 + $0x780] sm:$0xf]  ;;  %v5060_v24 = vor.u32 %v6483_v14, %v5059_v13  ;;  %v6415_v26 = vld [vmem:[#allocation2 + $0x46c] sm:$0xf0]  ;;  %3280 = vmatpush.bf16.msrb.mxu0 %v4804_v21 }
  0x44   :  { %v4787_v25 = vld [vmem:[#allocation2 + $0x460] sm:$0xf]  ;;  %v5188_v28 = vor.u32 %v6515_v17, %v5187_v16  ;;  %v6447_v29 = vld [vmem:[#allocation2 + $0x56c] sm:$0xf0]  ;;  %3233 = vmatmul.bf16.vlgmr.msra.gmra.mxu0 %v6956_v19  ;;  %3246 = vmatmul.bf16.vlgmr.msra.gmra.mxu1 %v6960_v22 }
  0x45   :  { %v4915_v27 = vld [vmem:[#allocation2 + $0x560] sm:$0xf]  ;;  %v6479_v31 = vld [vmem:[#allocation2 + $0x66c] sm:$0xf0]  ;;  %v4788_v34 = vor.u32 %v6415_v26, %v4787_v25  ;;  %3293 = vmatpush.bf16.msrb.mxu1 %v4932_v23  ;;  %3306 = vmatpush.bf16.msrb.mxu2 %v5060_v24  ;;  %v624_v25 = vunpack.c.h.b16 %v82_v3 }
  0x46   :  { %v5043_v30 = vld [vmem:[#allocation2 + $0x660] sm:$0xf]  ;;  %v6511_v33 = vld [vmem:[#allocation2 + $0x76c] sm:$0xf0]  ;;  %v4916_v35 = vor.u32 %v6447_v29, %v4915_v27  ;;  %3319 = vmatpush.bf16.msrb.mxu3 %v5188_v28 }
  0x47   :  { %v5171_v32 = vld [vmem:[#allocation2 + $0x760] sm:$0xf]  ;;  %v5044_v36 = vor.u32 %v6479_v31, %v5043_v30  ;;  %v6411_v38 = vld [vmem:[#allocation2 + $0x44c] sm:$0xf0]  ;;  %3281 = vmatpush.bf16.msrb.mxu0 %v4788_v34 }
  0x48   :  { %v4771_v37 = vld [vmem:[#allocation2 + $0x440] sm:$0xf]  ;;  %v5172_v40 = vor.u32 %v6511_v33, %v5171_v32  ;;  %v6443_v41 = vld [vmem:[#allocation2 + $0x54c] sm:$0xf0] }
  0x49   :  { %v4899_v39 = vld [vmem:[#allocation2 + $0x540] sm:$0xf]  ;;  %v6475_v43 = vld [vmem:[#allocation2 + $0x64c] sm:$0xf0]  ;;  %v4772_v46 = vor.u32 %v6411_v38, %v4771_v37  ;;  %3294 = vmatpush.bf16.msrb.mxu1 %v4916_v35  ;;  %3307 = vmatpush.bf16.msrb.mxu2 %v5044_v36  ;;  %v6972_v38 = vpack.c.b16 %v623_v15, %v623_v15 }
  0x4a   :  { %v5027_v42 = vld [vmem:[#allocation2 + $0x640] sm:$0xf]  ;;  %v6507_v45 = vld [vmem:[#allocation2 + $0x74c] sm:$0xf0]  ;;  %v4900_v47 = vor.u32 %v6443_v41, %v4899_v39  ;;  %3320 = vmatpush.bf16.msrb.mxu3 %v5172_v40 }
  0x4b   :  { %v5155_v44 = vld [vmem:[#allocation2 + $0x740] sm:$0xf]  ;;  %v5028_v48 = vor.u32 %v6475_v43, %v5027_v42  ;;  %v6407_v50 = vld [vmem:[#allocation2 + $0x42c] sm:$0xf0]  ;;  %3282 = vmatpush.bf16.msrb.mxu0 %v4772_v46  ;;  %v6976_v42 = vpack.c.b16 %v624_v25, %v624_v25 }
  0x4c   :  { %v4755_v49 = vld [vmem:[#allocation2 + $0x420] sm:$0xf]  ;;  %v5156_v52 = vor.u32 %v6507_v45, %v5155_v44  ;;  %v6439_v53 = vld [vmem:[#allocation2 + $0x52c] sm:$0xf0] }
  0x4d   :  { %v4883_v51 = vld [vmem:[#allocation2 + $0x520] sm:$0xf]  ;;  %v6471_v55 = vld [vmem:[#allocation2 + $0x62c] sm:$0xf0]  ;;  %v4756_v59 = vor.u32 %v6407_v50, %v4755_v49  ;;  %3295 = vmatpush.bf16.msrb.mxu1 %v4900_v47  ;;  %3308 = vmatpush.bf16.msrb.mxu2 %v5028_v48 }
  0x4e   :  { %v5011_v54 = vld [vmem:[#allocation2 + $0x620] sm:$0xf]  ;;  %v6503_v57 = vld [vmem:[#allocation2 + $0x72c] sm:$0xf0]  ;;  %v4884_v63 = vor.u32 %v6439_v53, %v4883_v51  ;;  %3321 = vmatpush.bf16.msrb.mxu3 %v5156_v52 }
  0x4f   :  { %v5139_v56 = vld [vmem:[#allocation2 + $0x720] sm:$0xf]  ;;  %v6403_v60 = vld [vmem:[#allocation2 + $0x40c] sm:$0xf0]  ;;  %v5012_v0 = vor.u32 %v6471_v55, %v5011_v54  ;;  %3283 = vmatpush.bf16.msrb.mxu0 %v4756_v59 }
  0x50   :  { %v4739_v58 = vld [vmem:[#allocation2 + $0x400] sm:$0xf]  ;;  %v6435_v62 = vld [vmem:[#allocation2 + $0x50c] sm:$0xf0]  ;;  %v5140_v4 = vor.u32 %v6503_v57, %v5139_v56 }
  0x51   :  { %v4867_v61 = vld [vmem:[#allocation2 + $0x500] sm:$0xf]  ;;  %v6467_v2 = vld [vmem:[#allocation2 + $0x60c] sm:$0xf0]  ;;  %v4740_v11 = vor.u32 %v6403_v60, %v4739_v58  ;;  %3296 = vmatpush.bf16.msrb.mxu1 %v4884_v63  ;;  %3309 = vmatpush.bf16.msrb.mxu2 %v5012_v0 }
  0x52   :  { %v4995_v1 = vld [vmem:[#allocation2 + $0x600] sm:$0xf]  ;;  %v6499_v6 = vld [vmem:[#allocation2 + $0x70c] sm:$0xf0]  ;;  %v4868_v16 = vor.u32 %v6435_v62, %v4867_v61  ;;  %3322 = vmatpush.bf16.msrb.mxu3 %v5140_v4 }
  0x53   :  { %v5123_v5 = vld [vmem:[#allocation2 + $0x700] sm:$0xf]  ;;  %v81_v7 = vld [vmem:[%s7141_s0 + $0x10] sm:$0xff]  ;;  %v4996_v17 = vor.u32 %v6467_v2, %v4995_v1  ;;  %3284 = vmatpush.bf16.msrb.mxu0 %v4740_v11 }
  0x54   :  { %v5363_v8 = vld [vmem:[#allocation2 + $0x8e0] sm:$0xf]  ;;  %v6559_v9 = vld [vmem:[#allocation2 + $0x8ec] sm:$0xf0]  ;;  %v621_v24 = vunpack.c.l.b16 %v81_v7  ;;  %v5124_v26 = vor.u32 %v6499_v6, %v5123_v5  ;;  %v622_v28 = vunpack.c.h.b16 %v81_v7 }
  0x55   :  { %v5491_v10 = vld [vmem:[#allocation2 + $0x9e0] sm:$0xf]  ;;  %v6591_v12 = vld [vmem:[#allocation2 + $0x9ec] sm:$0xf0]  ;;  %v5364_v27 = vor.u32 %v6559_v9, %v5363_v8  ;;  %3297 = vmatpush.bf16.msrb.mxu1 %v4868_v16  ;;  %3310 = vmatpush.bf16.msrb.mxu2 %v4996_v17 }
  0x56   :  { %v5619_v13 = vld [vmem:[#allocation2 + $0xae0] sm:$0xf]  ;;  %v6623_v14 = vld [vmem:[#allocation2 + $0xaec] sm:$0xf0]  ;;  %v5492_v29 = vor.u32 %v6591_v12, %v5491_v10  ;;  %v6974_v41 = vpack.c.b16 %v621_v24, %v621_v24  ;;  %3323 = vmatpush.bf16.msrb.mxu3 %v5124_v26  ;;  %v6978_v44 = vpack.c.b16 %v622_v28, %v622_v28 }
  0x57   :  { %v5747_v21 = vld [vmem:[#allocation2 + $0xbe0] sm:$0xf]  ;;  %v6655_v23 = vld [vmem:[#allocation2 + $0xbec] sm:$0xf0]  ;;  %v5620_v30 = vor.u32 %v6623_v14, %v5619_v13  ;;  %3329 = vmatpush.bf16.msra.mxu0 %v5364_v27 }
  0x58   :  { %v5347_v31 = vld [vmem:[#allocation2 + $0x8c0] sm:$0xf]  ;;  %v6555_v32 = vld [vmem:[#allocation2 + $0x8cc] sm:$0xf0]  ;;  %v5748_v34 = vor.u32 %v6655_v23, %v5747_v21  ;;  %3311 = vmatmul.bf16.vlgmr.msrb.gmra.mxu2 %v6972_v38  ;;  %3285 = vmatmul.bf16.vlgmr.msrb.gmra.mxu0 %v6974_v41 }
  0x59   :  { %v5475_v33 = vld [vmem:[#allocation2 + $0x9c0] sm:$0xf]  ;;  %v6587_v35 = vld [vmem:[#allocation2 + $0x9cc] sm:$0xf0]  ;;  %v5348_v43 = vor.u32 %v6555_v32, %v5347_v31  ;;  %3342 = vmatpush.bf16.msra.mxu1 %v5492_v29  ;;  %3355 = vmatpush.bf16.msra.mxu2 %v5620_v30 }
  0x5a   :  { %v5603_v36 = vld [vmem:[#allocation2 + $0xac0] sm:$0xf]  ;;  %v6619_v37 = vld [vmem:[#allocation2 + $0xacc] sm:$0xf0]  ;;  %v5476_v45 = vor.u32 %v6587_v35, %v5475_v33  ;;  %3368 = vmatpush.bf16.msra.mxu3 %v5748_v34  ;;  %3298 = vmatmul.bf16.vlgmr.msrb.gmra.mxu1 %v6978_v44 }
  0x5b   :  { %v5731_v39 = vld [vmem:[#allocation2 + $0xbc0] sm:$0xf]  ;;  %v6651_v40 = vld [vmem:[#allocation2 + $0xbcc] sm:$0xf0]  ;;  %v5604_v46 = vor.u32 %v6619_v37, %v5603_v36  ;;  %3324 = vmatmul.bf16.vlgmr.msrb.gmra.mxu3 %v6976_v42  ;;  %3330 = vmatpush.bf16.msra.mxu0 %v5348_v43 }
  0x5c   :  { %v5331_v47 = vld [vmem:[#allocation2 + $0x8a0] sm:$0xf]  ;;  %v6551_v48 = vld [vmem:[#allocation2 + $0x8ac] sm:$0xf0]  ;;  %v5732_v50 = vor.u32 %v6651_v40, %v5731_v39 }
  0x5d   :  { %v5459_v49 = vld [vmem:[#allocation2 + $0x9a0] sm:$0xf]  ;;  %v6583_v51 = vld [vmem:[#allocation2 + $0x9ac] sm:$0xf0]  ;;  %v5332_v56 = vor.u32 %v6551_v48, %v5331_v47  ;;  %3343 = vmatpush.bf16.msra.mxu1 %v5476_v45  ;;  %3356 = vmatpush.bf16.msra.mxu2 %v5604_v46 }
  0x5e   :  { %v5587_v52 = vld [vmem:[#allocation2 + $0xaa0] sm:$0xf]  ;;  %v6615_v53 = vld [vmem:[#allocation2 + $0xaac] sm:$0xf0]  ;;  %v5460_v57 = vor.u32 %v6583_v51, %v5459_v49  ;;  %3369 = vmatpush.bf16.msra.mxu3 %v5732_v50 }
  0x5f   :  { %v5715_v54 = vld [vmem:[#allocation2 + $0xba0] sm:$0xf]  ;;  %v6647_v55 = vld [vmem:[#allocation2 + $0xbac] sm:$0xf0]  ;;  %v5588_v58 = vor.u32 %v6615_v53, %v5587_v52  ;;  %3331 = vmatpush.bf16.msra.mxu0 %v5332_v56 }
  0x60   :  { %v5315_v59 = vld [vmem:[#allocation2 + $0x880] sm:$0xf]  ;;  %v6547_v60 = vld [vmem:[#allocation2 + $0x88c] sm:$0xf0]  ;;  %v5716_v62 = vor.u32 %v6647_v55, %v5715_v54 }
  0x61   :  { %v5443_v61 = vld [vmem:[#allocation2 + $0x980] sm:$0xf]  ;;  %v6579_v63 = vld [vmem:[#allocation2 + $0x98c] sm:$0xf0]  ;;  %v5316_v4 = vor.u32 %v6547_v60, %v5315_v59  ;;  %3344 = vmatpush.bf16.msra.mxu1 %v5460_v57  ;;  %3357 = vmatpush.bf16.msra.mxu2 %v5588_v58 }
  0x62   :  { %v5571_v0 = vld [vmem:[#allocation2 + $0xa80] sm:$0xf]  ;;  %v6611_v1 = vld [vmem:[#allocation2 + $0xa8c] sm:$0xf0]  ;;  %v5444_v5 = vor.u32 %v6579_v63, %v5443_v61  ;;  %3370 = vmatpush.bf16.msra.mxu3 %v5716_v62  ;;  %v84_v61 = vld [vmem:[%s7141_s0 + $0x28] sm:$0xff] }
  0x63   :  { %v5699_v2 = vld [vmem:[#allocation2 + $0xb80] sm:$0xf]  ;;  %v6643_v3 = vld [vmem:[#allocation2 + $0xb8c] sm:$0xf0]  ;;  %v5572_v6 = vor.u32 %v6611_v1, %v5571_v0  ;;  %3332 = vmatpush.bf16.msra.mxu0 %v5316_v4 }
  0x64   :  { %v5299_v7 = vld [vmem:[#allocation2 + $0x860] sm:$0xf]  ;;  %v6543_v8 = vld [vmem:[#allocation2 + $0x86c] sm:$0xf0]  ;;  %v5700_v10 = vor.u32 %v6643_v3, %v5699_v2 }
  0x65   :  { %v5427_v9 = vld [vmem:[#allocation2 + $0x960] sm:$0xf]  ;;  %v6575_v11 = vld [vmem:[#allocation2 + $0x96c] sm:$0xf0]  ;;  %v5300_v16 = vor.u32 %v6543_v8, %v5299_v7  ;;  %3345 = vmatpush.bf16.msra.mxu1 %v5444_v5  ;;  %3358 = vmatpush.bf16.msra.mxu2 %v5572_v6 }
  0x66   :  { %v5555_v12 = vld [vmem:[#allocation2 + $0xa60] sm:$0xf]  ;;  %v6607_v13 = vld [vmem:[#allocation2 + $0xa6c] sm:$0xf0]  ;;  %v5428_v17 = vor.u32 %v6575_v11, %v5427_v9  ;;  %3371 = vmatpush.bf16.msra.mxu3 %v5700_v10  ;;  %v627_v10 = vunpack.c.l.b16 %v84_v61 }
  0x67   :  { %v5683_v14 = vld [vmem:[#allocation2 + $0xb60] sm:$0xf]  ;;  %v6639_v15 = vld [vmem:[#allocation2 + $0xb6c] sm:$0xf0]  ;;  %v5556_v21 = vor.u32 %v6607_v13, %v5555_v12  ;;  %3333 = vmatpush.bf16.msra.mxu0 %v5300_v16 }
  0x68   :  { %v5283_v23 = vld [vmem:[#allocation2 + $0x840] sm:$0xf]  ;;  %v6539_v24 = vld [vmem:[#allocation2 + $0x84c] sm:$0xf0]  ;;  %v5684_v26 = vor.u32 %v6639_v15, %v5683_v14  ;;  %v628_v14 = vunpack.c.h.b16 %v84_v61 }
  0x69   :  { %v5411_v25 = vld [vmem:[#allocation2 + $0x940] sm:$0xf]  ;;  %v6571_v27 = vld [vmem:[#allocation2 + $0x94c] sm:$0xf0]  ;;  %v5284_v32 = vor.u32 %v6539_v24, %v5283_v23  ;;  %3346 = vmatpush.bf16.msra.mxu1 %v5428_v17  ;;  %3359 = vmatpush.bf16.msra.mxu2 %v5556_v21 }
  0x6a   :  { %v5539_v28 = vld [vmem:[#allocation2 + $0xa40] sm:$0xf]  ;;  %v6603_v29 = vld [vmem:[#allocation2 + $0xa4c] sm:$0xf0]  ;;  %v5412_v34 = vor.u32 %v6571_v27, %v5411_v25  ;;  %3372 = vmatpush.bf16.msra.mxu3 %v5684_v26 }
  0x6b   :  { %v5667_v30 = vld [vmem:[#allocation2 + $0xb40] sm:$0xf]  ;;  %v6635_v31 = vld [vmem:[#allocation2 + $0xb4c] sm:$0xf0]  ;;  %v5540_v35 = vor.u32 %v6603_v29, %v5539_v28  ;;  %3334 = vmatpush.bf16.msra.mxu0 %v5284_v32  ;;  %v6992_v29 = vpack.c.b16 %v627_v10, %v627_v10 }
  0x6c   :  { %v5267_v33 = vld [vmem:[#allocation2 + $0x820] sm:$0xf]  ;;  %v6535_v36 = vld [vmem:[#allocation2 + $0x82c] sm:$0xf0]  ;;  %v5668_v40 = vor.u32 %v6635_v31, %v5667_v30 }
  0x6d   :  { %v5395_v37 = vld [vmem:[#allocation2 + $0x920] sm:$0xf]  ;;  %v6567_v39 = vld [vmem:[#allocation2 + $0x92c] sm:$0xf0]  ;;  %v5268_v49 = vor.u32 %v6535_v36, %v5267_v33  ;;  %3347 = vmatpush.bf16.msra.mxu1 %v5412_v34  ;;  %3360 = vmatpush.bf16.msra.mxu2 %v5540_v35  ;;  %v6996_v33 = vpack.c.b16 %v628_v14, %v628_v14 }
  0x6e   :  { %v5523_v43 = vld [vmem:[#allocation2 + $0xa20] sm:$0xf]  ;;  %v6599_v45 = vld [vmem:[#allocation2 + $0xa2c] sm:$0xf0]  ;;  %v5396_v53 = vor.u32 %v6567_v39, %v5395_v37  ;;  %3373 = vmatpush.bf16.msra.mxu3 %v5668_v40 }
  0x6f   :  { %v5651_v46 = vld [vmem:[#allocation2 + $0xb20] sm:$0xf]  ;;  %v6631_v47 = vld [vmem:[#allocation2 + $0xb2c] sm:$0xf0]  ;;  %v5524_v54 = vor.u32 %v6599_v45, %v5523_v43  ;;  %3335 = vmatpush.bf16.msra.mxu0 %v5268_v49 }
  0x70   :  { %v5251_v48 = vld [vmem:[#allocation2 + $0x800] sm:$0xf]  ;;  %v6531_v50 = vld [vmem:[#allocation2 + $0x80c] sm:$0xf0]  ;;  %v5652_v58 = vor.u32 %v6631_v47, %v5651_v46 }
  0x71   :  { %v5379_v51 = vld [vmem:[#allocation2 + $0x900] sm:$0xf]  ;;  %v6563_v52 = vld [vmem:[#allocation2 + $0x90c] sm:$0xf0]  ;;  %v5252_v1 = vor.u32 %v6531_v50, %v5251_v48  ;;  %3348 = vmatpush.bf16.msra.mxu1 %v5396_v53  ;;  %3361 = vmatpush.bf16.msra.mxu2 %v5524_v54 }
  0x72   :  { %v5507_v55 = vld [vmem:[#allocation2 + $0xa00] sm:$0xf]  ;;  %v6595_v56 = vld [vmem:[#allocation2 + $0xa0c] sm:$0xf0]  ;;  %v5380_v6 = vor.u32 %v6563_v52, %v5379_v51  ;;  %3374 = vmatpush.bf16.msra.mxu3 %v5652_v58 }
  0x73   :  { %v83_v57 = vld [vmem:[%s7141_s0 + $0x20] sm:$0xff]  ;;  %v6627_v60 = vld [vmem:[#allocation2 + $0xb0c] sm:$0xf0]  ;;  %v5508_v7 = vor.u32 %v6595_v56, %v5507_v55  ;;  %3336 = vmatpush.bf16.msra.mxu0 %v5252_v1 }
  0x74   :  { %v5635_v59 = vld [vmem:[#allocation2 + $0xb00] sm:$0xf]  ;;  %v6687_v63 = vld [vmem:[#allocation2 + $0xcec] sm:$0xf0]  ;;  %v625_v5 = vunpack.c.l.b16 %v83_v57  ;;  %v626_v11 = vunpack.c.h.b16 %v83_v57 }
  0x75   :  { %v5875_v62 = vld [vmem:[#allocation2 + $0xce0] sm:$0xf]  ;;  %v6719_v2 = vld [vmem:[#allocation2 + $0xdec] sm:$0xf0]  ;;  %v5636_v12 = vor.u32 %v6627_v60, %v5635_v59  ;;  %3349 = vmatpush.bf16.msra.mxu1 %v5380_v6  ;;  %3362 = vmatpush.bf16.msra.mxu2 %v5508_v7 }
  0x76   :  { %v6003_v0 = vld [vmem:[#allocation2 + $0xde0] sm:$0xf]  ;;  %v6751_v4 = vld [vmem:[#allocation2 + $0xeec] sm:$0xf0]  ;;  %v5876_v13 = vor.u32 %v6687_v63, %v5875_v62  ;;  %v6990_v25 = vpack.c.b16 %v625_v5, %v625_v5  ;;  %v6994_v30 = vpack.c.b16 %v626_v11, %v626_v11 }
  0x77   :  { %v6131_v3 = vld [vmem:[#allocation2 + $0xee0] sm:$0xf]  ;;  %v6783_v9 = vld [vmem:[#allocation2 + $0xfec] sm:$0xf0]  ;;  %v6004_v15 = vor.u32 %v6719_v2, %v6003_v0  ;;  %3375 = vmatpush.bf16.msra.mxu3 %v5636_v12 }
  0x78   :  { %v6259_v8 = vld [vmem:[#allocation2 + $0xfe0] sm:$0xf]  ;;  %v6132_v16 = vor.u32 %v6751_v4, %v6131_v3  ;;  %v6683_v21 = vld [vmem:[#allocation2 + $0xccc] sm:$0xf0]  ;;  %3381 = vmatpush.bf16.msrb.mxu0 %v5876_v13  ;;  %3363 = vmatmul.bf16.vlgmr.msra.gmra.mxu2 %v6992_v29 }
  0x79   :  { %v5859_v17 = vld [vmem:[#allocation2 + $0xcc0] sm:$0xf]  ;;  %v6260_v24 = vor.u32 %v6783_v9, %v6259_v8  ;;  %v6715_v26 = vld [vmem:[#allocation2 + $0xdcc] sm:$0xf0]  ;;  %3394 = vmatpush.bf16.msrb.mxu1 %v6004_v15  ;;  %3337 = vmatmul.bf16.vlgmr.msra.gmra.mxu0 %v6990_v25 }
  0x7a   :  { %v5987_v23 = vld [vmem:[#allocation2 + $0xdc0] sm:$0xf]  ;;  %v6747_v28 = vld [vmem:[#allocation2 + $0xecc] sm:$0xf0]  ;;  %v5860_v34 = vor.u32 %v6683_v21, %v5859_v17  ;;  %3407 = vmatpush.bf16.msrb.mxu2 %v6132_v16  ;;  %3350 = vmatmul.bf16.vlgmr.msra.gmra.mxu1 %v6994_v30 }
  0x7b   :  { %v6115_v27 = vld [vmem:[#allocation2 + $0xec0] sm:$0xf]  ;;  %v6779_v32 = vld [vmem:[#allocation2 + $0xfcc] sm:$0xf0]  ;;  %v5988_v35 = vor.u32 %v6715_v26, %v5987_v23  ;;  %3420 = vmatpush.bf16.msrb.mxu3 %v6260_v24 }
  0x7c   :  { %v6243_v31 = vld [vmem:[#allocation2 + $0xfc0] sm:$0xf]  ;;  %v6116_v36 = vor.u32 %v6747_v28, %v6115_v27  ;;  %v6679_v39 = vld [vmem:[#allocation2 + $0xcac] sm:$0xf0]  ;;  %3376 = vmatmul.bf16.vlgmr.msra.gmra.mxu3 %v6996_v33  ;;  %3382 = vmatpush.bf16.msrb.mxu0 %v5860_v34 }
  0x7d   :  { %v5843_v37 = vld [vmem:[#allocation2 + $0xca0] sm:$0xf]  ;;  %v6244_v43 = vor.u32 %v6779_v32, %v6243_v31  ;;  %v6711_v45 = vld [vmem:[#allocation2 + $0xdac] sm:$0xf0]  ;;  %3395 = vmatpush.bf16.msrb.mxu1 %v5988_v35 }
  0x7e   :  { %v5971_v40 = vld [vmem:[#allocation2 + $0xda0] sm:$0xf]  ;;  %v6743_v47 = vld [vmem:[#allocation2 + $0xeac] sm:$0xf0]  ;;  %v5844_v50 = vor.u32 %v6679_v39, %v5843_v37  ;;  %3408 = vmatpush.bf16.msrb.mxu2 %v6116_v36 }
  0x7f   :  { %v6099_v46 = vld [vmem:[#allocation2 + $0xea0] sm:$0xf]  ;;  %v6775_v49 = vld [vmem:[#allocation2 + $0xfac] sm:$0xf0]  ;;  %v5972_v51 = vor.u32 %v6711_v45, %v5971_v40  ;;  %3421 = vmatpush.bf16.msrb.mxu3 %v6244_v43 }
  0x80   :  { %v6227_v48 = vld [vmem:[#allocation2 + $0xfa0] sm:$0xf]  ;;  %v6100_v52 = vor.u32 %v6743_v47, %v6099_v46  ;;  %v6675_v54 = vld [vmem:[#allocation2 + $0xc8c] sm:$0xf0]  ;;  %3383 = vmatpush.bf16.msrb.mxu0 %v5844_v50 }
  0x81   :  { %v5827_v53 = vld [vmem:[#allocation2 + $0xc80] sm:$0xf]  ;;  %v6228_v56 = vor.u32 %v6775_v49, %v6227_v48  ;;  %v6707_v57 = vld [vmem:[#allocation2 + $0xd8c] sm:$0xf0]  ;;  %3396 = vmatpush.bf16.msrb.mxu1 %v5972_v51 }
  0x82   :  { %v5955_v55 = vld [vmem:[#allocation2 + $0xd80] sm:$0xf]  ;;  %v6739_v59 = vld [vmem:[#allocation2 + $0xe8c] sm:$0xf0]  ;;  %v5828_v62 = vor.u32 %v6675_v54, %v5827_v53  ;;  %3409 = vmatpush.bf16.msrb.mxu2 %v6100_v52 }
  0x83   :  { %v6083_v58 = vld [vmem:[#allocation2 + $0xe80] sm:$0xf]  ;;  %v6771_v61 = vld [vmem:[#allocation2 + $0xf8c] sm:$0xf0]  ;;  %v5956_v63 = vor.u32 %v6707_v57, %v5955_v55  ;;  %3422 = vmatpush.bf16.msrb.mxu3 %v6228_v56 }
  0x84   :  { %v6211_v60 = vld [vmem:[#allocation2 + $0xf80] sm:$0xf]  ;;  %v6084_v0 = vor.u32 %v6739_v59, %v6083_v58  ;;  %v6671_v2 = vld [vmem:[#allocation2 + $0xc6c] sm:$0xf0]  ;;  %3384 = vmatpush.bf16.msrb.mxu0 %v5828_v62  ;;  %v86_v59 = vld [vmem:[%s7141_s0 + $0x38] sm:$0xff] }
  0x85   :  { %v5811_v1 = vld [vmem:[#allocation2 + $0xc60] sm:$0xf]  ;;  %v6212_v4 = vor.u32 %v6771_v61, %v6211_v60  ;;  %v6703_v5 = vld [vmem:[#allocation2 + $0xd6c] sm:$0xf0]  ;;  %3397 = vmatpush.bf16.msrb.mxu1 %v5956_v63  ;;  %v6301_v60 = vld [vmem:[#allocation2 + $0xe4] sm:$0xf] }
  0x86   :  { %v5939_v3 = vld [vmem:[#allocation2 + $0xd60] sm:$0xf]  ;;  %v6735_v7 = vld [vmem:[#allocation2 + $0xe6c] sm:$0xf0]  ;;  %v5812_v10 = vor.u32 %v6671_v2, %v5811_v1  ;;  %3410 = vmatpush.bf16.msrb.mxu2 %v6084_v0  ;;  %v4341_v61 = vld [vmem:[#allocation2 + $0xf0] sm:$0xf0] }
  0x87   :  { %v6067_v6 = vld [vmem:[#allocation2 + $0xe60] sm:$0xf]  ;;  %v6767_v9 = vld [vmem:[#allocation2 + $0xf6c] sm:$0xf0]  ;;  %v5940_v11 = vor.u32 %v6703_v5, %v5939_v3  ;;  %3423 = vmatpush.bf16.msrb.mxu3 %v6212_v4  ;;  %v6333_v62 = vld [vmem:[#allocation2 + $0x1e4] sm:$0xf] }
  0x88   :  { %v6195_v8 = vld [vmem:[#allocation2 + $0xf60] sm:$0xf]  ;;  %v6068_v12 = vor.u32 %v6735_v7, %v6067_v6  ;;  %v6667_v14 = vld [vmem:[#allocation2 + $0xc4c] sm:$0xf0]  ;;  %3385 = vmatpush.bf16.msrb.mxu0 %v5812_v10  ;;  %v4469_v0 = vld [vmem:[#allocation2 + $0x1f0] sm:$0xf0] }
  0x89   :  { %v5795_v13 = vld [vmem:[#allocation2 + $0xc40] sm:$0xf]  ;;  %v6196_v16 = vor.u32 %v6767_v9, %v6195_v8  ;;  %v6699_v17 = vld [vmem:[#allocation2 + $0xd4c] sm:$0xf0]  ;;  %3398 = vmatpush.bf16.msrb.mxu1 %v5940_v11  ;;  %v6365_v1 = vld [vmem:[#allocation2 + $0x2e4] sm:$0xf]  ;;  %v631_v8 = vunpack.c.l.b16 %v86_v59  ;;  %v4344_v11 = vor.u32 %v6301_v60, %v4341_v61 }
  0x8a   :  { %v5923_v15 = vld [vmem:[#allocation2 + $0xd40] sm:$0xf]  ;;  %v6731_v23 = vld [vmem:[#allocation2 + $0xe4c] sm:$0xf0]  ;;  %v5796_v27 = vor.u32 %v6667_v14, %v5795_v13  ;;  %3411 = vmatpush.bf16.msrb.mxu2 %v6068_v12  ;;  %v4597_v2 = vld [vmem:[#allocation2 + $0x2f0] sm:$0xf0]  ;;  %v632_v12 = vunpack.c.h.b16 %v86_v59  ;;  %v4472_v13 = vor.u32 %v6333_v62, %v4469_v0 }
  0x8b   :  { %v6051_v21 = vld [vmem:[#allocation2 + $0xe40] sm:$0xf]  ;;  %v6763_v26 = vld [vmem:[#allocation2 + $0xf4c] sm:$0xf0]  ;;  %v5924_v28 = vor.u32 %v6699_v17, %v5923_v15  ;;  %3424 = vmatpush.bf16.msrb.mxu3 %v6196_v16  ;;  %v6397_v6 = vld [vmem:[#allocation2 + $0x3e4] sm:$0xf]  ;;  %v4600_v14 = vor.u32 %v6365_v1, %v4597_v2 }
  0x8c   :  { %v6179_v24 = vld [vmem:[#allocation2 + $0xf40] sm:$0xf]  ;;  %v6052_v31 = vor.u32 %v6731_v23, %v6051_v21  ;;  %v6663_v34 = vld [vmem:[#allocation2 + $0xc2c] sm:$0xf0]  ;;  %3386 = vmatpush.bf16.msrb.mxu0 %v5796_v27  ;;  %v4725_v7 = vld [vmem:[#allocation2 + $0x3f0] sm:$0xf0] }
  0x8d   :  { %v5779_v32 = vld [vmem:[#allocation2 + $0xc20] sm:$0xf]  ;;  %v6180_v36 = vor.u32 %v6763_v26, %v6179_v24  ;;  %v6695_v37 = vld [vmem:[#allocation2 + $0xd2c] sm:$0xf0]  ;;  %3399 = vmatpush.bf16.msrb.mxu1 %v5924_v28  ;;  %v6297_v15 = vld [vmem:[#allocation2 + $0xc4] sm:$0xf]  ;;  %v4728_v21 = vor.u32 %v6397_v6, %v4725_v7  ;;  %v7010_v28 = vpack.c.b16 %v631_v8, %v631_v8 }
  0x8e   :  { %v5907_v35 = vld [vmem:[#allocation2 + $0xd20] sm:$0xf]  ;;  %v6727_v40 = vld [vmem:[#allocation2 + $0xe2c] sm:$0xf0]  ;;  %v5780_v47 = vor.u32 %v6663_v34, %v5779_v32  ;;  %3412 = vmatpush.bf16.msrb.mxu2 %v6052_v31  ;;  %v4325_v16 = vld [vmem:[#allocation2 + $0xd0] sm:$0xf0] }
  0x8f   :  { %v6035_v39 = vld [vmem:[#allocation2 + $0xe20] sm:$0xf]  ;;  %v6759_v45 = vld [vmem:[#allocation2 + $0xf2c] sm:$0xf0]  ;;  %v5908_v51 = vor.u32 %v6695_v37, %v5907_v35  ;;  %3425 = vmatpush.bf16.msrb.mxu3 %v6180_v36  ;;  %v6329_v17 = vld [vmem:[#allocation2 + $0x1c4] sm:$0xf]  ;;  %v7014_v35 = vpack.c.b16 %v632_v12, %v632_v12  ;;  %v4328_v36 = vor.u32 %v6297_v15, %v4325_v16 }
  0x90   :  { %v6163_v43 = vld [vmem:[#allocation2 + $0xf20] sm:$0xf]  ;;  %v6659_v48 = vld [vmem:[#allocation2 + $0xc0c] sm:$0xf0]  ;;  %v6036_v52 = vor.u32 %v6727_v40, %v6035_v39  ;;  %3387 = vmatpush.bf16.msrb.mxu0 %v5780_v47  ;;  %v4453_v24 = vld [vmem:[#allocation2 + $0x1d0] sm:$0xf0] }
  0x91   :  { %v5763_v46 = vld [vmem:[#allocation2 + $0xc00] sm:$0xf]  ;;  %v6691_v50 = vld [vmem:[#allocation2 + $0xd0c] sm:$0xf0]  ;;  %v6164_v56 = vor.u32 %v6759_v45, %v6163_v43  ;;  %3400 = vmatpush.bf16.msrb.mxu1 %v5908_v51  ;;  %v6361_v26 = vld [vmem:[#allocation2 + $0x2c4] sm:$0xf]  ;;  %v4456_v37 = vor.u32 %v6329_v17, %v4453_v24 }
  0x92   :  { %v5891_v49 = vld [vmem:[#allocation2 + $0xd00] sm:$0xf]  ;;  %v6723_v54 = vld [vmem:[#allocation2 + $0xe0c] sm:$0xf0]  ;;  %v5764_v63 = vor.u32 %v6659_v48, %v5763_v46  ;;  %3413 = vmatpush.bf16.msrb.mxu2 %v6036_v52  ;;  %v4581_v27 = vld [vmem:[#allocation2 + $0x2d0] sm:$0xf0] }
  0x93   :  { %v6019_v53 = vld [vmem:[#allocation2 + $0xe00] sm:$0xf]  ;;  %v85_v55 = vld [vmem:[%s7141_s0 + $0x30] sm:$0xff]  ;;  %v5892_v4 = vor.u32 %v6691_v50, %v5891_v49  ;;  %3426 = vmatpush.bf16.msrb.mxu3 %v6164_v56  ;;  %v6393_v32 = vld [vmem:[#allocation2 + $0x3c4] sm:$0xf]  ;;  %v4584_v39 = vor.u32 %v6361_v26, %v4581_v27 }
  0x94   :  { %v6147_v57 = vld [vmem:[#allocation2 + $0xf00] sm:$0xf]  ;;  %v6755_v58 = vld [vmem:[#allocation2 + $0xf0c] sm:$0xf0]  ;;  %v629_v3 = vunpack.c.l.b16 %v85_v55  ;;  %v6020_v5 = vor.u32 %v6723_v54, %v6019_v53  ;;  %v630_v9 = vunpack.c.h.b16 %v85_v55  ;;  %3388 = vmatpush.bf16.msrb.mxu0 %v5764_v63  ;;  %v4709_v34 = vld [vmem:[#allocation2 + $0x3d0] sm:$0xf0] }
  0x95   :  { %v6148_v10 = vor.u32 %v6755_v58, %v6147_v57  ;;  %3401 = vmatpush.bf16.msrb.mxu1 %v5892_v4  ;;  %v6293_v40 = vld [vmem:[#allocation2 + $0xa4] sm:$0xf]  ;;  %v4309_v43 = vld [vmem:[#allocation2 + $0xb0] sm:$0xf0]  ;;  %v4712_v46 = vor.u32 %v6393_v32, %v4709_v34 }
  0x96   :  { %v7008_v23 = vpack.c.b16 %v629_v3, %v629_v3  ;;  %3414 = vmatpush.bf16.msrb.mxu2 %v6020_v5  ;;  %v7012_v31 = vpack.c.b16 %v630_v9, %v630_v9  ;;  %v6325_v45 = vld [vmem:[#allocation2 + $0x1a4] sm:$0xf]  ;;  %v4437_v47 = vld [vmem:[#allocation2 + $0x1b0] sm:$0xf0]  ;;  %v4312_v52 = vor.u32 %v6293_v40, %v4309_v43 }
  0x97   :  { %3427 = vmatpush.bf16.msrb.mxu3 %v6148_v10  ;;  %v6357_v48 = vld [vmem:[#allocation2 + $0x2a4] sm:$0xf]  ;;  %v4565_v49 = vld [vmem:[#allocation2 + $0x2b0] sm:$0xf0]  ;;  %v4440_v53 = vor.u32 %v6325_v45, %v4437_v47 }
  0x98   :  { %3433 = vmatpush.bf16.msra.mxu0 %v4344_v11  ;;  %3402 = vmatmul.bf16.vlgmr.msrb.gmra.mxu1 %v7012_v31  ;;  %v6389_v50 = vld [vmem:[#allocation2 + $0x3a4] sm:$0xf]  ;;  %v4693_v51 = vld [vmem:[#allocation2 + $0x3b0] sm:$0xf0]  ;;  %v4568_v54 = vor.u32 %v6357_v48, %v4565_v49 }
  0x99   :  { %3446 = vmatpush.bf16.msra.mxu1 %v4472_v13  ;;  %3389 = vmatmul.bf16.vlgmr.msrb.gmra.mxu0 %v7008_v23  ;;  %v6289_v55 = vld [vmem:[#allocation2 + $0x84] sm:$0xf]  ;;  %v4293_v56 = vld [vmem:[#allocation2 + $0x90] sm:$0xf0]  ;;  %v4696_v58 = vor.u32 %v6389_v50, %v4693_v51 }
  0x9a   :  { %3459 = vmatpush.bf16.msra.mxu2 %v4600_v14  ;;  %3428 = vmatmul.bf16.vlgmr.msrb.gmra.mxu3 %v7014_v35  ;;  %v6321_v57 = vld [vmem:[#allocation2 + $0x184] sm:$0xf]  ;;  %v4421_v59 = vld [vmem:[#allocation2 + $0x190] sm:$0xf0]  ;;  %v4296_v0 = vor.u32 %v6289_v55, %v4293_v56 }
  0x9b   :  { %3472 = vmatpush.bf16.msra.mxu3 %v4728_v21  ;;  %3415 = vmatmul.bf16.vlgmr.msrb.gmra.mxu2 %v7010_v28  ;;  %v6353_v60 = vld [vmem:[#allocation2 + $0x284] sm:$0xf]  ;;  %v4549_v61 = vld [vmem:[#allocation2 + $0x290] sm:$0xf0]  ;;  %v4424_v1 = vor.u32 %v6321_v57, %v4421_v59 }
  0x9c   :  { %3434 = vmatpush.bf16.msra.mxu0 %v4328_v36  ;;  %v6385_v62 = vld [vmem:[#allocation2 + $0x384] sm:$0xf]  ;;  %v4677_v63 = vld [vmem:[#allocation2 + $0x390] sm:$0xf0]  ;;  %v4552_v2 = vor.u32 %v6353_v60, %v4549_v61 }
  0x9d   :  { %3447 = vmatpush.bf16.msra.mxu1 %v4456_v37  ;;  %v6285_v3 = vld [vmem:[#allocation2 + $0x64] sm:$0xf]  ;;  %v4277_v4 = vld [vmem:[#allocation2 + $0x70] sm:$0xf0]  ;;  %v4680_v6 = vor.u32 %v6385_v62, %v4677_v63 }
  0x9e   :  { %3460 = vmatpush.bf16.msra.mxu2 %v4584_v39  ;;  %v6317_v5 = vld [vmem:[#allocation2 + $0x164] sm:$0xf]  ;;  %v4405_v7 = vld [vmem:[#allocation2 + $0x170] sm:$0xf0]  ;;  %v4280_v12 = vor.u32 %v6285_v3, %v4277_v4 }
  0x9f   :  { %3473 = vmatpush.bf16.msra.mxu3 %v4712_v46  ;;  %v6349_v8 = vld [vmem:[#allocation2 + $0x264] sm:$0xf]  ;;  %v4533_v9 = vld [vmem:[#allocation2 + $0x270] sm:$0xf0]  ;;  %v4408_v13 = vor.u32 %v6317_v5, %v4405_v7 }
  0xa0   :  { %3435 = vmatpush.bf16.msra.mxu0 %v4312_v52  ;;  %v6381_v10 = vld [vmem:[#allocation2 + $0x364] sm:$0xf]  ;;  %v4661_v11 = vld [vmem:[#allocation2 + $0x370] sm:$0xf0]  ;;  %v4536_v14 = vor.u32 %v6349_v8, %v4533_v9 }
  0xa1   :  { %3448 = vmatpush.bf16.msra.mxu1 %v4440_v53  ;;  %v6281_v15 = vld [vmem:[#allocation2 + $0x44] sm:$0xf]  ;;  %v4261_v16 = vld [vmem:[#allocation2 + $0x50] sm:$0xf0]  ;;  %v4664_v21 = vor.u32 %v6381_v10, %v4661_v11 }
  0xa2   :  { %3461 = vmatpush.bf16.msra.mxu2 %v4568_v54  ;;  %v6313_v17 = vld [vmem:[#allocation2 + $0x144] sm:$0xf]  ;;  %v4389_v24 = vld [vmem:[#allocation2 + $0x150] sm:$0xf0]  ;;  %v4264_v36 = vor.u32 %v6281_v15, %v4261_v16 }
  0xa3   :  { %3474 = vmatpush.bf16.msra.mxu3 %v4696_v58  ;;  %v6345_v26 = vld [vmem:[#allocation2 + $0x244] sm:$0xf]  ;;  %v4517_v27 = vld [vmem:[#allocation2 + $0x250] sm:$0xf0]  ;;  %v4392_v37 = vor.u32 %v6313_v17, %v4389_v24 }
  0xa4   :  { %3436 = vmatpush.bf16.msra.mxu0 %v4296_v0  ;;  %v6377_v32 = vld [vmem:[#allocation2 + $0x344] sm:$0xf]  ;;  %v4645_v34 = vld [vmem:[#allocation2 + $0x350] sm:$0xf0]  ;;  %v4520_v39 = vor.u32 %v6345_v26, %v4517_v27 }
  0xa5   :  { %3449 = vmatpush.bf16.msra.mxu1 %v4424_v1  ;;  %v6277_v40 = vld [vmem:[#allocation2 + $0x24] sm:$0xf]  ;;  %v4245_v43 = vld [vmem:[#allocation2 + $0x30] sm:$0xf0]  ;;  %v4648_v46 = vor.u32 %v6377_v32, %v4645_v34 }
  0xa6   :  { %3462 = vmatpush.bf16.msra.mxu2 %v4552_v2  ;;  %v6309_v45 = vld [vmem:[#allocation2 + $0x124] sm:$0xf]  ;;  %v4373_v47 = vld [vmem:[#allocation2 + $0x130] sm:$0xf0]  ;;  %v4248_v52 = vor.u32 %v6277_v40, %v4245_v43 }
  0xa7   :  { %3475 = vmatpush.bf16.msra.mxu3 %v4680_v6  ;;  %v6341_v48 = vld [vmem:[#allocation2 + $0x224] sm:$0xf]  ;;  %v4501_v49 = vld [vmem:[#allocation2 + $0x230] sm:$0xf0]  ;;  %v4376_v55 = vor.u32 %v6309_v45, %v4373_v47 }
  0xa8   :  { %3437 = vmatpush.bf16.msra.mxu0 %v4280_v12  ;;  %v6373_v50 = vld [vmem:[#allocation2 + $0x324] sm:$0xf]  ;;  %v4629_v51 = vld [vmem:[#allocation2 + $0x330] sm:$0xf0]  ;;  %v4504_v56 = vor.u32 %v6341_v48, %v4501_v49 }
  0xa9   :  { %3450 = vmatpush.bf16.msra.mxu1 %v4408_v13  ;;  %v6273_v53 = vld [vmem:[#allocation2 + $0x4] sm:$0xf]  ;;  %v4229_v54 = vld [vmem:[#allocation2 + $0x10] sm:$0xf0]  ;;  %v4632_v60 = vor.u32 %v6373_v50, %v4629_v51 }
  0xaa   :  { %3463 = vmatpush.bf16.msra.mxu2 %v4536_v14  ;;  %v6305_v57 = vld [vmem:[#allocation2 + $0x104] sm:$0xf]  ;;  %v4357_v58 = vld [vmem:[#allocation2 + $0x110] sm:$0xf0]  ;;  %v4232_v3 = vor.u32 %v6273_v53, %v4229_v54 }
  0xab   :  { %3476 = vmatpush.bf16.msra.mxu3 %v4664_v21  ;;  %v6337_v59 = vld [vmem:[#allocation2 + $0x204] sm:$0xf]  ;;  %v4485_v61 = vld [vmem:[#allocation2 + $0x210] sm:$0xf0]  ;;  %v4360_v7 = vor.u32 %v6305_v57, %v4357_v58 }
  0xac   :  { %3438 = vmatpush.bf16.msra.mxu0 %v4264_v36  ;;  %v6369_v62 = vld [vmem:[#allocation2 + $0x304] sm:$0xf]  ;;  %v4613_v63 = vld [vmem:[#allocation2 + $0x310] sm:$0xf0]  ;;  %v4488_v8 = vor.u32 %v6337_v59, %v4485_v61 }
  0xad   :  { %3451 = vmatpush.bf16.msra.mxu1 %v4392_v37  ;;  %v6429_v0 = vld [vmem:[#allocation2 + $0x4e4] sm:$0xf]  ;;  %v4853_v1 = vld [vmem:[#allocation2 + $0x4f0] sm:$0xf0]  ;;  %v4616_v11 = vor.u32 %v6369_v62, %v4613_v63 }
  0xae   :  { %3464 = vmatpush.bf16.msra.mxu2 %v4520_v39  ;;  %v6461_v2 = vld [vmem:[#allocation2 + $0x5e4] sm:$0xf]  ;;  %v4981_v4 = vld [vmem:[#allocation2 + $0x5f0] sm:$0xf0]  ;;  %v4856_v12 = vor.u32 %v6429_v0, %v4853_v1 }
  0xaf   :  { %3477 = vmatpush.bf16.msra.mxu3 %v4648_v46  ;;  %v6493_v5 = vld [vmem:[#allocation2 + $0x6e4] sm:$0xf]  ;;  %v5109_v6 = vld [vmem:[#allocation2 + $0x6f0] sm:$0xf0]  ;;  %v4984_v13 = vor.u32 %v6461_v2, %v4981_v4 }
  0xb0   :  { %3439 = vmatpush.bf16.msra.mxu0 %v4248_v52  ;;  %v6525_v9 = vld [vmem:[#allocation2 + $0x7e4] sm:$0xf]  ;;  %v5237_v10 = vld [vmem:[#allocation2 + $0x7f0] sm:$0xf0]  ;;  %v5112_v14 = vor.u32 %v6493_v5, %v5109_v6 }
  0xb1   :  { %3452 = vmatpush.bf16.msra.mxu1 %v4376_v55  ;;  %v6425_v15 = vld [vmem:[#allocation2 + $0x4c4] sm:$0xf]  ;;  %v4837_v16 = vld [vmem:[#allocation2 + $0x4d0] sm:$0xf0]  ;;  %v5240_v21 = vor.u32 %v6525_v9, %v5237_v10  ;;  %v599_v10 = vld [vmem:[#allocation4] sm:$0xf] }
  0xb2   :  { %3465 = vmatpush.bf16.msra.mxu2 %v4504_v56  ;;  %v6457_v17 = vld [vmem:[#allocation2 + $0x5c4] sm:$0xf]  ;;  %v4965_v24 = vld [vmem:[#allocation2 + $0x5d0] sm:$0xf0]  ;;  %v4840_v36 = vor.u32 %v6425_v15, %v4837_v16 }
  0xb3   :  { %3478 = vmatpush.bf16.msra.mxu3 %v4632_v60  ;;  %v6489_v26 = vld [vmem:[#allocation2 + $0x6c4] sm:$0xf]  ;;  %v5093_v27 = vld [vmem:[#allocation2 + $0x6d0] sm:$0xf0]  ;;  %v4968_v37 = vor.u32 %v6457_v17, %v4965_v24  ;;  %v601_v24 = vperm.slane %v599_v10, 0 }
  0xb4   :  { %3440 = vmatpush.bf16.msra.mxu0 %v4232_v3  ;;  %v6521_v32 = vld [vmem:[#allocation2 + $0x7c4] sm:$0xf]  ;;  %v5221_v34 = vld [vmem:[#allocation2 + $0x7d0] sm:$0xf0]  ;;  %v5096_v39 = vor.u32 %v6489_v26, %v5093_v27 }
  0xb5   :  { %3453 = vmatpush.bf16.msra.mxu1 %v4360_v7  ;;  %v6421_v40 = vld [vmem:[#allocation2 + $0x4a4] sm:$0xf]  ;;  %v4821_v43 = vld [vmem:[#allocation2 + $0x4b0] sm:$0xf0]  ;;  %v5224_v46 = vor.u32 %v6521_v32, %v5221_v34 }
  0xb6   :  { %3466 = vmatpush.bf16.msra.mxu2 %v4488_v8  ;;  %v6453_v45 = vld [vmem:[#allocation2 + $0x5a4] sm:$0xf]  ;;  %v4949_v47 = vld [vmem:[#allocation2 + $0x5b0] sm:$0xf0]  ;;  %v4824_v52 = vor.u32 %v6421_v40, %v4821_v43 }
  0xb7   :  { %3479 = vmatpush.bf16.msra.mxu3 %v4616_v11  ;;  %v6485_v48 = vld [vmem:[#allocation2 + $0x6a4] sm:$0xf]  ;;  %v5077_v49 = vld [vmem:[#allocation2 + $0x6b0] sm:$0xf0]  ;;  %3441 = vmatmul.bf16.vlgmr.msra.gmra.mxu0 %v6956_v19  ;;  %v4952_v53 = vor.u32 %v6453_v45, %v4949_v47 }
  0xb8   :  { %3485 = vmatpush.bf16.msrb.mxu0 %v4856_v12  ;;  %v6517_v50 = vld [vmem:[#allocation2 + $0x7a4] sm:$0xf]  ;;  %v5205_v51 = vld [vmem:[#allocation2 + $0x7b0] sm:$0xf0]  ;;  %3454 = vmatmul.bf16.vlgmr.msra.gmra.mxu1 %v6960_v22  ;;  %v5080_v54 = vor.u32 %v6485_v48, %v5077_v49 }
  0xb9   :  { %3498 = vmatpush.bf16.msrb.mxu1 %v4984_v13  ;;  %3467 = vmatmul.bf16.vlgmr.msra.gmra.mxu2 %v6954_v18  ;;  %v6417_v55 = vld [vmem:[#allocation2 + $0x484] sm:$0xf]  ;;  %v4805_v56 = vld [vmem:[#allocation2 + $0x490] sm:$0xf0]  ;;  %v5208_v58 = vor.u32 %v6517_v50, %v5205_v51 }
  0xba   :  { %3511 = vmatpush.bf16.msrb.mxu2 %v5112_v14  ;;  %3480 = vmatmul.bf16.vlgmr.msra.gmra.mxu3 %v6958_v20  ;;  %v6449_v57 = vld [vmem:[#allocation2 + $0x584] sm:$0xf]  ;;  %v4933_v59 = vld [vmem:[#allocation2 + $0x590] sm:$0xf0]  ;;  %v4808_v0 = vor.u32 %v6417_v55, %v4805_v56 }
  0xbb   :  { %3524 = vmatpush.bf16.msrb.mxu3 %v5240_v21  ;;  %v6481_v60 = vld [vmem:[#allocation2 + $0x684] sm:$0xf]  ;;  %v5061_v61 = vld [vmem:[#allocation2 + $0x690] sm:$0xf0]  ;;  %v4936_v2 = vor.u32 %v6449_v57, %v4933_v59 }
  0xbc   :  { %3486 = vmatpush.bf16.msrb.mxu0 %v4840_v36  ;;  %v6513_v62 = vld [vmem:[#allocation2 + $0x784] sm:$0xf]  ;;  %v5189_v63 = vld [vmem:[#allocation2 + $0x790] sm:$0xf0]  ;;  %v5064_v3 = vor.u32 %v6481_v60, %v5061_v61 }
  0xbd   :  { %3499 = vmatpush.bf16.msrb.mxu1 %v4968_v37  ;;  %v6413_v1 = vld [vmem:[#allocation2 + $0x464] sm:$0xf]  ;;  %v4789_v4 = vld [vmem:[#allocation2 + $0x470] sm:$0xf0]  ;;  %v5192_v7 = vor.u32 %v6513_v62, %v5189_v63 }
  0xbe   :  { %3512 = vmatpush.bf16.msrb.mxu2 %v5096_v39  ;;  %v6445_v5 = vld [vmem:[#allocation2 + $0x564] sm:$0xf]  ;;  %v4917_v6 = vld [vmem:[#allocation2 + $0x570] sm:$0xf0]  ;;  %v4792_v13 = vor.u32 %v6413_v1, %v4789_v4 }
  0xbf   :  { %3525 = vmatpush.bf16.msrb.mxu3 %v5224_v46  ;;  %v6477_v8 = vld [vmem:[#allocation2 + $0x664] sm:$0xf]  ;;  %v5045_v9 = vld [vmem:[#allocation2 + $0x670] sm:$0xf0]  ;;  %v4920_v15 = vor.u32 %v6445_v5, %v4917_v6 }
  0xc0   :  { %3487 = vmatpush.bf16.msrb.mxu0 %v4824_v52  ;;  %v6509_v11 = vld [vmem:[#allocation2 + $0x764] sm:$0xf]  ;;  %v5173_v12 = vld [vmem:[#allocation2 + $0x770] sm:$0xf0]  ;;  %v5048_v16 = vor.u32 %v6477_v8, %v5045_v9  ;;  %v3273_v8 = vpop.f32.mrf.mxu3 }
  0xc1   :  { %3500 = vmatpush.bf16.msrb.mxu1 %v4952_v53  ;;  %v6409_v14 = vld [vmem:[#allocation2 + $0x444] sm:$0xf]  ;;  %v4773_v17 = vld [vmem:[#allocation2 + $0x450] sm:$0xf0]  ;;  %v5176_v26 = vor.u32 %v6509_v11, %v5173_v12  ;;  %v3234_v40 = vpop.f32.mrf.mxu0  ;;  %v3247_v50 = vpop.f32.mrf.mxu1 }
  0xc2   :  { %3513 = vmatpush.bf16.msrb.mxu2 %v5080_v54  ;;  %v6441_v21 = vld [vmem:[#allocation2 + $0x544] sm:$0xf]  ;;  %v4901_v27 = vld [vmem:[#allocation2 + $0x550] sm:$0xf0]  ;;  %v4776_v39 = vor.u32 %v6409_v14, %v4773_v17  ;;  %v3235_v49 = vadd.f32 %v3234_v40, %v601_v24 }
  0xc3   :  { %3526 = vmatpush.bf16.msrb.mxu3 %v5208_v58  ;;  %v6473_v32 = vld [vmem:[#allocation2 + $0x644] sm:$0xf]  ;;  %v5029_v34 = vld [vmem:[#allocation2 + $0x650] sm:$0xf0]  ;;  %v4904_v43 = vor.u32 %v6441_v21, %v4901_v27 }
  0xc4   :  { %3488 = vmatpush.bf16.msrb.mxu0 %v4808_v0  ;;  %v6505_v36 = vld [vmem:[#allocation2 + $0x744] sm:$0xf]  ;;  %v5157_v37 = vld [vmem:[#allocation2 + $0x750] sm:$0xf0]  ;;  %v5032_v45 = vor.u32 %v6473_v32, %v5029_v34  ;;  %v3248_v57 = vadd.f32 %v3247_v50, %v3235_v49 }
  0xc5   :  { %3501 = vmatpush.bf16.msrb.mxu1 %v4936_v2  ;;  %v6405_v46 = vld [vmem:[#allocation2 + $0x424] sm:$0xf]  ;;  %v4757_v47 = vld [vmem:[#allocation2 + $0x430] sm:$0xf0]  ;;  %v5160_v51 = vor.u32 %v6505_v36, %v5157_v37  ;;  %v3260_v2 = vpop.f32.mrf.mxu2 }
  0xc6   :  { %3514 = vmatpush.bf16.msrb.mxu2 %v5064_v3  ;;  %v6437_v48 = vld [vmem:[#allocation2 + $0x524] sm:$0xf]  ;;  %v4885_v52 = vld [vmem:[#allocation2 + $0x530] sm:$0xf0]  ;;  %v4760_v58 = vor.u32 %v6405_v46, %v4757_v47 }
  0xc7   :  { %3527 = vmatpush.bf16.msrb.mxu3 %v5192_v7  ;;  %v6469_v53 = vld [vmem:[#allocation2 + $0x624] sm:$0xf]  ;;  %v5013_v54 = vld [vmem:[#allocation2 + $0x630] sm:$0xf0]  ;;  %v4888_v61 = vor.u32 %v6437_v48, %v4885_v52  ;;  %v3261_v7 = vadd.f32 %v3260_v2, %v3248_v57 }
  0xc8   :  { %3489 = vmatpush.bf16.msrb.mxu0 %v4792_v13  ;;  %v6501_v55 = vld [vmem:[#allocation2 + $0x724] sm:$0xf]  ;;  %v5141_v56 = vld [vmem:[#allocation2 + $0x730] sm:$0xf0]  ;;  %v5016_v62 = vor.u32 %v6469_v53, %v5013_v54  ;;  %v3275_v54 = vpop.f32.mrf.mxu3 }
  0xc9   :  { %3502 = vmatpush.bf16.msrb.mxu1 %v4920_v15  ;;  %v6401_v59 = vld [vmem:[#allocation2 + $0x404] sm:$0xf]  ;;  %v4741_v60 = vld [vmem:[#allocation2 + $0x410] sm:$0xf0]  ;;  %v5144_v3 = vor.u32 %v6501_v55, %v5141_v56  ;;  %v3236_v17 = vpop.f32.mrf.mxu0  ;;  %v3249_v32 = vpop.f32.mrf.mxu1 }
  0xca   :  { %3515 = vmatpush.bf16.msrb.mxu2 %v5048_v16  ;;  %v6433_v63 = vld [vmem:[#allocation2 + $0x504] sm:$0xf]  ;;  %v4869_v0 = vld [vmem:[#allocation2 + $0x510] sm:$0xf0]  ;;  %v4744_v12 = vor.u32 %v6401_v59, %v4741_v60  ;;  %v7024_v16 = vadd.f32 %v3273_v8, %v3261_v7 }
  0xcb   :  { %3528 = vmatpush.bf16.msrb.mxu3 %v5176_v26  ;;  %v6465_v1 = vld [vmem:[#allocation2 + $0x604] sm:$0xf]  ;;  %v4997_v4 = vld [vmem:[#allocation2 + $0x610] sm:$0xf0]  ;;  %v4872_v21 = vor.u32 %v6433_v63, %v4869_v0 }
  0xcc   :  { %3490 = vmatpush.bf16.msrb.mxu0 %v4776_v39  ;;  %v6497_v5 = vld [vmem:[#allocation2 + $0x704] sm:$0xf]  ;;  %v5125_v6 = vld [vmem:[#allocation2 + $0x710] sm:$0xf0]  ;;  %v5000_v24 = vor.u32 %v6465_v1, %v4997_v4 }
  0xcd   :  { %3503 = vmatpush.bf16.msrb.mxu1 %v4904_v43  ;;  %v6557_v9 = vld [vmem:[#allocation2 + $0x8e4] sm:$0xf]  ;;  %v5365_v10 = vld [vmem:[#allocation2 + $0x8f0] sm:$0xf0]  ;;  %v5128_v34 = vor.u32 %v6497_v5, %v5125_v6  ;;  %v3262_v52 = vpop.f32.mrf.mxu2 }
  0xce   :  { %3516 = vmatpush.bf16.msrb.mxu2 %v5032_v45  ;;  %v6589_v11 = vld [vmem:[#allocation2 + $0x9e4] sm:$0xf]  ;;  %v5493_v13 = vld [vmem:[#allocation2 + $0x9f0] sm:$0xf0]  ;;  %v5368_v36 = vor.u32 %v6557_v9, %v5365_v10 }
  0xcf   :  { %3529 = vmatpush.bf16.msrb.mxu3 %v5160_v51  ;;  %v6621_v14 = vld [vmem:[#allocation2 + $0xae4] sm:$0xf]  ;;  %v5621_v15 = vld [vmem:[#allocation2 + $0xaf0] sm:$0xf0]  ;;  %v5496_v37 = vor.u32 %v6589_v11, %v5493_v13 }
  0xd0   :  { %3491 = vmatpush.bf16.msrb.mxu0 %v4760_v58  ;;  %v6653_v26 = vld [vmem:[#allocation2 + $0xbe4] sm:$0xf]  ;;  %v5749_v27 = vld [vmem:[#allocation2 + $0xbf0] sm:$0xf0]  ;;  %v5624_v39 = vor.u32 %v6621_v14, %v5621_v15 }
  0xd1   :  { %3504 = vmatpush.bf16.msrb.mxu1 %v4888_v61  ;;  %v6553_v40 = vld [vmem:[#allocation2 + $0x8c4] sm:$0xf]  ;;  %v5349_v43 = vld [vmem:[#allocation2 + $0x8d0] sm:$0xf0]  ;;  %v5752_v46 = vor.u32 %v6653_v26, %v5749_v27 }
  0xd2   :  { %3517 = vmatpush.bf16.msrb.mxu2 %v5016_v62  ;;  %v6585_v45 = vld [vmem:[#allocation2 + $0x9c4] sm:$0xf]  ;;  %v5477_v47 = vld [vmem:[#allocation2 + $0x9d0] sm:$0xf0]  ;;  %v5352_v53 = vor.u32 %v6553_v40, %v5349_v43 }
  0xd3   :  { %3530 = vmatpush.bf16.msrb.mxu3 %v5144_v3  ;;  %v6617_v48 = vld [vmem:[#allocation2 + $0xac4] sm:$0xf]  ;;  %v5605_v49 = vld [vmem:[#allocation2 + $0xad0] sm:$0xf0]  ;;  %v5480_v55 = vor.u32 %v6585_v45, %v5477_v47 }
  0xd4   :  { %3492 = vmatpush.bf16.msrb.mxu0 %v4744_v12  ;;  %v6649_v50 = vld [vmem:[#allocation2 + $0xbc4] sm:$0xf]  ;;  %v5733_v51 = vld [vmem:[#allocation2 + $0xbd0] sm:$0xf0]  ;;  %v5608_v56 = vor.u32 %v6617_v48, %v5605_v49 }
  0xd5   :  { %3505 = vmatpush.bf16.msrb.mxu1 %v4872_v21  ;;  %v6549_v57 = vld [vmem:[#allocation2 + $0x8a4] sm:$0xf]  ;;  %v5333_v58 = vld [vmem:[#allocation2 + $0x8b0] sm:$0xf0]  ;;  %v5736_v60 = vor.u32 %v6649_v50, %v5733_v51  ;;  %v3286_v15 = vpop.f32.mrf.mxu0 }
  0xd6   :  { %3518 = vmatpush.bf16.msrb.mxu2 %v5000_v24  ;;  %v6581_v59 = vld [vmem:[#allocation2 + $0x9a4] sm:$0xf]  ;;  %v5461_v61 = vld [vmem:[#allocation2 + $0x9b0] sm:$0xf0]  ;;  %v5336_v2 = vor.u32 %v6549_v57, %v5333_v58  ;;  %v3287_v32 = vadd.f32 %v3286_v15, %v7024_v16 }
  0xd7   :  { %3531 = vmatpush.bf16.msrb.mxu3 %v5128_v34  ;;  %v6613_v62 = vld [vmem:[#allocation2 + $0xaa4] sm:$0xf]  ;;  %v5589_v63 = vld [vmem:[#allocation2 + $0xab0] sm:$0xf0]  ;;  %3493 = vmatmul.bf16.vlgmr.msrb.gmra.mxu0 %v6974_v41  ;;  %v5464_v3 = vor.u32 %v6581_v59, %v5461_v61  ;;  %v3299_v34 = vpop.f32.mrf.mxu1 }
  0xd8   :  { %3537 = vmatpush.bf16.msra.mxu0 %v5368_v36  ;;  %v6645_v0 = vld [vmem:[#allocation2 + $0xba4] sm:$0xf]  ;;  %v5717_v1 = vld [vmem:[#allocation2 + $0xbb0] sm:$0xf0]  ;;  %3506 = vmatmul.bf16.vlgmr.msrb.gmra.mxu1 %v6978_v44  ;;  %v5592_v4 = vor.u32 %v6613_v62, %v5589_v63 }
  0xd9   :  { %3550 = vmatpush.bf16.msra.mxu1 %v5496_v37  ;;  %3519 = vmatmul.bf16.vlgmr.msrb.gmra.mxu2 %v6972_v38  ;;  %v6545_v5 = vld [vmem:[#allocation2 + $0x884] sm:$0xf]  ;;  %v5317_v6 = vld [vmem:[#allocation2 + $0x890] sm:$0xf0]  ;;  %v5720_v8 = vor.u32 %v6645_v0, %v5717_v1 }
  0xda   :  { %3563 = vmatpush.bf16.msra.mxu2 %v5624_v39  ;;  %3532 = vmatmul.bf16.vlgmr.msrb.gmra.mxu3 %v6976_v42  ;;  %v6577_v7 = vld [vmem:[#allocation2 + $0x984] sm:$0xf]  ;;  %v5445_v9 = vld [vmem:[#allocation2 + $0x990] sm:$0xf0]  ;;  %v5320_v14 = vor.u32 %v6545_v5, %v5317_v6 }
  0xdb   :  { %3576 = vmatpush.bf16.msra.mxu3 %v5752_v46  ;;  %v6609_v10 = vld [vmem:[#allocation2 + $0xa84] sm:$0xf]  ;;  %v5573_v11 = vld [vmem:[#allocation2 + $0xa90] sm:$0xf0]  ;;  %v5448_v17 = vor.u32 %v6577_v7, %v5445_v9  ;;  %v3300_v46 = vadd.f32 %v3299_v34, %v3287_v32 }
  0xdc   :  { %3538 = vmatpush.bf16.msra.mxu0 %v5352_v53  ;;  %v6641_v12 = vld [vmem:[#allocation2 + $0xb84] sm:$0xf]  ;;  %v5701_v13 = vld [vmem:[#allocation2 + $0xb90] sm:$0xf0]  ;;  %v5576_v21 = vor.u32 %v6609_v10, %v5573_v11  ;;  %v3312_v53 = vpop.f32.mrf.mxu2 }
  0xdd   :  { %3551 = vmatpush.bf16.msra.mxu1 %v5480_v55  ;;  %v6541_v24 = vld [vmem:[#allocation2 + $0x864] sm:$0xf]  ;;  %v5301_v26 = vld [vmem:[#allocation2 + $0x870] sm:$0xf0]  ;;  %v5704_v36 = vor.u32 %v6641_v12, %v5701_v13  ;;  %v3313_v57 = vadd.f32 %v3312_v53, %v3300_v46  ;;  %v3288_v63 = vpop.f32.mrf.mxu0 }
  0xde   :  { %3564 = vmatpush.bf16.msra.mxu2 %v5608_v56  ;;  %v6573_v27 = vld [vmem:[#allocation2 + $0x964] sm:$0xf]  ;;  %v5429_v37 = vld [vmem:[#allocation2 + $0x970] sm:$0xf0]  ;;  %v5304_v47 = vor.u32 %v6541_v24, %v5301_v26  ;;  %v3325_v58 = vpop.f32.mrf.mxu3 }
  0xdf   :  { %3577 = vmatpush.bf16.msra.mxu3 %v5736_v60  ;;  %v6605_v39 = vld [vmem:[#allocation2 + $0xa64] sm:$0xf]  ;;  %v5557_v40 = vld [vmem:[#allocation2 + $0xa70] sm:$0xf0]  ;;  %v5432_v48 = vor.u32 %v6573_v27, %v5429_v37  ;;  %v7031_v62 = vadd.f32 %v3325_v58, %v3313_v57  ;;  %v3301_v5 = vpop.f32.mrf.mxu1 }
  0xe0   :  { %3539 = vmatpush.bf16.msra.mxu0 %v5336_v2  ;;  %v6637_v43 = vld [vmem:[#allocation2 + $0xb64] sm:$0xf]  ;;  %v5685_v45 = vld [vmem:[#allocation2 + $0xb70] sm:$0xf0]  ;;  %v5560_v49 = vor.u32 %v6605_v39, %v5557_v40 }
  0xe1   :  { %3552 = vmatpush.bf16.msra.mxu1 %v5464_v3  ;;  %v6537_v50 = vld [vmem:[#allocation2 + $0x844] sm:$0xf]  ;;  %v5285_v51 = vld [vmem:[#allocation2 + $0x850] sm:$0xf0]  ;;  %v5688_v16 = vor.u32 %v6637_v43, %v5685_v45 }
  0xe2   :  { %3565 = vmatpush.bf16.msra.mxu2 %v5592_v4  ;;  %v6569_v52 = vld [vmem:[#allocation2 + $0x944] sm:$0xf]  ;;  %v5413_v54 = vld [vmem:[#allocation2 + $0x950] sm:$0xf0]  ;;  %v5288_v61 = vor.u32 %v6537_v50, %v5285_v51 }
  0xe3   :  { %3578 = vmatpush.bf16.msra.mxu3 %v5720_v8  ;;  %v6601_v55 = vld [vmem:[#allocation2 + $0xa44] sm:$0xf]  ;;  %v5541_v56 = vld [vmem:[#allocation2 + $0xa50] sm:$0xf0]  ;;  %v5416_v0 = vor.u32 %v6569_v52, %v5413_v54 }
  0xe4   :  { %3540 = vmatpush.bf16.msra.mxu0 %v5320_v14  ;;  %v6633_v59 = vld [vmem:[#allocation2 + $0xb44] sm:$0xf]  ;;  %v5669_v60 = vld [vmem:[#allocation2 + $0xb50] sm:$0xf0]  ;;  %v5544_v1 = vor.u32 %v6601_v55, %v5541_v56  ;;  %v3314_v27 = vpop.f32.mrf.mxu2 }
  0xe5   :  { %3553 = vmatpush.bf16.msra.mxu1 %v5448_v17  ;;  %v6533_v2 = vld [vmem:[#allocation2 + $0x824] sm:$0xf]  ;;  %v5269_v3 = vld [vmem:[#allocation2 + $0x830] sm:$0xf0]  ;;  %v5672_v6 = vor.u32 %v6633_v59, %v5669_v60 }
  0xe6   :  { %3566 = vmatpush.bf16.msra.mxu2 %v5576_v21  ;;  %v6565_v4 = vld [vmem:[#allocation2 + $0x924] sm:$0xf]  ;;  %v5397_v7 = vld [vmem:[#allocation2 + $0x930] sm:$0xf0]  ;;  %v5272_v12 = vor.u32 %v6533_v2, %v5269_v3  ;;  %v3327_v39 = vpop.f32.mrf.mxu3 }
  0xe7   :  { %3579 = vmatpush.bf16.msra.mxu3 %v5704_v36  ;;  %v6597_v8 = vld [vmem:[#allocation2 + $0xa24] sm:$0xf]  ;;  %v5525_v9 = vld [vmem:[#allocation2 + $0xa30] sm:$0xf0]  ;;  %v5400_v15 = vor.u32 %v6565_v4, %v5397_v7 }
  0xe8   :  { %3541 = vmatpush.bf16.msra.mxu0 %v5304_v47  ;;  %v6629_v10 = vld [vmem:[#allocation2 + $0xb24] sm:$0xf]  ;;  %v5653_v11 = vld [vmem:[#allocation2 + $0xb30] sm:$0xf0]  ;;  %v5528_v17 = vor.u32 %v6597_v8, %v5525_v9 }
  0xe9   :  { %3554 = vmatpush.bf16.msra.mxu1 %v5432_v48  ;;  %v6529_v13 = vld [vmem:[#allocation2 + $0x804] sm:$0xf]  ;;  %v5253_v14 = vld [vmem:[#allocation2 + $0x810] sm:$0xf0]  ;;  %v5656_v32 = vor.u32 %v6629_v10, %v5653_v11 }
  0xea   :  { %3567 = vmatpush.bf16.msra.mxu2 %v5560_v49  ;;  %v6561_v21 = vld [vmem:[#allocation2 + $0x904] sm:$0xf]  ;;  %v5381_v24 = vld [vmem:[#allocation2 + $0x910] sm:$0xf0]  ;;  %v5256_v46 = vor.u32 %v6529_v13, %v5253_v14 }
  0xeb   :  { %3580 = vmatpush.bf16.msra.mxu3 %v5688_v16  ;;  %v6593_v26 = vld [vmem:[#allocation2 + $0xa04] sm:$0xf]  ;;  %v5509_v34 = vld [vmem:[#allocation2 + $0xa10] sm:$0xf0]  ;;  %v5384_v50 = vor.u32 %v6561_v21, %v5381_v24 }
  0xec   :  { %3542 = vmatpush.bf16.msra.mxu0 %v5288_v61  ;;  %v6625_v36 = vld [vmem:[#allocation2 + $0xb04] sm:$0xf]  ;;  %v5637_v37 = vld [vmem:[#allocation2 + $0xb10] sm:$0xf0]  ;;  %v5512_v51 = vor.u32 %v6593_v26, %v5509_v34 }
  0xed   :  { %3555 = vmatpush.bf16.msra.mxu1 %v5416_v0  ;;  %v6685_v40 = vld [vmem:[#allocation2 + $0xce4] sm:$0xf]  ;;  %v5877_v43 = vld [vmem:[#allocation2 + $0xcf0] sm:$0xf0]  ;;  %v5640_v16 = vor.u32 %v6625_v36, %v5637_v37 }
  0xee   :  { %3568 = vmatpush.bf16.msra.mxu2 %v5544_v1  ;;  %v6717_v45 = vld [vmem:[#allocation2 + $0xde4] sm:$0xf]  ;;  %v6005_v47 = vld [vmem:[#allocation2 + $0xdf0] sm:$0xf0]  ;;  %v5880_v54 = vor.u32 %v6685_v40, %v5877_v43 }
  0xef   :  { %3581 = vmatpush.bf16.msra.mxu3 %v5672_v6  ;;  %v6749_v48 = vld [vmem:[#allocation2 + $0xee4] sm:$0xf]  ;;  %v6133_v49 = vld [vmem:[#allocation2 + $0xef0] sm:$0xf0]  ;;  %v6008_v55 = vor.u32 %v6717_v45, %v6005_v47 }
  0xf0   :  { %3543 = vmatpush.bf16.msra.mxu0 %v5272_v12  ;;  %v6781_v52 = vld [vmem:[#allocation2 + $0xfe4] sm:$0xf]  ;;  %v6261_v53 = vld [vmem:[#allocation2 + $0xff0] sm:$0xf0]  ;;  %v6136_v56 = vor.u32 %v6749_v48, %v6133_v49 }
  0xf1   :  { %3556 = vmatpush.bf16.msra.mxu1 %v5400_v15  ;;  %v6681_v57 = vld [vmem:[#allocation2 + $0xcc4] sm:$0xf]  ;;  %v5861_v58 = vld [vmem:[#allocation2 + $0xcd0] sm:$0xf0]  ;;  %v6264_v60 = vor.u32 %v6781_v52, %v6261_v53 }
  0xf2   :  { %3569 = vmatpush.bf16.msra.mxu2 %v5528_v17  ;;  %v6713_v59 = vld [vmem:[#allocation2 + $0xdc4] sm:$0xf]  ;;  %v5989_v61 = vld [vmem:[#allocation2 + $0xdd0] sm:$0xf0]  ;;  %v5864_v3 = vor.u32 %v6681_v57, %v5861_v58 }
  0xf3   :  { %3582 = vmatpush.bf16.msra.mxu3 %v5656_v32  ;;  %v6745_v63 = vld [vmem:[#allocation2 + $0xec4] sm:$0xf]  ;;  %v6117_v0 = vld [vmem:[#allocation2 + $0xed0] sm:$0xf0]  ;;  %v5992_v4 = vor.u32 %v6713_v59, %v5989_v61 }
  0xf4   :  { %3544 = vmatpush.bf16.msra.mxu0 %v5256_v46  ;;  %v6777_v1 = vld [vmem:[#allocation2 + $0xfc4] sm:$0xf]  ;;  %v6245_v2 = vld [vmem:[#allocation2 + $0xfd0] sm:$0xf0]  ;;  %v6120_v5 = vor.u32 %v6745_v63, %v6117_v0 }
  0xf5   :  { %3557 = vmatpush.bf16.msra.mxu1 %v5384_v50  ;;  %v6677_v6 = vld [vmem:[#allocation2 + $0xca4] sm:$0xf]  ;;  %v5845_v7 = vld [vmem:[#allocation2 + $0xcb0] sm:$0xf0]  ;;  %v6248_v9 = vor.u32 %v6777_v1, %v6245_v2 }
  0xf6   :  { %3570 = vmatpush.bf16.msra.mxu2 %v5512_v51  ;;  %v6709_v8 = vld [vmem:[#allocation2 + $0xda4] sm:$0xf]  ;;  %v5973_v10 = vld [vmem:[#allocation2 + $0xdb0] sm:$0xf0]  ;;  %v5848_v15 = vor.u32 %v6677_v6, %v5845_v7  ;;  %v3338_v39 = vpop.f32.mrf.mxu0 }
  0xf7   :  { %3583 = vmatpush.bf16.msra.mxu3 %v5640_v16  ;;  %3545 = vmatmul.bf16.vlgmr.msra.gmra.mxu0 %v6990_v25  ;;  %v6741_v11 = vld [vmem:[#allocation2 + $0xea4] sm:$0xf]  ;;  %v6101_v12 = vld [vmem:[#allocation2 + $0xeb0] sm:$0xf0]  ;;  %v5976_v17 = vor.u32 %v6709_v8, %v5973_v10  ;;  %v3339_v45 = vadd.f32 %v3338_v39, %v7031_v62  ;;  %v3351_v47 = vpop.f32.mrf.mxu1 }
  0xf8   :  { %3589 = vmatpush.bf16.msrb.mxu0 %v5880_v54  ;;  %3558 = vmatmul.bf16.vlgmr.msra.gmra.mxu1 %v6994_v30  ;;  %v6773_v13 = vld [vmem:[#allocation2 + $0xfa4] sm:$0xf]  ;;  %v6229_v14 = vld [vmem:[#allocation2 + $0xfb0] sm:$0xf0]  ;;  %v6104_v21 = vor.u32 %v6741_v11, %v6101_v12 }
  0xf9   :  { %3602 = vmatpush.bf16.msrb.mxu1 %v6008_v55  ;;  %3571 = vmatmul.bf16.vlgmr.msra.gmra.mxu2 %v6992_v29  ;;  %v6673_v24 = vld [vmem:[#allocation2 + $0xc84] sm:$0xf]  ;;  %v5829_v26 = vld [vmem:[#allocation2 + $0xc90] sm:$0xf0]  ;;  %v6232_v32 = vor.u32 %v6773_v13, %v6229_v14  ;;  %v3352_v16 = vadd.f32 %v3351_v47, %v3339_v45 }
  0xfa   :  { %3615 = vmatpush.bf16.msrb.mxu2 %v6136_v56  ;;  %3584 = vmatmul.bf16.vlgmr.msra.gmra.mxu3 %v6996_v33  ;;  %v6705_v27 = vld [vmem:[#allocation2 + $0xd84] sm:$0xf]  ;;  %v5957_v34 = vld [vmem:[#allocation2 + $0xd90] sm:$0xf0]  ;;  %v5832_v46 = vor.u32 %v6673_v24, %v5829_v26 }
  0xfb   :  { %3628 = vmatpush.bf16.msrb.mxu3 %v6264_v60  ;;  %v6737_v36 = vld [vmem:[#allocation2 + $0xe84] sm:$0xf]  ;;  %v6085_v37 = vld [vmem:[#allocation2 + $0xe90] sm:$0xf0]  ;;  %v5960_v48 = vor.u32 %v6705_v27, %v5957_v34  ;;  %v3364_v2 = vpop.f32.mrf.mxu2 }
  0xfc   :  { %3590 = vmatpush.bf16.msrb.mxu0 %v5864_v3  ;;  %v6769_v40 = vld [vmem:[#allocation2 + $0xf84] sm:$0xf]  ;;  %v6213_v43 = vld [vmem:[#allocation2 + $0xf90] sm:$0xf0]  ;;  %v6088_v49 = vor.u32 %v6737_v36, %v6085_v37  ;;  %v3365_v6 = vadd.f32 %v3364_v2, %v3352_v16 }
  0xfd   :  { %3603 = vmatpush.bf16.msrb.mxu1 %v5992_v4  ;;  %v6669_v50 = vld [vmem:[#allocation2 + $0xc64] sm:$0xf]  ;;  %v5813_v51 = vld [vmem:[#allocation2 + $0xc70] sm:$0xf0]  ;;  %v6216_v53 = vor.u32 %v6769_v40, %v6213_v43 }
  0xfe   :  { %3616 = vmatpush.bf16.msrb.mxu2 %v6120_v5  ;;  %v6701_v52 = vld [vmem:[#allocation2 + $0xd64] sm:$0xf]  ;;  %v5941_v54 = vld [vmem:[#allocation2 + $0xd70] sm:$0xf0]  ;;  %v5816_v59 = vor.u32 %v6669_v50, %v5813_v51  ;;  %v3340_v10 = vpop.f32.mrf.mxu0 }
  0xff   :  { %3629 = vmatpush.bf16.msrb.mxu3 %v6248_v9  ;;  %v6733_v55 = vld [vmem:[#allocation2 + $0xe64] sm:$0xf]  ;;  %v6069_v56 = vld [vmem:[#allocation2 + $0xe70] sm:$0xf0]  ;;  %v5944_v62 = vor.u32 %v6701_v52, %v5941_v54  ;;  %v3377_v7 = vpop.f32.mrf.mxu3  ;;  %v3353_v12 = vpop.f32.mrf.mxu1  ;;  %v4347_v54 = vld [vmem:[#allocation2 + $0xe8] sm:$0xf] }
 0x100   :  { %3591 = vmatpush.bf16.msrb.mxu0 %v5848_v15  ;;  %v6765_v57 = vld [vmem:[#allocation2 + $0xf64] sm:$0xf]  ;;  %v6197_v58 = vld [vmem:[#allocation2 + $0xf70] sm:$0xf0]  ;;  %v6072_v60 = vor.u32 %v6733_v55, %v6069_v56  ;;  %v7038_v13 = vadd.f32 %v3377_v7, %v3365_v6  ;;  %v6304_v55 = vld [vmem:[#allocation2 + $0xf4] sm:$0xf0] }
 0x101   :  { %3604 = vmatpush.bf16.msrb.mxu1 %v5976_v17  ;;  %v6665_v61 = vld [vmem:[#allocation2 + $0xc44] sm:$0xf]  ;;  %v5797_v63 = vld [vmem:[#allocation2 + $0xc50] sm:$0xf0]  ;;  %v6200_v1 = vor.u32 %v6765_v57, %v6197_v58  ;;  %v4475_v56 = vld [vmem:[#allocation2 + $0x1e8] sm:$0xf] }
 0x102   :  { %3617 = vmatpush.bf16.msrb.mxu2 %v6104_v21  ;;  %v6697_v0 = vld [vmem:[#allocation2 + $0xd44] sm:$0xf]  ;;  %v5925_v3 = vld [vmem:[#allocation2 + $0xd50] sm:$0xf0]  ;;  %v5800_v11 = vor.u32 %v6665_v61, %v5797_v63  ;;  %v4331_v6 = vld [vmem:[#allocation2 + $0xc8] sm:$0xf] }
 0x103   :  { %3630 = vmatpush.bf16.msrb.mxu3 %v6232_v32  ;;  %v6729_v4 = vld [vmem:[#allocation2 + $0xe44] sm:$0xf]  ;;  %v6053_v5 = vld [vmem:[#allocation2 + $0xe50] sm:$0xf0]  ;;  %v5928_v14 = vor.u32 %v6697_v0, %v5925_v3  ;;  %v3366_v16 = vpop.f32.mrf.mxu2  ;;  %v4731_v0 = vld [vmem:[#allocation2 + $0x3e8] sm:$0xf]  ;;  %v4348_v3 = vor.u32 %v6304_v55, %v4347_v54 }
 0x104   :  { %3592 = vmatpush.bf16.msrb.mxu0 %v5832_v46  ;;  %v6761_v8 = vld [vmem:[#allocation2 + $0xf44] sm:$0xf]  ;;  %v6181_v9 = vld [vmem:[#allocation2 + $0xf50] sm:$0xf0]  ;;  %v6056_v15 = vor.u32 %v6729_v4, %v6053_v5  ;;  %v6300_v7 = vld [vmem:[#allocation2 + $0xd4] sm:$0xf0] }
 0x105   :  { %3605 = vmatpush.bf16.msrb.mxu1 %v5960_v48  ;;  %v6661_v17 = vld [vmem:[#allocation2 + $0xc24] sm:$0xf]  ;;  %v5781_v21 = vld [vmem:[#allocation2 + $0xc30] sm:$0xf0]  ;;  %v6184_v26 = vor.u32 %v6761_v8, %v6181_v9  ;;  %v4459_v8 = vld [vmem:[#allocation2 + $0x1c8] sm:$0xf] }
 0x106   :  { %3618 = vmatpush.bf16.msrb.mxu2 %v6088_v49  ;;  %v6693_v24 = vld [vmem:[#allocation2 + $0xd24] sm:$0xf]  ;;  %v5909_v27 = vld [vmem:[#allocation2 + $0xd30] sm:$0xf0]  ;;  %v5784_v39 = vor.u32 %v6661_v17, %v5781_v21  ;;  %v6332_v10 = vld [vmem:[#allocation2 + $0x1d4] sm:$0xf0]  ;;  %v4332_v17 = vor.u32 %v6300_v7, %v4331_v6 }
 0x107   :  { %3631 = vmatpush.bf16.msrb.mxu3 %v6216_v53  ;;  %v6725_v32 = vld [vmem:[#allocation2 + $0xe24] sm:$0xf]  ;;  %v6037_v34 = vld [vmem:[#allocation2 + $0xe30] sm:$0xf0]  ;;  %v5912_v45 = vor.u32 %v6693_v24, %v5909_v27  ;;  %v3379_v57 = vpop.f32.mrf.mxu3  ;;  %v6364_v12 = vld [vmem:[#allocation2 + $0x2d4] sm:$0xf0]  ;;  %v4460_v21 = vor.u32 %v6332_v10, %v4459_v8 }
 0x108   :  { %3593 = vmatpush.bf16.msrb.mxu0 %v5816_v59  ;;  %v6757_v36 = vld [vmem:[#allocation2 + $0xf24] sm:$0xf]  ;;  %v6165_v37 = vld [vmem:[#allocation2 + $0xf30] sm:$0xf0]  ;;  %v6040_v46 = vor.u32 %v6725_v32, %v6037_v34  ;;  %v6336_v59 = vld [vmem:[#allocation2 + $0x1f4] sm:$0xf0] }
 0x109   :  { %3606 = vmatpush.bf16.msrb.mxu1 %v5944_v62  ;;  %v6657_v40 = vld [vmem:[#allocation2 + $0xc04] sm:$0xf]  ;;  %v5765_v43 = vld [vmem:[#allocation2 + $0xc10] sm:$0xf0]  ;;  %v6168_v50 = vor.u32 %v6757_v36, %v6165_v37  ;;  %v4603_v62 = vld [vmem:[#allocation2 + $0x2e8] sm:$0xf]  ;;  %v4476_v4 = vor.u32 %v6336_v59, %v4475_v56 }
 0x10a   :  { %3619 = vmatpush.bf16.msrb.mxu2 %v6072_v60  ;;  %v6689_v47 = vld [vmem:[#allocation2 + $0xd04] sm:$0xf]  ;;  %v5893_v48 = vld [vmem:[#allocation2 + $0xd10] sm:$0xf0]  ;;  %v5768_v58 = vor.u32 %v6657_v40, %v5765_v43  ;;  %v6368_v60 = vld [vmem:[#allocation2 + $0x2f4] sm:$0xf0] }
 0x10b   :  { %3632 = vmatpush.bf16.msrb.mxu3 %v6200_v1  ;;  %v6721_v49 = vld [vmem:[#allocation2 + $0xe04] sm:$0xf]  ;;  %v6021_v51 = vld [vmem:[#allocation2 + $0xe10] sm:$0xf0]  ;;  %v5896_v61 = vor.u32 %v6689_v47, %v5893_v48  ;;  %v6400_v1 = vld [vmem:[#allocation2 + $0x3f4] sm:$0xf0]  ;;  %v4604_v5 = vor.u32 %v6368_v60, %v4603_v62 }
 0x10c   :  { %3594 = vmatpush.bf16.msrb.mxu0 %v5800_v11  ;;  %v6753_v52 = vld [vmem:[#allocation2 + $0xf04] sm:$0xf]  ;;  %v6149_v53 = vld [vmem:[#allocation2 + $0xf10] sm:$0xf0]  ;;  %v6024_v63 = vor.u32 %v6721_v49, %v6021_v51  ;;  %v4732_v9 = vor.u32 %v6400_v1, %v4731_v0  ;;  %v4587_v11 = vld [vmem:[#allocation2 + $0x2c8] sm:$0xf] }
 0x10d   :  { %3607 = vmatpush.bf16.msrb.mxu1 %v5928_v14  ;;  %v6152_v2 = vor.u32 %v6753_v52, %v6149_v53  ;;  %v4715_v14 = vld [vmem:[#allocation2 + $0x3c8] sm:$0xf]  ;;  %v4588_v24 = vor.u32 %v6364_v12, %v4587_v11  ;;  %v6296_v27 = vld [vmem:[#allocation2 + $0xb4] sm:$0xf0] }
 0x10e   :  { %3620 = vmatpush.bf16.msrb.mxu2 %v6056_v15  ;;  %v6396_v15 = vld [vmem:[#allocation2 + $0x3d4] sm:$0xf0]  ;;  %v4443_v32 = vld [vmem:[#allocation2 + $0x1a8] sm:$0xf] }
 0x10f   :  { %3633 = vmatpush.bf16.msrb.mxu3 %v6184_v26  ;;  %v4315_v26 = vld [vmem:[#allocation2 + $0xa8] sm:$0xf]  ;;  %v4716_v34 = vor.u32 %v6396_v15, %v4715_v14  ;;  %v6328_v36 = vld [vmem:[#allocation2 + $0x1b4] sm:$0xf0] }
 0x110   :  { %3595 = vmatpush.bf16.msrb.mxu0 %v5784_v39  ;;  %v4571_v37 = vld [vmem:[#allocation2 + $0x2a8] sm:$0xf]  ;;  %v6360_v39 = vld [vmem:[#allocation2 + $0x2b4] sm:$0xf0] }
 0x111   :  { %3608 = vmatpush.bf16.msrb.mxu1 %v5912_v45  ;;  %v4699_v40 = vld [vmem:[#allocation2 + $0x3a8] sm:$0xf]  ;;  %v6392_v43 = vld [vmem:[#allocation2 + $0x3b4] sm:$0xf0]  ;;  %v4316_v45 = vor.u32 %v6296_v27, %v4315_v26  ;;  %v4572_v47 = vor.u32 %v6360_v39, %v4571_v37 }
 0x112   :  { %3621 = vmatpush.bf16.msrb.mxu2 %v6040_v46  ;;  %v4444_v46 = vor.u32 %v6328_v36, %v4443_v32  ;;  %v4299_v48 = vld [vmem:[#allocation2 + $0x88] sm:$0xf]  ;;  %v6292_v49 = vld [vmem:[#allocation2 + $0x94] sm:$0xf0]  ;;  %v4700_v51 = vor.u32 %v6392_v43, %v4699_v40 }
 0x113   :  { %3634 = vmatpush.bf16.msrb.mxu3 %v6168_v50  ;;  %v4427_v50 = vld [vmem:[#allocation2 + $0x188] sm:$0xf]  ;;  %v6324_v52 = vld [vmem:[#allocation2 + $0x194] sm:$0xf0] }
 0x114   :  { %3596 = vmatpush.bf16.msrb.mxu0 %v5768_v58  ;;  %v4555_v53 = vld [vmem:[#allocation2 + $0x288] sm:$0xf]  ;;  %v6356_v16 = vld [vmem:[#allocation2 + $0x294] sm:$0xf0]  ;;  %v4300_v58 = vor.u32 %v6292_v49, %v4299_v48  ;;  %v4428_v62 = vor.u32 %v6324_v52, %v4427_v50 }
 0x115   :  { %3609 = vmatpush.bf16.msrb.mxu1 %v5896_v61  ;;  %v4683_v55 = vld [vmem:[#allocation2 + $0x388] sm:$0xf]  ;;  %v6388_v56 = vld [vmem:[#allocation2 + $0x394] sm:$0xf0]  ;;  %v3403_v59 = vpop.f32.mrf.mxu1  ;;  %v4556_v60 = vor.u32 %v6356_v16, %v4555_v53 }
 0x116   :  { %3622 = vmatpush.bf16.msrb.mxu2 %v6024_v63  ;;  %v3390_v54 = vpop.f32.mrf.mxu0  ;;  %v4283_v61 = vld [vmem:[#allocation2 + $0x68] sm:$0xf]  ;;  %v6288_v63 = vld [vmem:[#allocation2 + $0x74] sm:$0xf0]  ;;  %v4684_v1 = vor.u32 %v6388_v56, %v4683_v55 }
 0x117   :  { %3635 = vmatpush.bf16.msrb.mxu3 %v6152_v2  ;;  %3597 = vmatmul.bf16.vlgmr.msrb.gmra.mxu0 %v7008_v23  ;;  %v3391_v57 = vadd.f32 %v3390_v54, %v7038_v13  ;;  %v4411_v0 = vld [vmem:[#allocation2 + $0x168] sm:$0xf]  ;;  %v6384_v7 = vld [vmem:[#allocation2 + $0x374] sm:$0xf0]  ;;  %v4284_v8 = vor.u32 %v6288_v63, %v4283_v61 }
 0x118   :  { %3641 = vmatpush.bf16.msra.mxu0 %v4348_v3  ;;  %3610 = vmatmul.bf16.vlgmr.msrb.gmra.mxu1 %v7012_v31  ;;  %v6320_v3 = vld [vmem:[#allocation2 + $0x174] sm:$0xf0]  ;;  %v4667_v6 = vld [vmem:[#allocation2 + $0x368] sm:$0xf] }
 0x119   :  { %3654 = vmatpush.bf16.msra.mxu1 %v4476_v4  ;;  %3623 = vmatmul.bf16.vlgmr.msrb.gmra.mxu2 %v7010_v28  ;;  %v3404_v2 = vadd.f32 %v3403_v59, %v3391_v57  ;;  %v4539_v4 = vld [vmem:[#allocation2 + $0x268] sm:$0xf]  ;;  %v4412_v13 = vor.u32 %v6320_v3, %v4411_v0  ;;  %v6284_v11 = vld [vmem:[#allocation2 + $0x54] sm:$0xf0]  ;;  %v4668_v14 = vor.u32 %v6384_v7, %v4667_v6 }
 0x11a   :  { %3667 = vmatpush.bf16.msra.mxu2 %v4604_v5  ;;  %3636 = vmatmul.bf16.vlgmr.msrb.gmra.mxu3 %v7014_v35  ;;  %v6352_v5 = vld [vmem:[#allocation2 + $0x274] sm:$0xf0]  ;;  %v4267_v10 = vld [vmem:[#allocation2 + $0x48] sm:$0xf] }
 0x11b   :  { %3680 = vmatpush.bf16.msra.mxu3 %v4732_v9  ;;  %v4540_v9 = vor.u32 %v6352_v5, %v4539_v4  ;;  %v4395_v12 = vld [vmem:[#allocation2 + $0x148] sm:$0xf]  ;;  %v4268_v37 = vor.u32 %v6284_v11, %v4267_v10  ;;  %v6312_v50 = vld [vmem:[#allocation2 + $0x134] sm:$0xf0] }
 0x11c   :  { %3642 = vmatpush.bf16.msra.mxu0 %v4332_v17  ;;  %v6316_v17 = vld [vmem:[#allocation2 + $0x154] sm:$0xf0]  ;;  %v4651_v32 = vld [vmem:[#allocation2 + $0x348] sm:$0xf] }
 0x11d   :  { %3655 = vmatpush.bf16.msra.mxu1 %v4460_v21  ;;  %v4523_v21 = vld [vmem:[#allocation2 + $0x248] sm:$0xf]  ;;  %v3429_v27 = vpop.f32.mrf.mxu3  ;;  %v3405_v39 = vpop.f32.mrf.mxu1  ;;  %v4396_v43 = vor.u32 %v6316_v17, %v4395_v12  ;;  %v6344_v52 = vld [vmem:[#allocation2 + $0x234] sm:$0xf0] }
 0x11e   :  { %3668 = vmatpush.bf16.msra.mxu2 %v4588_v24  ;;  %v3416_v15 = vpop.f32.mrf.mxu2  ;;  %v6348_v24 = vld [vmem:[#allocation2 + $0x254] sm:$0xf0]  ;;  %v3392_v36 = vpop.f32.mrf.mxu0  ;;  %v4379_v48 = vld [vmem:[#allocation2 + $0x128] sm:$0xf] }
 0x11f   :  { %3681 = vmatpush.bf16.msra.mxu3 %v4716_v34  ;;  %v3417_v26 = vadd.f32 %v3416_v15, %v3404_v2  ;;  %v6380_v34 = vld [vmem:[#allocation2 + $0x354] sm:$0xf0]  ;;  %v4635_v53 = vld [vmem:[#allocation2 + $0x328] sm:$0xf]  ;;  %v4380_v57 = vor.u32 %v6312_v50, %v4379_v48 }
 0x120   :  { %3643 = vmatpush.bf16.msra.mxu0 %v4316_v45  ;;  %v4524_v45 = vor.u32 %v6348_v24, %v4523_v21  ;;  %v4652_v49 = vor.u32 %v6380_v34, %v4651_v32  ;;  %v6376_v16 = vld [vmem:[#allocation2 + $0x334] sm:$0xf0]  ;;  %v4235_v55 = vld [vmem:[#allocation2 + $0x8] sm:$0xf] }
 0x121   :  { %3656 = vmatpush.bf16.msra.mxu1 %v4444_v46  ;;  %v7045_v40 = vadd.f32 %v3429_v27, %v3417_v26  ;;  %v4251_v46 = vld [vmem:[#allocation2 + $0x28] sm:$0xf]  ;;  %v6276_v56 = vld [vmem:[#allocation2 + $0x14] sm:$0xf0]  ;;  %v4636_v61 = vor.u32 %v6376_v16, %v4635_v53 }
 0x122   :  { %3669 = vmatpush.bf16.msra.mxu2 %v4572_v47  ;;  %v6280_v47 = vld [vmem:[#allocation2 + $0x34] sm:$0xf0]  ;;  %v4363_v59 = vld [vmem:[#allocation2 + $0x108] sm:$0xf]  ;;  %v4236_v7 = vor.u32 %v6276_v56, %v4235_v55 }
 0x123   :  { %3682 = vmatpush.bf16.msra.mxu3 %v4700_v51  ;;  %v4507_v51 = vld [vmem:[#allocation2 + $0x228] sm:$0xf]  ;;  %v4252_v54 = vor.u32 %v6280_v47, %v4251_v46  ;;  %v6340_v63 = vld [vmem:[#allocation2 + $0x214] sm:$0xf0]  ;;  %vm4057_vm0 = vcmp.ge.f32.partialorder %v7045_v40, 0.0 }
 0x124   :  { %3644 = vmatpush.bf16.msra.mxu0 %v4300_v58  ;;  %v4508_v58 = vor.u32 %v6344_v52, %v4507_v51  ;;  %v4619_v0 = vld [vmem:[#allocation2 + $0x308] sm:$0xf]  ;;  %v6432_v4 = vld [vmem:[#allocation2 + $0x4f4] sm:$0xf0] }
 0x125   :  { %3657 = vmatpush.bf16.msra.mxu1 %v4428_v62  ;;  %v6308_v62 = vld [vmem:[#allocation2 + $0x114] sm:$0xf0]  ;;  %v4859_v3 = vld [vmem:[#allocation2 + $0x4e8] sm:$0xf]  ;;  %v3431_v6 = vpop.f32.mrf.mxu3 }
 0x126   :  { %3670 = vmatpush.bf16.msra.mxu2 %v4556_v60  ;;  %v4491_v60 = vld [vmem:[#allocation2 + $0x208] sm:$0xf]  ;;  %v3418_v2 = vpop.f32.mrf.mxu2  ;;  %v4364_v10 = vor.u32 %v6308_v62, %v4363_v59  ;;  %v4860_v17 = vor.u32 %v6432_v4, %v4859_v3  ;;  %v6428_v27 = vld [vmem:[#allocation2 + $0x4d4] sm:$0xf0] }
 0x127   :  { %3683 = vmatpush.bf16.msra.mxu3 %v4684_v1  ;;  %v6372_v1 = vld [vmem:[#allocation2 + $0x314] sm:$0xf0]  ;;  %v4987_v5 = vld [vmem:[#allocation2 + $0x5e8] sm:$0xf]  ;;  %v4492_v11 = vor.u32 %v6340_v63, %v4491_v60 }
 0x128   :  { %3645 = vmatpush.bf16.msra.mxu0 %v4284_v8  ;;  %v6464_v8 = vld [vmem:[#allocation2 + $0x5f4] sm:$0xf0]  ;;  %v5243_v12 = vld [vmem:[#allocation2 + $0x7e8] sm:$0xf]  ;;  %v4620_v15 = vor.u32 %v6372_v1, %v4619_v0 }
 0x129   :  { %3658 = vmatpush.bf16.msra.mxu1 %v4412_v13  ;;  %v5115_v13 = vld [vmem:[#allocation2 + $0x6e8] sm:$0xf]  ;;  %v4988_v21 = vor.u32 %v6464_v8, %v4987_v5  ;;  %v6460_v36 = vld [vmem:[#allocation2 + $0x5d4] sm:$0xf0] }
 0x12a   :  { %3671 = vmatpush.bf16.msra.mxu2 %v4540_v9  ;;  %v6496_v9 = vld [vmem:[#allocation2 + $0x6f4] sm:$0xf0]  ;;  %v4843_v26 = vld [vmem:[#allocation2 + $0x4c8] sm:$0xf] }
 0x12b   :  { %3684 = vmatpush.bf16.msra.mxu3 %v4668_v14  ;;  %v6528_v14 = vld [vmem:[#allocation2 + $0x7f4] sm:$0xf0]  ;;  %v5116_v24 = vor.u32 %v6496_v9, %v5115_v13  ;;  %v4971_v32 = vld [vmem:[#allocation2 + $0x5c8] sm:$0xf]  ;;  %v4844_v46 = vor.u32 %v6428_v27, %v4843_v26 }
 0x12c   :  { %3646 = vmatpush.bf16.msra.mxu0 %v4268_v37  ;;  %v5244_v34 = vor.u32 %v6528_v14, %v5243_v12  ;;  %v5099_v37 = vld [vmem:[#allocation2 + $0x6c8] sm:$0xf]  ;;  %v6492_v39 = vld [vmem:[#allocation2 + $0x6d4] sm:$0xf0]  ;;  %v4972_v47 = vor.u32 %v6460_v36, %v4971_v32 }
 0x12d   :  { %3659 = vmatpush.bf16.msra.mxu1 %v4396_v43  ;;  %v5227_v43 = vld [vmem:[#allocation2 + $0x7c8] sm:$0xf]  ;;  %v5100_v48 = vor.u32 %v6492_v39, %v5099_v37  ;;  %v6424_v50 = vld [vmem:[#allocation2 + $0x4b4] sm:$0xf0] }
 0x12e   :  { %3672 = vmatpush.bf16.msra.mxu2 %v4524_v45  ;;  %v6524_v45 = vld [vmem:[#allocation2 + $0x7d4] sm:$0xf0]  ;;  %v4955_v51 = vld [vmem:[#allocation2 + $0x5a8] sm:$0xf] }
 0x12f   :  { %3685 = vmatpush.bf16.msra.mxu3 %v4652_v49  ;;  %v4827_v49 = vld [vmem:[#allocation2 + $0x4a8] sm:$0xf]  ;;  %v5228_v52 = vor.u32 %v6524_v45, %v5227_v43  ;;  %v6456_v53 = vld [vmem:[#allocation2 + $0x5b4] sm:$0xf0] }
 0x130   :  { %3647 = vmatpush.bf16.msra.mxu0 %v4252_v54  ;;  %v5083_v16 = vld [vmem:[#allocation2 + $0x6a8] sm:$0xf]  ;;  %v6488_v54 = vld [vmem:[#allocation2 + $0x6b4] sm:$0xf0] }
 0x131   :  { %3660 = vmatpush.bf16.msra.mxu1 %v4380_v57  ;;  %v5211_v55 = vld [vmem:[#allocation2 + $0x7a8] sm:$0xf]  ;;  %v6520_v56 = vld [vmem:[#allocation2 + $0x7b4] sm:$0xf0]  ;;  %v4828_v57 = vor.u32 %v6424_v50, %v4827_v49  ;;  %v5084_v59 = vor.u32 %v6488_v54, %v5083_v16 }
 0x132   :  { %3673 = vmatpush.bf16.msra.mxu2 %v4508_v58  ;;  %v4956_v58 = vor.u32 %v6456_v53, %v4955_v51  ;;  %v4811_v62 = vld [vmem:[#allocation2 + $0x488] sm:$0xf]  ;;  %v6420_v60 = vld [vmem:[#allocation2 + $0x494] sm:$0xf0]  ;;  %v5212_v63 = vor.u32 %v6520_v56, %v5211_v55 }
 0x133   :  { %3686 = vmatpush.bf16.msra.mxu3 %v4636_v61  ;;  %v4939_v61 = vld [vmem:[#allocation2 + $0x588] sm:$0xf]  ;;  %v6452_v0 = vld [vmem:[#allocation2 + $0x594] sm:$0xf0]  ;;  %v4812_v5 = vor.u32 %v6420_v60, %v4811_v62 }
 0x134   :  { %3648 = vmatpush.bf16.msra.mxu0 %v4236_v7  ;;  %v5067_v1 = vld [vmem:[#allocation2 + $0x688] sm:$0xf]  ;;  %v6484_v2 = vld [vmem:[#allocation2 + $0x694] sm:$0xf0]  ;;  %v7051_v6 = vpop.f32.mrf.mxu0  ;;  %v4940_v7 = vor.u32 %v6452_v0, %v4939_v61  ;;  %v6794_v0 = vld [vmem:[#allocation4] sm:$0xf] }
 0x135   :  { %3661 = vmatpush.bf16.msra.mxu1 %v4364_v10  ;;  %v5195_v3 = vld [vmem:[#allocation2 + $0x788] sm:$0xf]  ;;  %v6516_v4 = vld [vmem:[#allocation2 + $0x794] sm:$0xf0]  ;;  %v5068_v8 = vor.u32 %v6484_v2, %v5067_v1  ;;  %v602_v1 = vperm.slane %v6794_v0, 1 }
 0x136   :  { %3674 = vmatpush.bf16.msra.mxu2 %v4492_v11  ;;  %v4795_v13 = vld [vmem:[#allocation2 + $0x468] sm:$0xf]  ;;  %v6416_v9 = vld [vmem:[#allocation2 + $0x474] sm:$0xf0]  ;;  %v7053_v11 = vpop.f32.mrf.mxu1  ;;  %v5196_v12 = vor.u32 %v6516_v4, %v5195_v3 }
 0x137   :  { %3687 = vmatpush.bf16.msra.mxu3 %v4620_v15  ;;  %3649 = vmatmul.bf16.vlgmr.msra.gmra.mxu0 %v6956_v19  ;;  %v4923_v10 = vld [vmem:[#allocation2 + $0x568] sm:$0xf]  ;;  %v6448_v14 = vld [vmem:[#allocation2 + $0x574] sm:$0xf0]  ;;  %v4796_v26 = vor.u32 %v6416_v9, %v4795_v13 }
 0x138   :  { %3693 = vmatpush.bf16.msrb.mxu0 %v4860_v17  ;;  %3662 = vmatmul.bf16.vlgmr.msra.gmra.mxu1 %v6960_v22  ;;  %v5051_v15 = vld [vmem:[#allocation2 + $0x668] sm:$0xf]  ;;  %v6480_v17 = vld [vmem:[#allocation2 + $0x674] sm:$0xf0]  ;;  %v4924_v27 = vor.u32 %v6448_v14, %v4923_v10 }
 0x139   :  { %3706 = vmatpush.bf16.msrb.mxu1 %v4988_v21  ;;  %3675 = vmatmul.bf16.vlgmr.msra.gmra.mxu2 %v6954_v18  ;;  %v5179_v21 = vld [vmem:[#allocation2 + $0x768] sm:$0xf]  ;;  %v5052_v32 = vor.u32 %v6480_v17, %v5051_v15  ;;  %v6412_v36 = vld [vmem:[#allocation2 + $0x454] sm:$0xf0] }
 0x13a   :  { %3719 = vmatpush.bf16.msrb.mxu2 %v5116_v24  ;;  %3688 = vmatmul.bf16.vlgmr.msra.gmra.mxu3 %v6958_v20  ;;  %v6512_v24 = vld [vmem:[#allocation2 + $0x774] sm:$0xf0]  ;;  %v4907_v37 = vld [vmem:[#allocation2 + $0x548] sm:$0xf] }
 0x13b   :  { %3732 = vmatpush.bf16.msrb.mxu3 %v5244_v34  ;;  %v4779_v34 = vld [vmem:[#allocation2 + $0x448] sm:$0xf]  ;;  %v5180_v43 = vor.u32 %v6512_v24, %v5179_v21  ;;  %v6444_v45 = vld [vmem:[#allocation2 + $0x554] sm:$0xf0] }
 0x13c   :  { %3694 = vmatpush.bf16.msrb.mxu0 %v4844_v46  ;;  %v7055_v39 = vpop.f32.mrf.mxu2  ;;  %v5035_v46 = vld [vmem:[#allocation2 + $0x648] sm:$0xf]  ;;  %v6508_v50 = vld [vmem:[#allocation2 + $0x754] sm:$0xf0]  ;;  %v4780_v51 = vor.u32 %v6412_v36, %v4779_v34  ;;  %v4908_v53 = vor.u32 %v6444_v45, %v4907_v37 }
 0x13d   :  { %3707 = vmatpush.bf16.msrb.mxu1 %v4972_v47  ;;  %v6476_v47 = vld [vmem:[#allocation2 + $0x654] sm:$0xf0]  ;;  %v5163_v49 = vld [vmem:[#allocation2 + $0x748] sm:$0xf] }
 0x13e   :  { %3720 = vmatpush.bf16.msrb.mxu2 %v5100_v48  ;;  %v7057_v48 = vpop.f32.mrf.mxu3  ;;  %v5036_v16 = vor.u32 %v6476_v47, %v5035_v46  ;;  %v4763_v54 = vld [vmem:[#allocation2 + $0x428] sm:$0xf]  ;;  %v6408_v55 = vld [vmem:[#allocation2 + $0x434] sm:$0xf0] }
 0x13f   :  { %3733 = vmatpush.bf16.msrb.mxu3 %v5228_v52  ;;  %v3444_v52 = vpop.f32.mrf.mxu0  ;;  %v4891_v56 = vld [vmem:[#allocation2 + $0x528] sm:$0xf]  ;;  %v6472_v60 = vld [vmem:[#allocation2 + $0x634] sm:$0xf0]  ;;  %v4764_v2 = vor.u32 %v6408_v55, %v4763_v54 }
 0x140   :  { %3695 = vmatpush.bf16.msrb.mxu0 %v4828_v57  ;;  %v3457_v57 = vpop.f32.mrf.mxu1  ;;  %v5019_v62 = vld [vmem:[#allocation2 + $0x628] sm:$0xf]  ;;  %v6404_v4 = vld [vmem:[#allocation2 + $0x414] sm:$0xf0] }
 0x141   :  { %3708 = vmatpush.bf16.msrb.mxu1 %v4956_v58  ;;  %v5164_v58 = vor.u32 %v6508_v50, %v5163_v49  ;;  %v5147_v61 = vld [vmem:[#allocation2 + $0x728] sm:$0xf]  ;;  %v6436_v13 = vld [vmem:[#allocation2 + $0x514] sm:$0xf0] }
 0x142   :  { %3721 = vmatpush.bf16.msrb.mxu2 %v5084_v59  ;;  %v6440_v59 = vld [vmem:[#allocation2 + $0x534] sm:$0xf0]  ;;  %v4747_v3 = vld [vmem:[#allocation2 + $0x408] sm:$0xf] }
 0x143   :  { %3734 = vmatpush.bf16.msrb.mxu3 %v5212_v63  ;;  %v6504_v63 = vld [vmem:[#allocation2 + $0x734] sm:$0xf0]  ;;  %v5003_v9 = vld [vmem:[#allocation2 + $0x608] sm:$0xf]  ;;  %v4748_v34 = vor.u32 %v6404_v4, %v4747_v3 }
 0x144   :  { %3696 = vmatpush.bf16.msrb.mxu0 %v4812_v5  ;;  %v4892_v5 = vor.u32 %v6440_v59, %v4891_v56  ;;  %v3470_v10 = vpop.f32.mrf.mxu2  ;;  %v6468_v14 = vld [vmem:[#allocation2 + $0x614] sm:$0xf0]  ;;  %v5131_v15 = vld [vmem:[#allocation2 + $0x708] sm:$0xf] }
 0x145   :  { %3709 = vmatpush.bf16.msrb.mxu1 %v4940_v7  ;;  %v5020_v7 = vor.u32 %v6472_v60, %v5019_v62  ;;  %v6500_v17 = vld [vmem:[#allocation2 + $0x714] sm:$0xf0]  ;;  %v5371_v24 = vld [vmem:[#allocation2 + $0x8e8] sm:$0xf]  ;;  %v5004_v46 = vor.u32 %v6468_v14, %v5003_v9 }
 0x146   :  { %3722 = vmatpush.bf16.msrb.mxu2 %v5068_v8  ;;  %v4875_v8 = vld [vmem:[#allocation2 + $0x508] sm:$0xf]  ;;  %v3483_v21 = vpop.f32.mrf.mxu3  ;;  %v6592_v36 = vld [vmem:[#allocation2 + $0x9f4] sm:$0xf0]  ;;  %v5132_v50 = vor.u32 %v6500_v17, %v5131_v15 }
 0x147   :  { %3735 = vmatpush.bf16.msrb.mxu3 %v5196_v12  ;;  %v5148_v12 = vor.u32 %v6504_v63, %v5147_v61  ;;  %v5627_v37 = vld [vmem:[#allocation2 + $0xae8] sm:$0xf]  ;;  %v4876_v45 = vor.u32 %v6436_v13, %v4875_v8  ;;  %v6656_v49 = vld [vmem:[#allocation2 + $0xbf4] sm:$0xf0] }
 0x148   :  { %3697 = vmatpush.bf16.msrb.mxu0 %v4796_v26  ;;  %v6560_v26 = vld [vmem:[#allocation2 + $0x8f4] sm:$0xf0]  ;;  %v5755_v47 = vld [vmem:[#allocation2 + $0xbe8] sm:$0xf] }
 0x149   :  { %3710 = vmatpush.bf16.msrb.mxu1 %v4924_v27  ;;  %v5499_v27 = vld [vmem:[#allocation2 + $0x9e8] sm:$0xf]  ;;  %v6556_v54 = vld [vmem:[#allocation2 + $0x8d4] sm:$0xf0]  ;;  %v5756_v56 = vor.u32 %v6656_v49, %v5755_v47 }
 0x14a   :  { %3723 = vmatpush.bf16.msrb.mxu2 %v5052_v32  ;;  %v3443_v32 = vadd.f32 %v7051_v6, %v602_v1  ;;  %v5500_v52 = vor.u32 %v6592_v36, %v5499_v27  ;;  %v5483_v55 = vld [vmem:[#allocation2 + $0x9c8] sm:$0xf]  ;;  %v6588_v57 = vld [vmem:[#allocation2 + $0x9d4] sm:$0xf0] }
 0x14b   :  { %3736 = vmatpush.bf16.msrb.mxu3 %v5180_v43  ;;  %v6624_v43 = vld [vmem:[#allocation2 + $0xaf4] sm:$0xf0]  ;;  %v5739_v62 = vld [vmem:[#allocation2 + $0xbc8] sm:$0xf]  ;;  %v5484_v63 = vor.u32 %v6588_v57, %v5483_v55 }
 0x14c   :  { %3698 = vmatpush.bf16.msrb.mxu0 %v4780_v51  ;;  %v5372_v51 = vor.u32 %v6560_v26, %v5371_v24  ;;  %v3456_v6 = vadd.f32 %v7053_v11, %v3443_v32  ;;  %v6620_v59 = vld [vmem:[#allocation2 + $0xad4] sm:$0xf0]  ;;  %v5467_v3 = vld [vmem:[#allocation2 + $0x9a8] sm:$0xf] }
 0x14d   :  { %3711 = vmatpush.bf16.msrb.mxu1 %v4908_v53  ;;  %v5628_v53 = vor.u32 %v6624_v43, %v5627_v37  ;;  %v6652_v60 = vld [vmem:[#allocation2 + $0xbd4] sm:$0xf0]  ;;  %v5723_v13 = vld [vmem:[#allocation2 + $0xba8] sm:$0xf] }
 0x14e   :  { %3724 = vmatpush.bf16.msrb.mxu2 %v5036_v16  ;;  %v5355_v16 = vld [vmem:[#allocation2 + $0x8c8] sm:$0xf]  ;;  %v3469_v1 = vadd.f32 %v7055_v39, %v3456_v6  ;;  %v6552_v11 = vld [vmem:[#allocation2 + $0x8b4] sm:$0xf0]  ;;  %v5740_v4 = vor.u32 %v6652_v60, %v5739_v62 }
 0x14f   :  { %3737 = vmatpush.bf16.msrb.mxu3 %v5164_v58  ;;  %v5611_v58 = vld [vmem:[#allocation2 + $0xac8] sm:$0xf]  ;;  %v5356_v61 = vor.u32 %v6556_v54, %v5355_v16  ;;  %v6616_v8 = vld [vmem:[#allocation2 + $0xab4] sm:$0xf0] }
 0x150   :  { %3699 = vmatpush.bf16.msrb.mxu0 %v4764_v2  ;;  %v5612_v0 = vor.u32 %v6620_v59, %v5611_v58  ;;  %v5339_v2 = vld [vmem:[#allocation2 + $0x8a8] sm:$0xf]  ;;  %v6648_v9 = vld [vmem:[#allocation2 + $0xbb4] sm:$0xf0]  ;;  %v3482_v14 = vadd.f32 %v7057_v48, %v3469_v1 }
 0x151   :  { %3712 = vmatpush.bf16.msrb.mxu1 %v4892_v5  ;;  %v6584_v5 = vld [vmem:[#allocation2 + $0x9b4] sm:$0xf0]  ;;  %v5340_v10 = vor.u32 %v6552_v11, %v5339_v2  ;;  %v5323_v15 = vld [vmem:[#allocation2 + $0x888] sm:$0xf]  ;;  %v5724_v24 = vor.u32 %v6648_v9, %v5723_v13 }
 0x152   :  { %3725 = vmatpush.bf16.msrb.mxu2 %v5020_v7  ;;  %v5595_v7 = vld [vmem:[#allocation2 + $0xaa8] sm:$0xf]  ;;  %v5468_v39 = vor.u32 %v6584_v5, %v5467_v3  ;;  %v6548_v17 = vld [vmem:[#allocation2 + $0x894] sm:$0xf0] }
 0x153   :  { %3738 = vmatpush.bf16.msrb.mxu3 %v5148_v12  ;;  %v5596_v12 = vor.u32 %v6616_v8, %v5595_v7  ;;  %v5451_v21 = vld [vmem:[#allocation2 + $0x988] sm:$0xf]  ;;  %v6580_v26 = vld [vmem:[#allocation2 + $0x994] sm:$0xf0]  ;;  %v5324_v37 = vor.u32 %v6548_v17, %v5323_v15 }
 0x154   :  { %3700 = vmatpush.bf16.msrb.mxu0 %v4748_v34  ;;  %v5579_v27 = vld [vmem:[#allocation2 + $0xa88] sm:$0xf]  ;;  %v6612_v32 = vld [vmem:[#allocation2 + $0xa94] sm:$0xf0]  ;;  %v3494_v43 = vpop.f32.mrf.mxu0 }
 0x155   :  { %3713 = vmatpush.bf16.msrb.mxu1 %v4876_v45  ;;  %v5707_v34 = vld [vmem:[#allocation2 + $0xb88] sm:$0xf]  ;;  %v6644_v36 = vld [vmem:[#allocation2 + $0xb94] sm:$0xf0]  ;;  %v5452_v45 = vor.u32 %v6580_v26, %v5451_v21 }
 0x156   :  { %3726 = vmatpush.bf16.msrb.mxu2 %v5004_v46  ;;  %v5580_v46 = vor.u32 %v6612_v32, %v5579_v27  ;;  %v5307_v47 = vld [vmem:[#allocation2 + $0x868] sm:$0xf]  ;;  %v6544_v49 = vld [vmem:[#allocation2 + $0x874] sm:$0xf0] }
 0x157   :  { %3739 = vmatpush.bf16.msrb.mxu3 %v5132_v50  ;;  %3701 = vmatmul.bf16.vlgmr.msrb.gmra.mxu0 %v6974_v41  ;;  %v5435_v48 = vld [vmem:[#allocation2 + $0x968] sm:$0xf]  ;;  %v3495_v50 = vadd.f32 %v3494_v43, %v3482_v14  ;;  %v6608_v54 = vld [vmem:[#allocation2 + $0xa74] sm:$0xf0]  ;;  %v5308_v57 = vor.u32 %v6544_v49, %v5307_v47 }
 0x158   :  { %3745 = vmatpush.bf16.msra.mxu0 %v5372_v51  ;;  %3714 = vmatmul.bf16.vlgmr.msrb.gmra.mxu1 %v6978_v44  ;;  %v3507_v51 = vpop.f32.mrf.mxu1  ;;  %v5563_v16 = vld [vmem:[#allocation2 + $0xa68] sm:$0xf]  ;;  %v6640_v6 = vld [vmem:[#allocation2 + $0xb74] sm:$0xf0] }
 0x159   :  { %3758 = vmatpush.bf16.msra.mxu1 %v5500_v52  ;;  %3727 = vmatmul.bf16.vlgmr.msrb.gmra.mxu2 %v6972_v38  ;;  %v5708_v52 = vor.u32 %v6644_v36, %v5707_v34  ;;  %v5691_v55 = vld [vmem:[#allocation2 + $0xb68] sm:$0xf]  ;;  %v5564_v59 = vor.u32 %v6608_v54, %v5563_v16  ;;  %v6540_v60 = vld [vmem:[#allocation2 + $0x854] sm:$0xf0] }
 0x15a   :  { %3771 = vmatpush.bf16.msra.mxu2 %v5628_v53  ;;  %3740 = vmatmul.bf16.vlgmr.msrb.gmra.mxu3 %v6976_v42  ;;  %v6576_v53 = vld [vmem:[#allocation2 + $0x974] sm:$0xf0]  ;;  %v5291_v62 = vld [vmem:[#allocation2 + $0x848] sm:$0xf] }
 0x15b   :  { %3784 = vmatpush.bf16.msra.mxu3 %v5756_v56  ;;  %v3508_v56 = vadd.f32 %v3507_v51, %v3495_v50  ;;  %v5436_v58 = vor.u32 %v6576_v53, %v5435_v48  ;;  %v6572_v1 = vld [vmem:[#allocation2 + $0x954] sm:$0xf0]  ;;  %v5547_v2 = vld [vmem:[#allocation2 + $0xa48] sm:$0xf]  ;;  %v5292_v8 = vor.u32 %v6540_v60, %v5291_v62 }
 0x15c   :  { %3746 = vmatpush.bf16.msra.mxu0 %v5356_v61  ;;  %v5419_v61 = vld [vmem:[#allocation2 + $0x948] sm:$0xf]  ;;  %v6604_v11 = vld [vmem:[#allocation2 + $0xa54] sm:$0xf0]  ;;  %v3496_v9 = vpop.f32.mrf.mxu0 }
 0x15d   :  { %3759 = vmatpush.bf16.msra.mxu1 %v5484_v63  ;;  %v3520_v63 = vpop.f32.mrf.mxu2  ;;  %v5675_v5 = vld [vmem:[#allocation2 + $0xb48] sm:$0xf]  ;;  %v6636_v7 = vld [vmem:[#allocation2 + $0xb54] sm:$0xf0] }
 0x15e   :  { %3772 = vmatpush.bf16.msra.mxu2 %v5612_v0  ;;  %v5692_v0 = vor.u32 %v6640_v6, %v5691_v55  ;;  %v3521_v3 = vadd.f32 %v3520_v63, %v3508_v56  ;;  %v6536_v14 = vld [vmem:[#allocation2 + $0x834] sm:$0xf0]  ;;  %v5403_v15 = vld [vmem:[#allocation2 + $0x928] sm:$0xf]  ;;  %v5676_v21 = vor.u32 %v6636_v7, %v5675_v5 }
 0x15f   :  { %3785 = vmatpush.bf16.msra.mxu3 %v5740_v4  ;;  %v3533_v4 = vpop.f32.mrf.mxu3  ;;  %v5531_v26 = vld [vmem:[#allocation2 + $0xa28] sm:$0xf]  ;;  %v6600_v27 = vld [vmem:[#allocation2 + $0xa34] sm:$0xf0] }
 0x160   :  { %3747 = vmatpush.bf16.msra.mxu0 %v5340_v10  ;;  %v7067_v13 = vadd.f32 %v3533_v4, %v3521_v3  ;;  %v5420_v10 = vor.u32 %v6572_v1, %v5419_v61  ;;  %v3509_v17 = vpop.f32.mrf.mxu1  ;;  %v5659_v32 = vld [vmem:[#allocation2 + $0xb28] sm:$0xf]  ;;  %v6632_v34 = vld [vmem:[#allocation2 + $0xb34] sm:$0xf0] }
 0x161   :  { %3760 = vmatpush.bf16.msra.mxu1 %v5468_v39  ;;  %v5548_v39 = vor.u32 %v6604_v11, %v5547_v2  ;;  %v6532_v43 = vld [vmem:[#allocation2 + $0x814] sm:$0xf0]  ;;  %v5387_v47 = vld [vmem:[#allocation2 + $0x908] sm:$0xf]  ;;  %v5660_v51 = vor.u32 %v6632_v34, %v5659_v32 }
 0x162   :  { %3773 = vmatpush.bf16.msra.mxu2 %v5596_v12  ;;  %v5275_v12 = vld [vmem:[#allocation2 + $0x828] sm:$0xf]  ;;  %v6564_v49 = vld [vmem:[#allocation2 + $0x914] sm:$0xf0] }
 0x163   :  { %3786 = vmatpush.bf16.msra.mxu3 %v5724_v24  ;;  %v6568_v24 = vld [vmem:[#allocation2 + $0x934] sm:$0xf0]  ;;  %v5276_v36 = vor.u32 %v6536_v14, %v5275_v12  ;;  %v5515_v48 = vld [vmem:[#allocation2 + $0xa08] sm:$0xf]  ;;  %v5388_v60 = vor.u32 %v6564_v49, %v5387_v47 }
 0x164   :  { %3748 = vmatpush.bf16.msra.mxu0 %v5324_v37  ;;  %v5259_v37 = vld [vmem:[#allocation2 + $0x808] sm:$0xf]  ;;  %v6628_v16 = vld [vmem:[#allocation2 + $0xb14] sm:$0xf0] }
 0x165   :  { %3761 = vmatpush.bf16.msra.mxu1 %v5452_v45  ;;  %v5404_v45 = vor.u32 %v6568_v24, %v5403_v15  ;;  %v3522_v50 = vpop.f32.mrf.mxu2  ;;  %v5643_v53 = vld [vmem:[#allocation2 + $0xb08] sm:$0xf]  ;;  %v6688_v6 = vld [vmem:[#allocation2 + $0xcf4] sm:$0xf0] }
 0x166   :  { %3774 = vmatpush.bf16.msra.mxu2 %v5580_v46  ;;  %v5532_v46 = vor.u32 %v6600_v27, %v5531_v26  ;;  %v5883_v55 = vld [vmem:[#allocation2 + $0xce8] sm:$0xf]  ;;  %v6752_v62 = vld [vmem:[#allocation2 + $0xef4] sm:$0xf0]  ;;  %v5644_v1 = vor.u32 %v6628_v16, %v5643_v53 }
 0x167   :  { %3787 = vmatpush.bf16.msra.mxu3 %v5708_v52  ;;  %v6596_v52 = vld [vmem:[#allocation2 + $0xa14] sm:$0xf0]  ;;  %v3535_v54 = vpop.f32.mrf.mxu3  ;;  %v6011_v56 = vld [vmem:[#allocation2 + $0xde8] sm:$0xf]  ;;  %v5884_v2 = vor.u32 %v6688_v6, %v5883_v55 }
 0x168   :  { %3749 = vmatpush.bf16.msra.mxu0 %v5308_v57  ;;  %v5260_v57 = vor.u32 %v6532_v43, %v5259_v37  ;;  %v5516_v61 = vor.u32 %v6596_v52, %v5515_v48  ;;  %v6267_v63 = vld [vmem:[#allocation2 + $0xfe8] sm:$0xf]  ;;  %v6684_v5 = vld [vmem:[#allocation2 + $0xcd4] sm:$0xf0] }
 0x169   :  { %3762 = vmatpush.bf16.msra.mxu1 %v5436_v58  ;;  %v6720_v58 = vld [vmem:[#allocation2 + $0xdf4] sm:$0xf0]  ;;  %v5867_v4 = vld [vmem:[#allocation2 + $0xcc8] sm:$0xf] }
 0x16a   :  { %3775 = vmatpush.bf16.msra.mxu2 %v5564_v59  ;;  %v6139_v59 = vld [vmem:[#allocation2 + $0xee8] sm:$0xf]  ;;  %v6012_v11 = vor.u32 %v6720_v58, %v6011_v56  ;;  %v6716_v9 = vld [vmem:[#allocation2 + $0xdd4] sm:$0xf0]  ;;  %v5868_v15 = vor.u32 %v6684_v5, %v5867_v4 }
 0x16b   :  { %3788 = vmatpush.bf16.msra.mxu3 %v5692_v0  ;;  %v6784_v0 = vld [vmem:[#allocation2 + $0xff4] sm:$0xf0]  ;;  %v6140_v3 = vor.u32 %v6752_v62, %v6139_v59  ;;  %v5995_v7 = vld [vmem:[#allocation2 + $0xdc8] sm:$0xf] }
 0x16c   :  { %3750 = vmatpush.bf16.msra.mxu0 %v5292_v8  ;;  %v6268_v8 = vor.u32 %v6784_v0, %v6267_v63  ;;  %v6251_v12 = vld [vmem:[#allocation2 + $0xfc8] sm:$0xf]  ;;  %v6780_v14 = vld [vmem:[#allocation2 + $0xfd4] sm:$0xf0]  ;;  %v5996_v17 = vor.u32 %v6716_v9, %v5995_v7 }
 0x16d   :  { %3763 = vmatpush.bf16.msra.mxu1 %v5420_v10  ;;  %v6123_v10 = vld [vmem:[#allocation2 + $0xec8] sm:$0xf]  ;;  %v6680_v26 = vld [vmem:[#allocation2 + $0xcb4] sm:$0xf0]  ;;  %v6252_v32 = vor.u32 %v6780_v14, %v6251_v12 }
 0x16e   :  { %3776 = vmatpush.bf16.msra.mxu2 %v5548_v39  ;;  %v6748_v39 = vld [vmem:[#allocation2 + $0xed4] sm:$0xf0]  ;;  %v5851_v24 = vld [vmem:[#allocation2 + $0xca8] sm:$0xf] }
 0x16f   :  { %3789 = vmatpush.bf16.msra.mxu3 %v5676_v21  ;;  %v6124_v21 = vor.u32 %v6748_v39, %v6123_v10  ;;  %v5979_v27 = vld [vmem:[#allocation2 + $0xda8] sm:$0xf]  ;;  %v6712_v34 = vld [vmem:[#allocation2 + $0xdb4] sm:$0xf0] }
 0x170   :  { %3751 = vmatpush.bf16.msra.mxu0 %v5276_v36  ;;  %v6107_v36 = vld [vmem:[#allocation2 + $0xea8] sm:$0xf]  ;;  %v6744_v37 = vld [vmem:[#allocation2 + $0xeb4] sm:$0xf0]  ;;  %v5980_v47 = vor.u32 %v6712_v34, %v5979_v27 }
 0x171   :  { %3764 = vmatpush.bf16.msra.mxu1 %v5404_v45  ;;  %v6235_v43 = vld [vmem:[#allocation2 + $0xfa8] sm:$0xf]  ;;  %v6776_v45 = vld [vmem:[#allocation2 + $0xfb4] sm:$0xf0]  ;;  %v6108_v49 = vor.u32 %v6744_v37, %v6107_v36 }
 0x172   :  { %3777 = vmatpush.bf16.msra.mxu2 %v5532_v46  ;;  %v5852_v46 = vor.u32 %v6680_v26, %v5851_v24  ;;  %v5835_v48 = vld [vmem:[#allocation2 + $0xc88] sm:$0xf]  ;;  %v6676_v50 = vld [vmem:[#allocation2 + $0xc94] sm:$0xf0]  ;;  %v6236_v52 = vor.u32 %v6776_v45, %v6235_v43 }
 0x173   :  { %3790 = vmatpush.bf16.msra.mxu3 %v5660_v51  ;;  %v5963_v51 = vld [vmem:[#allocation2 + $0xd88] sm:$0xf]  ;;  %v6708_v53 = vld [vmem:[#allocation2 + $0xd94] sm:$0xf0]  ;;  %v5836_v58 = vor.u32 %v6676_v50, %v5835_v48 }
 0x174   :  { %3752 = vmatpush.bf16.msra.mxu0 %v5260_v57  ;;  %v6091_v16 = vld [vmem:[#allocation2 + $0xe88] sm:$0xf]  ;;  %v6740_v54 = vld [vmem:[#allocation2 + $0xe94] sm:$0xf0]  ;;  %v3546_v55 = vpop.f32.mrf.mxu0  ;;  %v5964_v62 = vor.u32 %v6708_v53, %v5963_v51 }
 0x175   :  { %3765 = vmatpush.bf16.msra.mxu1 %v5388_v60  ;;  %v6219_v6 = vld [vmem:[#allocation2 + $0xf88] sm:$0xf]  ;;  %v6772_v56 = vld [vmem:[#allocation2 + $0xf94] sm:$0xf0]  ;;  %v3547_v57 = vadd.f32 %v3546_v55, %v7067_v13  ;;  %v3559_v59 = vpop.f32.mrf.mxu1  ;;  %v6092_v60 = vor.u32 %v6740_v54, %v6091_v16 }
 0x176   :  { %3778 = vmatpush.bf16.msra.mxu2 %v5516_v61  ;;  %v5819_v61 = vld [vmem:[#allocation2 + $0xc68] sm:$0xf]  ;;  %v6672_v63 = vld [vmem:[#allocation2 + $0xc74] sm:$0xf0] }
 0x177   :  { %3791 = vmatpush.bf16.msra.mxu3 %v5644_v1  ;;  %3753 = vmatmul.bf16.vlgmr.msra.gmra.mxu0 %v6990_v25  ;;  %v5947_v0 = vld [vmem:[#allocation2 + $0xd68] sm:$0xf]  ;;  %v6220_v1 = vor.u32 %v6772_v56, %v6219_v6  ;;  %v6736_v4 = vld [vmem:[#allocation2 + $0xe74] sm:$0xf0] }
 0x178   :  { %3797 = vmatpush.bf16.msrb.mxu0 %v5884_v2  ;;  %3766 = vmatmul.bf16.vlgmr.msra.gmra.mxu1 %v6994_v30  ;;  %v3560_v2 = vadd.f32 %v3559_v59, %v3547_v57  ;;  %v6203_v5 = vld [vmem:[#allocation2 + $0xf68] sm:$0xf]  ;;  %v6768_v7 = vld [vmem:[#allocation2 + $0xf74] sm:$0xf0] }
 0x179   :  { %3810 = vmatpush.bf16.msrb.mxu1 %v6012_v11  ;;  %3779 = vmatmul.bf16.vlgmr.msra.gmra.mxu2 %v6992_v29  ;;  %v6704_v11 = vld [vmem:[#allocation2 + $0xd74] sm:$0xf0]  ;;  %v5803_v10 = vld [vmem:[#allocation2 + $0xc48] sm:$0xf]  ;;  %v6204_v14 = vor.u32 %v6768_v7, %v6203_v5  ;;  %v6334_v5 = vld [vmem:[#allocation2 + $0x1ec] sm:$0xf] }
 0x17a   :  { %3823 = vmatpush.bf16.msrb.mxu2 %v6140_v3  ;;  %3792 = vmatmul.bf16.vlgmr.msra.gmra.mxu3 %v6996_v33  ;;  %v6075_v3 = vld [vmem:[#allocation2 + $0xe68] sm:$0xf]  ;;  %v5948_v13 = vor.u32 %v6704_v11, %v5947_v0  ;;  %v6668_v39 = vld [vmem:[#allocation2 + $0xc54] sm:$0xf0] }
 0x17b   :  { %3836 = vmatpush.bf16.msrb.mxu3 %v6268_v8  ;;  %v5820_v8 = vor.u32 %v6672_v63, %v5819_v61  ;;  %v6076_v9 = vor.u32 %v6736_v4, %v6075_v3  ;;  %v5931_v12 = vld [vmem:[#allocation2 + $0xd48] sm:$0xf]  ;;  %v6732_v24 = vld [vmem:[#allocation2 + $0xe54] sm:$0xf0]  ;;  %v5804_v37 = vor.u32 %v6668_v39, %v5803_v10  ;;  %v6302_v3 = vld [vmem:[#allocation2 + $0xec] sm:$0xf] }
 0x17c   :  { %3798 = vmatpush.bf16.msrb.mxu0 %v5868_v15  ;;  %v3572_v15 = vpop.f32.mrf.mxu2  ;;  %v6764_v34 = vld [vmem:[#allocation2 + $0xf54] sm:$0xf0]  ;;  %v3548_v36 = vpop.f32.mrf.mxu0  ;;  %v5915_v50 = vld [vmem:[#allocation2 + $0xd28] sm:$0xf]  ;;  %v4349_v4 = vld [vmem:[#allocation2 + $0xf8] sm:$0xf0] }
 0x17d   :  { %3811 = vmatpush.bf16.msrb.mxu1 %v5996_v17  ;;  %v6700_v17 = vld [vmem:[#allocation2 + $0xd54] sm:$0xf0]  ;;  %v3573_v26 = vadd.f32 %v3572_v15, %v3560_v2  ;;  %v3585_v27 = vpop.f32.mrf.mxu3  ;;  %v3561_v43 = vpop.f32.mrf.mxu1  ;;  %v6043_v53 = vld [vmem:[#allocation2 + $0xe28] sm:$0xf]  ;;  %v4605_v10 = vld [vmem:[#allocation2 + $0x2f8] sm:$0xf0] }
 0x17e   :  { %3824 = vmatpush.bf16.msrb.mxu2 %v6124_v21  ;;  %v6059_v21 = vld [vmem:[#allocation2 + $0xe48] sm:$0xf]  ;;  %v6664_v48 = vld [vmem:[#allocation2 + $0xc34] sm:$0xf0]  ;;  %v4733_v15 = vld [vmem:[#allocation2 + $0x3f8] sm:$0xf0] }
 0x17f   :  { %3837 = vmatpush.bf16.msrb.mxu3 %v6252_v32  ;;  %v6187_v32 = vld [vmem:[#allocation2 + $0xf48] sm:$0xf]  ;;  %v7074_v45 = vadd.f32 %v3585_v27, %v3573_v26  ;;  %v6728_v16 = vld [vmem:[#allocation2 + $0xe34] sm:$0xf0]  ;;  %v6298_v27 = vld [vmem:[#allocation2 + $0xcc] sm:$0xf] }
 0x180   :  { %3799 = vmatpush.bf16.msrb.mxu0 %v5852_v46  ;;  %v5932_v46 = vor.u32 %v6700_v17, %v5931_v12  ;;  %v6188_v51 = vor.u32 %v6764_v34, %v6187_v32  ;;  %v6171_v54 = vld [vmem:[#allocation2 + $0xf28] sm:$0xf]  ;;  %v6760_v55 = vld [vmem:[#allocation2 + $0xf34] sm:$0xf0]  ;;  %v6044_v59 = vor.u32 %v6728_v16, %v6043_v53  ;;  %v4333_v32 = vld [vmem:[#allocation2 + $0xd8] sm:$0xf0] }
 0x181   :  { %3812 = vmatpush.bf16.msrb.mxu1 %v5980_v47  ;;  %v6060_v47 = vor.u32 %v6732_v24, %v6059_v21  ;;  %v5771_v56 = vld [vmem:[#allocation2 + $0xc08] sm:$0xf]  ;;  %v6660_v57 = vld [vmem:[#allocation2 + $0xc14] sm:$0xf0]  ;;  %v6172_v63 = vor.u32 %v6760_v55, %v6171_v54  ;;  %v4352_v21 = vor.u32 %v6302_v3, %v4349_v4  ;;  %v6330_v34 = vld [vmem:[#allocation2 + $0x1cc] sm:$0xf] }
 0x182   :  { %3825 = vmatpush.bf16.msrb.mxu2 %v6108_v49  ;;  %v5787_v49 = vld [vmem:[#allocation2 + $0xc28] sm:$0xf]  ;;  %v6724_v0 = vld [vmem:[#allocation2 + $0xe14] sm:$0xf0]  ;;  %v6362_v43 = vld [vmem:[#allocation2 + $0x2cc] sm:$0xf] }
 0x183   :  { %3838 = vmatpush.bf16.msrb.mxu3 %v6236_v52  ;;  %v6696_v52 = vld [vmem:[#allocation2 + $0xd34] sm:$0xf0]  ;;  %v5788_v6 = vor.u32 %v6664_v48, %v5787_v49  ;;  %v6027_v61 = vld [vmem:[#allocation2 + $0xe08] sm:$0xf]  ;;  %v4717_v49 = vld [vmem:[#allocation2 + $0x3d8] sm:$0xf0]  ;;  %v4336_v48 = vor.u32 %v6298_v27, %v4333_v32 }
 0x184   :  { %3800 = vmatpush.bf16.msrb.mxu0 %v5836_v58  ;;  %v5916_v58 = vor.u32 %v6696_v52, %v5915_v50  ;;  %v6756_v2 = vld [vmem:[#allocation2 + $0xf14] sm:$0xf0]  ;;  %v3574_v11 = vpop.f32.mrf.mxu2  ;;  %v6028_v12 = vor.u32 %v6724_v0, %v6027_v61  ;;  %v6294_v52 = vld [vmem:[#allocation2 + $0xac] sm:$0xf]  ;;  %v4317_v53 = vld [vmem:[#allocation2 + $0xb8] sm:$0xf0] }
 0x185   :  { %3813 = vmatpush.bf16.msrb.mxu1 %v5964_v62  ;;  %v5899_v62 = vld [vmem:[#allocation2 + $0xd08] sm:$0xf]  ;;  %v3587_v7 = vpop.f32.mrf.mxu3  ;;  %v6326_v16 = vld [vmem:[#allocation2 + $0x1ac] sm:$0xf]  ;;  %v4445_v55 = vld [vmem:[#allocation2 + $0x1b8] sm:$0xf0] }
 0x186   :  { %3826 = vmatpush.bf16.msrb.mxu2 %v6092_v60  ;;  %v6692_v60 = vld [vmem:[#allocation2 + $0xd14] sm:$0xf0]  ;;  %v6290_v61 = vld [vmem:[#allocation2 + $0x8c] sm:$0xf]  ;;  %v4557_v3 = vld [vmem:[#allocation2 + $0x298] sm:$0xf0] }
 0x187   :  { %3839 = vmatpush.bf16.msrb.mxu3 %v6220_v1  ;;  %v6155_v1 = vld [vmem:[#allocation2 + $0xf08] sm:$0xf]  ;;  %v5900_v39 = vor.u32 %v6692_v60, %v5899_v62  ;;  %v4448_v62 = vor.u32 %v6326_v16, %v4445_v55  ;;  %v6322_v0 = vld [vmem:[#allocation2 + $0x18c] sm:$0xf]  ;;  %v4685_v7 = vld [vmem:[#allocation2 + $0x398] sm:$0xf0] }
 0x188   :  { %3801 = vmatpush.bf16.msrb.mxu0 %v5820_v8  ;;  %v5772_v8 = vor.u32 %v6660_v57, %v5771_v56  ;;  %v6156_v17 = vor.u32 %v6756_v2, %v6155_v1  ;;  %v4573_v56 = vld [vmem:[#allocation2 + $0x2b8] sm:$0xf0]  ;;  %v6390_v57 = vld [vmem:[#allocation2 + $0x3ac] sm:$0xf] }
 0x189   :  { %3814 = vmatpush.bf16.msrb.mxu1 %v5948_v13  ;;  %v4477_v13 = vld [vmem:[#allocation2 + $0x1f8] sm:$0xf0]  ;;  %v6354_v11 = vld [vmem:[#allocation2 + $0x28c] sm:$0xf] }
 0x18a   :  { %3827 = vmatpush.bf16.msrb.mxu2 %v6076_v9  ;;  %v6366_v9 = vld [vmem:[#allocation2 + $0x2ec] sm:$0xf]  ;;  %v4480_v24 = vor.u32 %v6334_v5, %v4477_v13  ;;  %v4429_v2 = vld [vmem:[#allocation2 + $0x198] sm:$0xf0] }
 0x18b   :  { %3840 = vmatpush.bf16.msrb.mxu3 %v6204_v14  ;;  %v6398_v14 = vld [vmem:[#allocation2 + $0x3ec] sm:$0xf]  ;;  %v4608_v26 = vor.u32 %v6366_v9, %v4605_v10  ;;  %v4432_v10 = vor.u32 %v6322_v0, %v4429_v2  ;;  %v4541_v27 = vld [vmem:[#allocation2 + $0x278] sm:$0xf0] }
 0x18c   :  { %3802 = vmatpush.bf16.msrb.mxu0 %v5804_v37  ;;  %v4736_v36 = vor.u32 %v6398_v14, %v4733_v15  ;;  %v4461_v37 = vld [vmem:[#allocation2 + $0x1d8] sm:$0xf0]  ;;  %v6386_v5 = vld [vmem:[#allocation2 + $0x38c] sm:$0xf] }
 0x18d   :  { %3815 = vmatpush.bf16.msrb.mxu1 %v5932_v46  ;;  %v4589_v46 = vld [vmem:[#allocation2 + $0x2d8] sm:$0xf0]  ;;  %v4464_v50 = vor.u32 %v6330_v34, %v4461_v37  ;;  %v6318_v15 = vld [vmem:[#allocation2 + $0x16c] sm:$0xf] }
 0x18e   :  { %3828 = vmatpush.bf16.msrb.mxu2 %v6060_v47  ;;  %v6394_v47 = vld [vmem:[#allocation2 + $0x3cc] sm:$0xf]  ;;  %v4285_v14 = vld [vmem:[#allocation2 + $0x78] sm:$0xf0] }
 0x18f   :  { %3841 = vmatpush.bf16.msrb.mxu3 %v6188_v51  ;;  %v4592_v51 = vor.u32 %v6362_v43, %v4589_v46  ;;  %v4720_v54 = vor.u32 %v6394_v47, %v4717_v49  ;;  %v6382_v32 = vld [vmem:[#allocation2 + $0x36c] sm:$0xf]  ;;  %v4669_v34 = vld [vmem:[#allocation2 + $0x378] sm:$0xf0] }
 0x190   :  { %3803 = vmatpush.bf16.msrb.mxu0 %v5788_v6  ;;  %v6358_v6 = vld [vmem:[#allocation2 + $0x2ac] sm:$0xf]  ;;  %v4269_v46 = vld [vmem:[#allocation2 + $0x58] sm:$0xf0]  ;;  %v4672_v49 = vor.u32 %v6382_v32, %v4669_v34 }
 0x191   :  { %3816 = vmatpush.bf16.msrb.mxu1 %v5916_v58  ;;  %v4701_v58 = vld [vmem:[#allocation2 + $0x3b8] sm:$0xf0]  ;;  %v4576_v60 = vor.u32 %v6358_v6, %v4573_v56  ;;  %v6282_v43 = vld [vmem:[#allocation2 + $0x4c] sm:$0xf] }
 0x192   :  { %3829 = vmatpush.bf16.msrb.mxu2 %v6044_v59  ;;  %v4320_v59 = vor.u32 %v6294_v52, %v4317_v53  ;;  %v4704_v1 = vor.u32 %v6390_v57, %v4701_v58  ;;  %v6314_v47 = vld [vmem:[#allocation2 + $0x14c] sm:$0xf]  ;;  %v4525_v52 = vld [vmem:[#allocation2 + $0x258] sm:$0xf0]  ;;  %v4272_v56 = vor.u32 %v6282_v43, %v4269_v46 }
 0x193   :  { %3842 = vmatpush.bf16.msrb.mxu3 %v6172_v63  ;;  %v4301_v63 = vld [vmem:[#allocation2 + $0x98] sm:$0xf0]  ;;  %v6342_v2 = vld [vmem:[#allocation2 + $0x22c] sm:$0xf] }
 0x194   :  { %3804 = vmatpush.bf16.msrb.mxu0 %v5772_v8  ;;  %v3598_v4 = vpop.f32.mrf.mxu0  ;;  %v4304_v13 = vor.u32 %v6290_v61, %v4301_v63  ;;  %v4653_v55 = vld [vmem:[#allocation2 + $0x358] sm:$0xf0]  ;;  %v6310_v63 = vld [vmem:[#allocation2 + $0x12c] sm:$0xf] }
 0x195   :  { %3817 = vmatpush.bf16.msrb.mxu1 %v5900_v39  ;;  %v3599_v8 = vadd.f32 %v3598_v4, %v7074_v45  ;;  %v3611_v9 = vpop.f32.mrf.mxu1  ;;  %v4560_v39 = vor.u32 %v6354_v11, %v4557_v3  ;;  %v4253_v61 = vld [vmem:[#allocation2 + $0x38] sm:$0xf0]  ;;  %v6374_v3 = vld [vmem:[#allocation2 + $0x32c] sm:$0xf] }
 0x196   :  { %3830 = vmatpush.bf16.msrb.mxu2 %v6028_v12  ;;  %v6286_v12 = vld [vmem:[#allocation2 + $0x6c] sm:$0xf]  ;;  %v4509_v11 = vld [vmem:[#allocation2 + $0x238] sm:$0xf0] }
 0x197   :  { %3843 = vmatpush.bf16.msrb.mxu3 %v6156_v17  ;;  %3805 = vmatmul.bf16.vlgmr.msrb.gmra.mxu0 %v7008_v23  ;;  %v4688_v17 = vor.u32 %v6386_v5, %v4685_v7  ;;  %v4637_v4 = vld [vmem:[#allocation2 + $0x338] sm:$0xf0]  ;;  %v6274_v7 = vld [vmem:[#allocation2 + $0xc] sm:$0xf] }
 0x198   :  { %3849 = vmatpush.bf16.msra.mxu0 %v4352_v21  ;;  %3818 = vmatmul.bf16.vlgmr.msrb.gmra.mxu1 %v7012_v31  ;;  %v3612_v21 = vadd.f32 %v3611_v9, %v3599_v8  ;;  %v4237_v8 = vld [vmem:[#allocation2 + $0x18] sm:$0xf0]  ;;  %v4512_v9 = vor.u32 %v6342_v2, %v4509_v11  ;;  %v6462_v32 = vld [vmem:[#allocation2 + $0x5ec] sm:$0xf] }
 0x199   :  { %3862 = vmatpush.bf16.msra.mxu1 %v4480_v24  ;;  %3831 = vmatmul.bf16.vlgmr.msrb.gmra.mxu2 %v7010_v28  ;;  %v4413_v24 = vld [vmem:[#allocation2 + $0x178] sm:$0xf0]  ;;  %v6454_v11 = vld [vmem:[#allocation2 + $0x5ac] sm:$0xf] }
 0x19a   :  { %3875 = vmatpush.bf16.msra.mxu2 %v4608_v26  ;;  %3844 = vmatmul.bf16.vlgmr.msrb.gmra.mxu3 %v7014_v35  ;;  %v6350_v26 = vld [vmem:[#allocation2 + $0x26c] sm:$0xf]  ;;  %v4416_v45 = vor.u32 %v6318_v15, %v4413_v24  ;;  %v4493_v15 = vld [vmem:[#allocation2 + $0x218] sm:$0xf0] }
 0x19b   :  { %3888 = vmatpush.bf16.msra.mxu3 %v4736_v36  ;;  %v4288_v36 = vor.u32 %v6286_v12, %v4285_v14  ;;  %v4544_v37 = vor.u32 %v6350_v26, %v4541_v27  ;;  %v6338_v12 = vld [vmem:[#allocation2 + $0x20c] sm:$0xf]  ;;  %v4640_v14 = vor.u32 %v6374_v3, %v4637_v4  ;;  %v4861_v27 = vld [vmem:[#allocation2 + $0x4f8] sm:$0xf0] }
 0x19c   :  { %3850 = vmatpush.bf16.msra.mxu0 %v4336_v48  ;;  %v3624_v48 = vpop.f32.mrf.mxu2  ;;  %v3600_v6 = vpop.f32.mrf.mxu0  ;;  %v6430_v26 = vld [vmem:[#allocation2 + $0x4ec] sm:$0xf]  ;;  %v5117_v43 = vld [vmem:[#allocation2 + $0x6f8] sm:$0xf0] }
 0x19d   :  { %3863 = vmatpush.bf16.msra.mxu1 %v4464_v50  ;;  %v4397_v50 = vld [vmem:[#allocation2 + $0x158] sm:$0xf0]  ;;  %v3625_v53 = vadd.f32 %v3624_v48, %v3612_v21  ;;  %v3637_v16 = vpop.f32.mrf.mxu3  ;;  %v3613_v57 = vpop.f32.mrf.mxu1 }
 0x19e   :  { %3876 = vmatpush.bf16.msra.mxu2 %v4592_v51  ;;  %v6346_v51 = vld [vmem:[#allocation2 + $0x24c] sm:$0xf]  ;;  %v4621_v21 = vld [vmem:[#allocation2 + $0x318] sm:$0xf0] }
 0x19f   :  { %3889 = vmatpush.bf16.msra.mxu3 %v4720_v54  ;;  %v6378_v54 = vld [vmem:[#allocation2 + $0x34c] sm:$0xf]  ;;  %v7081_v58 = vadd.f32 %v3637_v16, %v3625_v53  ;;  %v5245_v48 = vld [vmem:[#allocation2 + $0x7f8] sm:$0xf0] }
 0x1a0   :  { %3851 = vmatpush.bf16.msra.mxu0 %v4320_v59  ;;  %v4400_v59 = vor.u32 %v6314_v47, %v4397_v50  ;;  %v4656_v0 = vor.u32 %v6378_v54, %v4653_v55  ;;  %v4496_v47 = vor.u32 %v6338_v12, %v4493_v15  ;;  %v6426_v16 = vld [vmem:[#allocation2 + $0x4cc] sm:$0xf]  ;;  %v4845_v54 = vld [vmem:[#allocation2 + $0x4d8] sm:$0xf0] }
 0x1a1   :  { %3864 = vmatpush.bf16.msra.mxu1 %v4448_v62  ;;  %v4528_v62 = vor.u32 %v6346_v51, %v4525_v52  ;;  %v4864_v51 = vor.u32 %v6430_v26, %v4861_v27  ;;  %v6458_v55 = vld [vmem:[#allocation2 + $0x5cc] sm:$0xf]  ;;  %v4829_v2 = vld [vmem:[#allocation2 + $0x4b8] sm:$0xf0]  ;;  %vm4058_vm1 = vcmp.ge.f32.partialorder %v7081_v58, 0.0 }
 0x1a2   :  { %3877 = vmatpush.bf16.msra.mxu2 %v4576_v60  ;;  %v6278_v60 = vld [vmem:[#allocation2 + $0x2c] sm:$0xf]  ;;  %v4957_v4 = vld [vmem:[#allocation2 + $0x5b8] sm:$0xf0] }
 0x1a3   :  { %3890 = vmatpush.bf16.msra.mxu3 %v4704_v1  ;;  %v4381_v1 = vld [vmem:[#allocation2 + $0x138] sm:$0xf0]  ;;  %v4256_v5 = vor.u32 %v6278_v60, %v4253_v61  ;;  %v6490_v57 = vld [vmem:[#allocation2 + $0x6cc] sm:$0xf]  ;;  %v4848_v61 = vor.u32 %v6426_v16, %v4845_v54 }
 0x1a4   :  { %3852 = vmatpush.bf16.msra.mxu0 %v4304_v13  ;;  %v4384_v13 = vor.u32 %v6310_v63, %v4381_v1  ;;  %v3626_v24 = vpop.f32.mrf.mxu2  ;;  %v5229_v60 = vld [vmem:[#allocation2 + $0x7d8] sm:$0xf0]  ;;  %v6422_v1 = vld [vmem:[#allocation2 + $0x4ac] sm:$0xf] }
 0x1a5   :  { %3865 = vmatpush.bf16.msra.mxu1 %v4432_v10  ;;  %v6306_v10 = vld [vmem:[#allocation2 + $0x10c] sm:$0xf]  ;;  %v3639_v34 = vpop.f32.mrf.mxu3  ;;  %v5197_v27 = vld [vmem:[#allocation2 + $0x798] sm:$0xf0] }
 0x1a6   :  { %3878 = vmatpush.bf16.msra.mxu2 %v4560_v39  ;;  %v4365_v39 = vld [vmem:[#allocation2 + $0x118] sm:$0xf0]  ;;  %v6450_v15 = vld [vmem:[#allocation2 + $0x58c] sm:$0xf] }
 0x1a7   :  { %3891 = vmatpush.bf16.msra.mxu3 %v4688_v17  ;;  %v6370_v17 = vld [vmem:[#allocation2 + $0x30c] sm:$0xf]  ;;  %v4368_v46 = vor.u32 %v6306_v10, %v4365_v39  ;;  %v4960_v39 = vor.u32 %v6454_v11, %v4957_v4 }
 0x1a8   :  { %3853 = vmatpush.bf16.msra.mxu0 %v4288_v36  ;;  %v4240_v36 = vor.u32 %v6274_v7, %v4237_v8  ;;  %v4624_v50 = vor.u32 %v6370_v17, %v4621_v21  ;;  %v5085_v7 = vld [vmem:[#allocation2 + $0x6b8] sm:$0xf0]  ;;  %v6518_v8 = vld [vmem:[#allocation2 + $0x7ac] sm:$0xf]  ;;  %v7087_v17 = vld [vmem:[#allocation4] sm:$0xf] }
 0x1a9   :  { %3866 = vmatpush.bf16.msra.mxu1 %v4416_v45  ;;  %v4989_v45 = vld [vmem:[#allocation2 + $0x5f8] sm:$0xf0]  ;;  %v6418_v10 = vld [vmem:[#allocation2 + $0x48c] sm:$0xf] }
 0x1aa   :  { %3879 = vmatpush.bf16.msra.mxu2 %v4544_v37  ;;  %v6494_v37 = vld [vmem:[#allocation2 + $0x6ec] sm:$0xf]  ;;  %v4992_v52 = vor.u32 %v6462_v32, %v4989_v45 }
 0x1ab   :  { %3892 = vmatpush.bf16.msra.mxu3 %v4672_v49  ;;  %v6526_v49 = vld [vmem:[#allocation2 + $0x7ec] sm:$0xf]  ;;  %v5120_v53 = vor.u32 %v6494_v37, %v5117_v43  ;;  %v4797_v37 = vld [vmem:[#allocation2 + $0x478] sm:$0xf0] }
 0x1ac   :  { %3854 = vmatpush.bf16.msra.mxu0 %v4272_v56  ;;  %v5248_v6 = vor.u32 %v6526_v49, %v5245_v48  ;;  %v4973_v56 = vld [vmem:[#allocation2 + $0x5d8] sm:$0xf0]  ;;  %v6482_v24 = vld [vmem:[#allocation2 + $0x68c] sm:$0xf] }
 0x1ad   :  { %3867 = vmatpush.bf16.msra.mxu1 %v4400_v59  ;;  %v5101_v59 = vld [vmem:[#allocation2 + $0x6d8] sm:$0xf0]  ;;  %v4976_v63 = vor.u32 %v6458_v55, %v4973_v56  ;;  %v6514_v26 = vld [vmem:[#allocation2 + $0x78c] sm:$0xf] }
 0x1ae   :  { %3880 = vmatpush.bf16.msra.mxu2 %v4528_v62  ;;  %v6522_v62 = vld [vmem:[#allocation2 + $0x7cc] sm:$0xf]  ;;  %v5200_v49 = vor.u32 %v6514_v26, %v5197_v27  ;;  %v4925_v48 = vld [vmem:[#allocation2 + $0x578] sm:$0xf0] }
 0x1af   :  { %3893 = vmatpush.bf16.msra.mxu3 %v4656_v0  ;;  %v5104_v0 = vor.u32 %v6490_v57, %v5101_v59  ;;  %v5232_v3 = vor.u32 %v6522_v62, %v5229_v60  ;;  %v6414_v45 = vld [vmem:[#allocation2 + $0x46c] sm:$0xf]  ;;  %v4781_v57 = vld [vmem:[#allocation2 + $0x458] sm:$0xf0] }
 0x1b0   :  { %3855 = vmatpush.bf16.msra.mxu0 %v4256_v5  ;;  %v6486_v5 = vld [vmem:[#allocation2 + $0x6ac] sm:$0xf]  ;;  %v4800_v54 = vor.u32 %v6414_v45, %v4797_v37  ;;  %v4749_v27 = vld [vmem:[#allocation2 + $0x418] sm:$0xf0] }
 0x1b1   :  { %3868 = vmatpush.bf16.msra.mxu1 %v4384_v13  ;;  %v5213_v13 = vld [vmem:[#allocation2 + $0x7b8] sm:$0xf0]  ;;  %v5088_v12 = vor.u32 %v6486_v5, %v5085_v7  ;;  %v6446_v43 = vld [vmem:[#allocation2 + $0x56c] sm:$0xf] }
 0x1b2   :  { %3881 = vmatpush.bf16.msra.mxu2 %v4512_v9  ;;  %v4832_v9 = vor.u32 %v6422_v1, %v4829_v2  ;;  %v5216_v21 = vor.u32 %v6518_v8, %v5213_v13  ;;  %v4928_v55 = vor.u32 %v6446_v43, %v4925_v48  ;;  %v6410_v56 = vld [vmem:[#allocation2 + $0x44c] sm:$0xf] }
 0x1b3   :  { %3894 = vmatpush.bf16.msra.mxu3 %v4640_v14  ;;  %v4813_v14 = vld [vmem:[#allocation2 + $0x498] sm:$0xf0]  ;;  %v6442_v59 = vld [vmem:[#allocation2 + $0x54c] sm:$0xf]  ;;  %v4784_v4 = vor.u32 %v6410_v56, %v4781_v57 }
 0x1b4   :  { %3856 = vmatpush.bf16.msra.mxu0 %v4240_v36  ;;  %v4816_v32 = vor.u32 %v6418_v10, %v4813_v14  ;;  %v6506_v11 = vld [vmem:[#allocation2 + $0x74c] sm:$0xf]  ;;  %v4765_v10 = vld [vmem:[#allocation2 + $0x438] sm:$0xf0] }
 0x1b5   :  { %3869 = vmatpush.bf16.msra.mxu1 %v4368_v46  ;;  %v6402_v26 = vld [vmem:[#allocation2 + $0x40c] sm:$0xf] }
 0x1b6   :  { %3882 = vmatpush.bf16.msra.mxu2 %v4496_v47  ;;  %v3663_v47 = vpop.f32.mrf.mxu1  ;;  %v6466_v45 = vld [vmem:[#allocation2 + $0x60c] sm:$0xf] }
 0x1b7   :  { %3895 = vmatpush.bf16.msra.mxu3 %v4624_v50  ;;  %3857 = vmatmul.bf16.vlgmr.msra.gmra.mxu0 %v6956_v19  ;;  %v4941_v19 = vld [vmem:[#allocation2 + $0x598] sm:$0xf0]  ;;  %v6478_v50 = vld [vmem:[#allocation2 + $0x66c] sm:$0xf] }
 0x1b8   :  { %3901 = vmatpush.bf16.msrb.mxu0 %v4864_v51  ;;  %3870 = vmatmul.bf16.vlgmr.msra.gmra.mxu1 %v6960_v22  ;;  %v3650_v22 = vpop.f32.mrf.mxu0  ;;  %v4944_v34 = vor.u32 %v6450_v15, %v4941_v19  ;;  %v5053_v51 = vld [vmem:[#allocation2 + $0x678] sm:$0xf0]  ;;  %v6502_v19 = vld [vmem:[#allocation2 + $0x72c] sm:$0xf] }
 0x1b9   :  { %3914 = vmatpush.bf16.msrb.mxu1 %v4992_v52  ;;  %3883 = vmatmul.bf16.vlgmr.msra.gmra.mxu2 %v6954_v18  ;;  %v603_v18 = vperm.slane %v7087_v17, 2  ;;  %v6510_v52 = vld [vmem:[#allocation2 + $0x76c] sm:$0xf]  ;;  %v4893_v15 = vld [vmem:[#allocation2 + $0x538] sm:$0xf0] }
 0x1ba   :  { %3927 = vmatpush.bf16.msrb.mxu2 %v5120_v53  ;;  %3896 = vmatmul.bf16.vlgmr.msra.gmra.mxu3 %v6958_v20  ;;  %v5069_v20 = vld [vmem:[#allocation2 + $0x698] sm:$0xf0]  ;;  %v6654_v57 = vld [vmem:[#allocation2 + $0xbec] sm:$0xf] }
 0x1bb   :  { %3940 = vmatpush.bf16.msrb.mxu3 %v5248_v6  ;;  %v5072_v36 = vor.u32 %v6482_v24, %v5069_v20  ;;  %v3651_v46 = vadd.f32 %v3650_v22, %v603_v18  ;;  %v5181_v53 = vld [vmem:[#allocation2 + $0x778] sm:$0xf0]  ;;  %v5056_v6 = vor.u32 %v6478_v50, %v5053_v51  ;;  %v6470_v18 = vld [vmem:[#allocation2 + $0x62c] sm:$0xf] }
 0x1bc   :  { %3902 = vmatpush.bf16.msrb.mxu0 %v4848_v61  ;;  %v3676_v62 = vpop.f32.mrf.mxu2  ;;  %v5184_v60 = vor.u32 %v6510_v52, %v5181_v53  ;;  %v4909_v61 = vld [vmem:[#allocation2 + $0x558] sm:$0xf0]  ;;  %v6558_v50 = vld [vmem:[#allocation2 + $0x8ec] sm:$0xf]  ;;  %v4752_v53 = vor.u32 %v6402_v26, %v4749_v27 }
 0x1bd   :  { %3915 = vmatpush.bf16.msrb.mxu1 %v4976_v63  ;;  %v3664_v16 = vadd.f32 %v3663_v47, %v3651_v46  ;;  %v6474_v63 = vld [vmem:[#allocation2 + $0x64c] sm:$0xf]  ;;  %v3689_v2 = vpop.f32.mrf.mxu3  ;;  %v4912_v8 = vor.u32 %v6442_v59, %v4909_v61  ;;  %v5149_v24 = vld [vmem:[#allocation2 + $0x738] sm:$0xf0] }
 0x1be   :  { %3928 = vmatpush.bf16.msrb.mxu2 %v5104_v0  ;;  %v5037_v0 = vld [vmem:[#allocation2 + $0x658] sm:$0xf0]  ;;  %v5152_v43 = vor.u32 %v6502_v19, %v5149_v24  ;;  %v6498_v47 = vld [vmem:[#allocation2 + $0x70c] sm:$0xf] }
 0x1bf   :  { %3941 = vmatpush.bf16.msrb.mxu3 %v5232_v3  ;;  %v3677_v1 = vadd.f32 %v3676_v62, %v3664_v16  ;;  %v5165_v3 = vld [vmem:[#allocation2 + $0x758] sm:$0xf0]  ;;  %v5040_v13 = vor.u32 %v6474_v63, %v5037_v0  ;;  %v6590_v52 = vld [vmem:[#allocation2 + $0x9ec] sm:$0xf] }
 0x1c0   :  { %3903 = vmatpush.bf16.msrb.mxu0 %v4832_v9  ;;  %v3652_v7 = vpop.f32.mrf.mxu0  ;;  %v6406_v9 = vld [vmem:[#allocation2 + $0x42c] sm:$0xf]  ;;  %v5168_v14 = vor.u32 %v6506_v11, %v5165_v3  ;;  %v5005_v46 = vld [vmem:[#allocation2 + $0x618] sm:$0xf0] }
 0x1c1   :  { %3916 = vmatpush.bf16.msrb.mxu1 %v4960_v39  ;;  %v7090_v5 = vadd.f32 %v3689_v2, %v3677_v1  ;;  %v6438_v39 = vld [vmem:[#allocation2 + $0x52c] sm:$0xf]  ;;  %v4768_v20 = vor.u32 %v6406_v9, %v4765_v10  ;;  %v5373_v51 = vld [vmem:[#allocation2 + $0x8f8] sm:$0xf0]  ;;  %v5008_v56 = vor.u32 %v6466_v45, %v5005_v46 }
 0x1c2   :  { %3929 = vmatpush.bf16.msrb.mxu2 %v5088_v12  ;;  %v3665_v12 = vpop.f32.mrf.mxu1  ;;  %v5501_v16 = vld [vmem:[#allocation2 + $0x9f8] sm:$0xf0]  ;;  %v6554_v0 = vld [vmem:[#allocation2 + $0x8cc] sm:$0xf] }
 0x1c3   :  { %3942 = vmatpush.bf16.msrb.mxu3 %v5216_v21  ;;  %v5021_v21 = vld [vmem:[#allocation2 + $0x638] sm:$0xf0]  ;;  %v5504_v61 = vor.u32 %v6590_v52, %v5501_v16  ;;  %v6586_v2 = vld [vmem:[#allocation2 + $0x9cc] sm:$0xf] }
 0x1c4   :  { %3904 = vmatpush.bf16.msrb.mxu0 %v4816_v32  ;;  %v4896_v32 = vor.u32 %v6438_v39, %v4893_v15  ;;  %v5024_v22 = vor.u32 %v6470_v18, %v5021_v21  ;;  %v3678_v37 = vpop.f32.mrf.mxu2  ;;  %v5757_v59 = vld [vmem:[#allocation2 + $0xbf8] sm:$0xf0]  ;;  %v6550_v12 = vld [vmem:[#allocation2 + $0x8ac] sm:$0xf] }
 0x1c5   :  { %3917 = vmatpush.bf16.msrb.mxu1 %v4944_v34  ;;  %v6434_v34 = vld [vmem:[#allocation2 + $0x50c] sm:$0xf]  ;;  %v3691_v48 = vpop.f32.mrf.mxu3  ;;  %v5357_v1 = vld [vmem:[#allocation2 + $0x8d8] sm:$0xf0]  ;;  %v5760_v11 = vor.u32 %v6654_v57, %v5757_v59 }
 0x1c6   :  { %3930 = vmatpush.bf16.msrb.mxu2 %v5072_v36  ;;  %v4877_v36 = vld [vmem:[#allocation2 + $0x518] sm:$0xf0]  ;;  %v5360_v9 = vor.u32 %v6554_v0, %v5357_v1  ;;  %v6582_v15 = vld [vmem:[#allocation2 + $0x9ac] sm:$0xf] }
 0x1c7   :  { %3943 = vmatpush.bf16.msrb.mxu3 %v5200_v49  ;;  %v5133_v49 = vld [vmem:[#allocation2 + $0x718] sm:$0xf0]  ;;  %v6614_v19 = vld [vmem:[#allocation2 + $0xaac] sm:$0xf] }
 0x1c8   :  { %3905 = vmatpush.bf16.msrb.mxu0 %v4800_v54  ;;  %v6622_v54 = vld [vmem:[#allocation2 + $0xaec] sm:$0xf]  ;;  %v5136_v62 = vor.u32 %v6498_v47, %v5133_v49  ;;  %v5485_v3 = vld [vmem:[#allocation2 + $0x9d8] sm:$0xf0] }
 0x1c9   :  { %3918 = vmatpush.bf16.msrb.mxu1 %v4928_v55  ;;  %v5629_v55 = vld [vmem:[#allocation2 + $0xaf8] sm:$0xf0]  ;;  %v5488_v10 = vor.u32 %v6586_v2, %v5485_v3  ;;  %v6642_v47 = vld [vmem:[#allocation2 + $0xb8c] sm:$0xf] }
 0x1ca   :  { %3931 = vmatpush.bf16.msrb.mxu2 %v5056_v6  ;;  %v4880_v6 = vor.u32 %v6434_v34, %v4877_v36  ;;  %v5632_v63 = vor.u32 %v6622_v54, %v5629_v55  ;;  %v5613_v7 = vld [vmem:[#allocation2 + $0xad8] sm:$0xf0]  ;;  %v6546_v34 = vld [vmem:[#allocation2 + $0x88c] sm:$0xf] }
 0x1cb   :  { %3944 = vmatpush.bf16.msrb.mxu3 %v5184_v60  ;;  %v5376_v60 = vor.u32 %v6558_v50, %v5373_v51  ;;  %v5469_v21 = vld [vmem:[#allocation2 + $0x9b8] sm:$0xf0]  ;;  %v6542_v50 = vld [vmem:[#allocation2 + $0x86c] sm:$0xf] }
 0x1cc   :  { %3906 = vmatpush.bf16.msrb.mxu0 %v4784_v4  ;;  %v6618_v4 = vld [vmem:[#allocation2 + $0xacc] sm:$0xf]  ;;  %v5597_v24 = vld [vmem:[#allocation2 + $0xab8] sm:$0xf0] }
 0x1cd   :  { %3919 = vmatpush.bf16.msrb.mxu1 %v4912_v8  ;;  %v6650_v8 = vld [vmem:[#allocation2 + $0xbcc] sm:$0xf]  ;;  %v5616_v39 = vor.u32 %v6618_v4, %v5613_v7  ;;  %v5725_v26 = vld [vmem:[#allocation2 + $0xbb8] sm:$0xf0] }
 0x1ce   :  { %3932 = vmatpush.bf16.msrb.mxu2 %v5040_v13  ;;  %v5741_v13 = vld [vmem:[#allocation2 + $0xbd8] sm:$0xf0]  ;;  %v6574_v52 = vld [vmem:[#allocation2 + $0x96c] sm:$0xf] }
 0x1cf   :  { %3945 = vmatpush.bf16.msrb.mxu3 %v5168_v14  ;;  %v5341_v14 = vld [vmem:[#allocation2 + $0x8b8] sm:$0xf0]  ;;  %v5744_v18 = vor.u32 %v6650_v8, %v5741_v13  ;;  %v6606_v55 = vld [vmem:[#allocation2 + $0xa6c] sm:$0xf] }
 0x1d0   :  { %3907 = vmatpush.bf16.msrb.mxu0 %v4768_v20  ;;  %v6646_v20 = vld [vmem:[#allocation2 + $0xbac] sm:$0xf]  ;;  %v5344_v27 = vor.u32 %v6550_v12, %v5341_v14  ;;  %v5325_v36 = vld [vmem:[#allocation2 + $0x898] sm:$0xf0] }
 0x1d1   :  { %3920 = vmatpush.bf16.msrb.mxu1 %v4896_v32  ;;  %v5472_v32 = vor.u32 %v6582_v15, %v5469_v21  ;;  %v5728_v45 = vor.u32 %v6646_v20, %v5725_v26  ;;  %v5453_v37 = vld [vmem:[#allocation2 + $0x998] sm:$0xf0]  ;;  %v6570_v0 = vld [vmem:[#allocation2 + $0x94c] sm:$0xf] }
 0x1d2   :  { %3933 = vmatpush.bf16.msrb.mxu2 %v5024_v22  ;;  %v5600_v22 = vor.u32 %v6614_v19, %v5597_v24  ;;  %v5581_v46 = vld [vmem:[#allocation2 + $0xa98] sm:$0xf0]  ;;  %v6602_v3 = vld [vmem:[#allocation2 + $0xa4c] sm:$0xf] }
 0x1d3   :  { %3946 = vmatpush.bf16.msrb.mxu3 %v5152_v43  ;;  %v6610_v43 = vld [vmem:[#allocation2 + $0xa8c] sm:$0xf]  ;;  %v5309_v51 = vld [vmem:[#allocation2 + $0x878] sm:$0xf0] }
 0x1d4   :  { %3908 = vmatpush.bf16.msrb.mxu0 %v4752_v53  ;;  %v7096_v49 = vpop.f32.mrf.mxu0  ;;  %v5584_v48 = vor.u32 %v6610_v43, %v5581_v46  ;;  %v5437_v54 = vld [vmem:[#allocation2 + $0x978] sm:$0xf0]  ;;  %v5312_v59 = vor.u32 %v6542_v50, %v5309_v51  ;;  %v6634_v8 = vld [vmem:[#allocation2 + $0xb4c] sm:$0xf] }
 0x1d5   :  { %3921 = vmatpush.bf16.msrb.mxu1 %v4880_v6  ;;  %v7098_v53 = vpop.f32.mrf.mxu1  ;;  %v5565_v6 = vld [vmem:[#allocation2 + $0xa78] sm:$0xf0]  ;;  %v6534_v14 = vld [vmem:[#allocation2 + $0x82c] sm:$0xf] }
 0x1d6   :  { %3934 = vmatpush.bf16.msrb.mxu2 %v5008_v56  ;;  %v6638_v56 = vld [vmem:[#allocation2 + $0xb6c] sm:$0xf]  ;;  %v5693_v57 = vld [vmem:[#allocation2 + $0xb78] sm:$0xf0] }
 0x1d7   :  { %3947 = vmatpush.bf16.msrb.mxu3 %v5136_v62  ;;  %3909 = vmatmul.bf16.vlgmr.msrb.gmra.mxu0 %v6974_v41  ;;  %v5709_v41 = vld [vmem:[#allocation2 + $0xb98] sm:$0xf0]  ;;  %v5440_v62 = vor.u32 %v6574_v52, %v5437_v54  ;;  %v5696_v2 = vor.u32 %v6638_v56, %v5693_v57  ;;  %v6598_v20 = vld [vmem:[#allocation2 + $0xa2c] sm:$0xf] }
 0x1d8   :  { %3953 = vmatpush.bf16.msra.mxu0 %v5376_v60  ;;  %3922 = vmatmul.bf16.vlgmr.msrb.gmra.mxu1 %v6978_v44  ;;  %v5712_v16 = vor.u32 %v6642_v47, %v5709_v41  ;;  %v5568_v60 = vor.u32 %v6606_v55, %v5565_v6  ;;  %v5549_v4 = vld [vmem:[#allocation2 + $0xa58] sm:$0xf0]  ;;  %v6594_v46 = vld [vmem:[#allocation2 + $0xa0c] sm:$0xf] }
 0x1d9   :  { %3966 = vmatpush.bf16.msra.mxu1 %v5504_v61  ;;  %3935 = vmatmul.bf16.vlgmr.msrb.gmra.mxu2 %v6972_v38  ;;  %v6578_v38 = vld [vmem:[#allocation2 + $0x98c] sm:$0xf]  ;;  %v5677_v13 = vld [vmem:[#allocation2 + $0xb58] sm:$0xf0]  ;;  %v5552_v12 = vor.u32 %v6602_v3, %v5549_v4 }
 0x1da   :  { %3979 = vmatpush.bf16.msra.mxu2 %v5632_v63  ;;  %3948 = vmatmul.bf16.vlgmr.msrb.gmra.mxu3 %v6976_v42  ;;  %v5328_v42 = vor.u32 %v6546_v34, %v5325_v36  ;;  %v5456_v44 = vor.u32 %v6578_v38, %v5453_v37  ;;  %v6538_v61 = vld [vmem:[#allocation2 + $0x84c] sm:$0xf]  ;;  %v5293_v63 = vld [vmem:[#allocation2 + $0x858] sm:$0xf0]  ;;  %v5680_v19 = vor.u32 %v6634_v8, %v5677_v13 }
 0x1db   :  { %3992 = vmatpush.bf16.msra.mxu3 %v5760_v11  ;;  %v5421_v11 = vld [vmem:[#allocation2 + $0x958] sm:$0xf0]  ;;  %v6530_v34 = vld [vmem:[#allocation2 + $0x80c] sm:$0xf] }
 0x1dc   :  { %3954 = vmatpush.bf16.msra.mxu0 %v5360_v9  ;;  %v7100_v1 = vpop.f32.mrf.mxu2  ;;  %v5296_v9 = vor.u32 %v6538_v61, %v5293_v63  ;;  %v5277_v15 = vld [vmem:[#allocation2 + $0x838] sm:$0xf0]  ;;  %v6562_v37 = vld [vmem:[#allocation2 + $0x90c] sm:$0xf] }
 0x1dd   :  { %3967 = vmatpush.bf16.msra.mxu1 %v5488_v10  ;;  %v7102_v7 = vpop.f32.mrf.mxu3  ;;  %v3704_v10 = vpop.f32.mrf.mxu0  ;;  %v5405_v24 = vld [vmem:[#allocation2 + $0x938] sm:$0xf0]  ;;  %v6686_v51 = vld [vmem:[#allocation2 + $0xcec] sm:$0xf] }
 0x1de   :  { %3980 = vmatpush.bf16.msra.mxu2 %v5616_v39  ;;  %v5424_v39 = vor.u32 %v6570_v0, %v5421_v11  ;;  %v3717_v21 = vpop.f32.mrf.mxu1  ;;  %v5533_v26 = vld [vmem:[#allocation2 + $0xa38] sm:$0xf0]  ;;  %v6750_v6 = vld [vmem:[#allocation2 + $0xeec] sm:$0xf] }
 0x1df   :  { %3993 = vmatpush.bf16.msra.mxu3 %v5744_v18  ;;  %v6566_v18 = vld [vmem:[#allocation2 + $0x92c] sm:$0xf]  ;;  %v5261_v36 = vld [vmem:[#allocation2 + $0x818] sm:$0xf0] }
 0x1e0   :  { %3955 = vmatpush.bf16.msra.mxu0 %v5344_v27  ;;  %v6630_v27 = vld [vmem:[#allocation2 + $0xb2c] sm:$0xf]  ;;  %v5408_v38 = vor.u32 %v6566_v18, %v5405_v24  ;;  %v5389_v43 = vld [vmem:[#allocation2 + $0x918] sm:$0xf0]  ;;  %v5264_v54 = vor.u32 %v6530_v34, %v5261_v36 }
 0x1e1   :  { %3968 = vmatpush.bf16.msra.mxu1 %v5472_v32  ;;  %v5661_v32 = vld [vmem:[#allocation2 + $0xb38] sm:$0xf0]  ;;  %v5392_v57 = vor.u32 %v6562_v37, %v5389_v43  ;;  %v6682_v11 = vld [vmem:[#allocation2 + $0xccc] sm:$0xf] }
 0x1e2   :  { %3981 = vmatpush.bf16.msra.mxu2 %v5600_v22  ;;  %v5280_v22 = vor.u32 %v6534_v14, %v5277_v15  ;;  %v5664_v41 = vor.u32 %v6630_v27, %v5661_v32  ;;  %v5885_v52 = vld [vmem:[#allocation2 + $0xcf8] sm:$0xf0]  ;;  %v6714_v4 = vld [vmem:[#allocation2 + $0xdcc] sm:$0xf] }
 0x1e3   :  { %3994 = vmatpush.bf16.msra.mxu3 %v5728_v45  ;;  %v5536_v45 = vor.u32 %v6598_v20, %v5533_v26  ;;  %v6013_v55 = vld [vmem:[#allocation2 + $0xdf8] sm:$0xf0]  ;;  %v5888_v63 = vor.u32 %v6686_v51, %v5885_v52  ;;  %v6678_v21 = vld [vmem:[#allocation2 + $0xcac] sm:$0xf] }
 0x1e4   :  { %3956 = vmatpush.bf16.msra.mxu0 %v5328_v42  ;;  %v3730_v47 = vpop.f32.mrf.mxu2  ;;  %v5517_v42 = vld [vmem:[#allocation2 + $0xa18] sm:$0xf0]  ;;  %v6710_v24 = vld [vmem:[#allocation2 + $0xdac] sm:$0xf] }
 0x1e5   :  { %3969 = vmatpush.bf16.msra.mxu1 %v5456_v44  ;;  %v6626_v44 = vld [vmem:[#allocation2 + $0xb0c] sm:$0xf]  ;;  %v3743_v50 = vpop.f32.mrf.mxu3  ;;  %v6141_v56 = vld [vmem:[#allocation2 + $0xef8] sm:$0xf0] }
 0x1e6   :  { %3982 = vmatpush.bf16.msra.mxu2 %v5584_v48  ;;  %v5645_v48 = vld [vmem:[#allocation2 + $0xb18] sm:$0xf0]  ;;  %v6742_v27 = vld [vmem:[#allocation2 + $0xeac] sm:$0xf] }
 0x1e7   :  { %3995 = vmatpush.bf16.msra.mxu3 %v5712_v16  ;;  %v6718_v16 = vld [vmem:[#allocation2 + $0xdec] sm:$0xf]  ;;  %v5648_v61 = vor.u32 %v6626_v44, %v5645_v48  ;;  %v5869_v3 = vld [vmem:[#allocation2 + $0xcd8] sm:$0xf0] }
 0x1e8   :  { %3957 = vmatpush.bf16.msra.mxu0 %v5312_v59  ;;  %v5520_v59 = vor.u32 %v6594_v46, %v5517_v42  ;;  %v6016_v0 = vor.u32 %v6718_v16, %v6013_v55  ;;  %v5997_v13 = vld [vmem:[#allocation2 + $0xdd8] sm:$0xf0]  ;;  %v5872_v14 = vor.u32 %v6682_v11, %v5869_v3  ;;  %v6674_v37 = vld [vmem:[#allocation2 + $0xc8c] sm:$0xf] }
 0x1e9   :  { %3970 = vmatpush.bf16.msra.mxu1 %v5440_v62  ;;  %v6782_v62 = vld [vmem:[#allocation2 + $0xfec] sm:$0xf]  ;;  %v6125_v10 = vld [vmem:[#allocation2 + $0xed8] sm:$0xf0]  ;;  %v6000_v15 = vor.u32 %v6714_v4, %v5997_v13 }
 0x1ea   :  { %3983 = vmatpush.bf16.msra.mxu2 %v5568_v60  ;;  %v6269_v60 = vld [vmem:[#allocation2 + $0xff8] sm:$0xf0]  ;;  %v6706_v43 = vld [vmem:[#allocation2 + $0xd8c] sm:$0xf] }
 0x1eb   :  { %3996 = vmatpush.bf16.msra.mxu3 %v5696_v2  ;;  %v6144_v2 = vor.u32 %v6750_v6, %v6141_v56  ;;  %v6272_v8 = vor.u32 %v6782_v62, %v6269_v60  ;;  %v5981_v26 = vld [vmem:[#allocation2 + $0xdb8] sm:$0xf0]  ;;  %v6670_v52 = vld [vmem:[#allocation2 + $0xc6c] sm:$0xf] }
 0x1ec   :  { %3958 = vmatpush.bf16.msra.mxu0 %v5296_v9  ;;  %v6746_v9 = vld [vmem:[#allocation2 + $0xecc] sm:$0xf]  ;;  %v6109_v32 = vld [vmem:[#allocation2 + $0xeb8] sm:$0xf0] }
 0x1ed   :  { %3971 = vmatpush.bf16.msra.mxu1 %v5424_v39  ;;  %v6778_v39 = vld [vmem:[#allocation2 + $0xfcc] sm:$0xf]  ;;  %v6128_v18 = vor.u32 %v6746_v9, %v6125_v10  ;;  %v6237_v34 = vld [vmem:[#allocation2 + $0xfb8] sm:$0xf0] }
 0x1ee   :  { %3984 = vmatpush.bf16.msra.mxu2 %v5552_v12  ;;  %v6253_v12 = vld [vmem:[#allocation2 + $0xfd8] sm:$0xf0]  ;;  %v6734_v56 = vld [vmem:[#allocation2 + $0xe6c] sm:$0xf] }
 0x1ef   :  { %3997 = vmatpush.bf16.msra.mxu3 %v5680_v19  ;;  %v5853_v19 = vld [vmem:[#allocation2 + $0xcb8] sm:$0xf0]  ;;  %v6256_v20 = vor.u32 %v6778_v39, %v6253_v12  ;;  %v6698_v11 = vld [vmem:[#allocation2 + $0xd4c] sm:$0xf] }
 0x1f0   :  { %3959 = vmatpush.bf16.msra.mxu0 %v5280_v22  ;;  %v6774_v22 = vld [vmem:[#allocation2 + $0xfac] sm:$0xf]  ;;  %v5856_v36 = vor.u32 %v6678_v21, %v5853_v19  ;;  %v5965_v47 = vld [vmem:[#allocation2 + $0xd98] sm:$0xf0] }
 0x1f1   :  { %3972 = vmatpush.bf16.msra.mxu1 %v5408_v38  ;;  %v5984_v38 = vor.u32 %v6710_v24, %v5981_v26  ;;  %v6240_v46 = vor.u32 %v6774_v22, %v6237_v34  ;;  %v6221_v44 = vld [vmem:[#allocation2 + $0xf98] sm:$0xf0]  ;;  %v5968_v50 = vor.u32 %v6706_v43, %v5965_v47  ;;  %v6730_v13 = vld [vmem:[#allocation2 + $0xe4c] sm:$0xf] }
 0x1f2   :  { %3985 = vmatpush.bf16.msra.mxu2 %v5536_v45  ;;  %v6112_v45 = vor.u32 %v6742_v27, %v6109_v32  ;;  %v5821_v16 = vld [vmem:[#allocation2 + $0xc78] sm:$0xf0]  ;;  %v6762_v39 = vld [vmem:[#allocation2 + $0xf4c] sm:$0xf] }
 0x1f3   :  { %3998 = vmatpush.bf16.msra.mxu3 %v5664_v41  ;;  %v6738_v41 = vld [vmem:[#allocation2 + $0xe8c] sm:$0xf]  ;;  %v5949_v6 = vld [vmem:[#allocation2 + $0xd78] sm:$0xf0]  ;;  %v5824_v60 = vor.u32 %v6670_v52, %v5821_v16 }
 0x1f4   :  { %3960 = vmatpush.bf16.msra.mxu0 %v5264_v54  ;;  %v7108_v42 = vpop.f32.mrf.mxu0  ;;  %v6702_v54 = vld [vmem:[#allocation2 + $0xd6c] sm:$0xf]  ;;  %v6205_v62 = vld [vmem:[#allocation2 + $0xf78] sm:$0xf0] }
 0x1f5   :  { %3973 = vmatpush.bf16.msra.mxu1 %v5392_v57  ;;  %v7110_v48 = vpop.f32.mrf.mxu1  ;;  %v6077_v57 = vld [vmem:[#allocation2 + $0xe78] sm:$0xf0]  ;;  %v6662_v24 = vld [vmem:[#allocation2 + $0xc2c] sm:$0xf] }
 0x1f6   :  { %3986 = vmatpush.bf16.msra.mxu2 %v5520_v59  ;;  %v6766_v59 = vld [vmem:[#allocation2 + $0xf6c] sm:$0xf]  ;;  %v6061_v9 = vld [vmem:[#allocation2 + $0xe58] sm:$0xf0] }
 0x1f7   :  { %3999 = vmatpush.bf16.msra.mxu3 %v5648_v61  ;;  %3961 = vmatmul.bf16.vlgmr.msra.gmra.mxu0 %v6990_v25  ;;  %v5837_v25 = vld [vmem:[#allocation2 + $0xc98] sm:$0xf0]  ;;  %v5952_v61 = vor.u32 %v6702_v54, %v5949_v6  ;;  %v6208_v3 = vor.u32 %v6766_v59, %v6205_v62  ;;  %v6064_v19 = vor.u32 %v6730_v13, %v6061_v9  ;;  %v6694_v26 = vld [vmem:[#allocation2 + $0xd2c] sm:$0xf] }
 0x1f8   :  { %4005 = vmatpush.bf16.msrb.mxu0 %v5888_v63  ;;  %3974 = vmatmul.bf16.vlgmr.msra.gmra.mxu1 %v6994_v30  ;;  %v6770_v30 = vld [vmem:[#allocation2 + $0xf8c] sm:$0xf]  ;;  %v6080_v63 = vor.u32 %v6734_v56, %v6077_v57  ;;  %v6189_v12 = vld [vmem:[#allocation2 + $0xf58] sm:$0xf0] }
 0x1f9   :  { %4018 = vmatpush.bf16.msrb.mxu1 %v6016_v0  ;;  %3987 = vmatmul.bf16.vlgmr.msra.gmra.mxu2 %v6992_v29  ;;  %v6093_v29 = vld [vmem:[#allocation2 + $0xe98] sm:$0xf0]  ;;  %v6224_v55 = vor.u32 %v6770_v30, %v6221_v44  ;;  %v6666_v0 = vld [vmem:[#allocation2 + $0xc4c] sm:$0xf]  ;;  %v6192_v27 = vor.u32 %v6762_v39, %v6189_v12  ;;  %v4079_v39 = vld [vmem:[#allocation6 + $0x50] sm:$0xff] }
 0x1fa   :  { %4031 = vmatpush.bf16.msrb.mxu2 %v6144_v2  ;;  %4000 = vmatmul.bf16.vlgmr.msra.gmra.mxu3 %v6996_v33  ;;  %v5840_v33 = vor.u32 %v6674_v37, %v5837_v25  ;;  %v6096_v51 = vor.u32 %v6738_v41, %v6093_v29  ;;  %v5805_v2 = vld [vmem:[#allocation2 + $0xc58] sm:$0xf0]  ;;  %v6726_v22 = vld [vmem:[#allocation2 + $0xe2c] sm:$0xf]  ;;  %v4095_v12 = vld [vmem:[#allocation6 + $0xd0] sm:$0xff] }
 0x1fb   :  { %4044 = vmatpush.bf16.msrb.mxu3 %v6272_v8  ;;  %v5933_v8 = vld [vmem:[#allocation2 + $0xd58] sm:$0xf0]  ;;  %v6690_v41 = vld [vmem:[#allocation2 + $0xd0c] sm:$0xf] }
 0x1fc   :  { %4006 = vmatpush.bf16.msrb.mxu0 %v5872_v14  ;;  %v7112_v4 = vpop.f32.mrf.mxu2  ;;  %v3756_v14 = vpop.f32.mrf.mxu0  ;;  %v5936_v21 = vor.u32 %v6698_v11, %v5933_v8  ;;  %v5917_v32 = vld [vmem:[#allocation2 + $0xd38] sm:$0xf0]  ;;  %v6722_v44 = vld [vmem:[#allocation2 + $0xe0c] sm:$0xf]  ;;  %v4081_v11 = vld [vmem:[#allocation6 + $0x60] sm:$0xff] }
 0x1fd   :  { %4019 = vmatpush.bf16.msrb.mxu1 %v6000_v15  ;;  %v7114_v10 = vpop.f32.mrf.mxu3  ;;  %v5808_v15 = vor.u32 %v6666_v0, %v5805_v2  ;;  %v6045_v34 = vld [vmem:[#allocation2 + $0xe38] sm:$0xf0]  ;;  %v5920_v25 = vor.u32 %v6694_v26, %v5917_v32  ;;  %v4082_v0 = vld [vmem:[#allocation6 + $0x68] sm:$0xff]  ;;  %v4111_v14 = vld [vmem:[#allocation6 + $0x150] sm:$0xff] }
 0x1fe   :  { %4032 = vmatpush.bf16.msrb.mxu2 %v6128_v18  ;;  %v3769_v18 = vpop.f32.mrf.mxu1  ;;  %v6048_v43 = vor.u32 %v6726_v22, %v6045_v34  ;;  %v5773_v47 = vld [vmem:[#allocation2 + $0xc18] sm:$0xf0]  ;;  %v4098_v2 = vld [vmem:[#allocation6 + $0xe8] sm:$0xff] }
 0x1ff   :  { %4045 = vmatpush.bf16.msrb.mxu3 %v6256_v20  ;;  %v5789_v20 = vld [vmem:[#allocation2 + $0xc38] sm:$0xf0]  ;;  %v4094_v18 = vld [vmem:[#allocation6 + $0xc8] sm:$0xff] }
 0x200   :  { %4007 = vmatpush.bf16.msrb.mxu0 %v5856_v36  ;;  %v3703_v36 = vadd.f32 %v7096_v49, %v7090_v5  ;;  %v5792_v37 = vor.u32 %v6662_v24, %v5789_v20  ;;  %v5901_v30 = vld [vmem:[#allocation2 + $0xd18] sm:$0xf0]  ;;  %v6754_v5 = vld [vmem:[#allocation2 + $0xf0c] sm:$0xf]  ;;  %v4093_v24 = vld [vmem:[#allocation6 + $0xc0] sm:$0xff] }
 0x201   :  { %4020 = vmatpush.bf16.msrb.mxu1 %v5984_v38  ;;  %v6758_v38 = vld [vmem:[#allocation2 + $0xf2c] sm:$0xf]  ;;  %v6157_v49 = vld [vmem:[#allocation2 + $0xf18] sm:$0xf0]  ;;  %v5904_v54 = vor.u32 %v6690_v41, %v5901_v30  ;;  %v4089_v30 = vld [vmem:[#allocation6 + $0xa0] sm:$0xff] }
 0x202   :  { %4033 = vmatpush.bf16.msrb.mxu2 %v6112_v45  ;;  %v6173_v45 = vld [vmem:[#allocation2 + $0xf38] sm:$0xf0]  ;;  %v6160_v6 = vor.u32 %v6754_v5, %v6157_v49 }
 0x203   :  { %4046 = vmatpush.bf16.msrb.mxu3 %v6240_v46  ;;  %v6658_v46 = vld [vmem:[#allocation2 + $0xc0c] sm:$0xf]  ;;  %v6176_v29 = vor.u32 %v6758_v38, %v6173_v45  ;;  %v4084_v57 = vld [vmem:[#allocation6 + $0x78] sm:$0xff]  ;;  %v4075_v45 = vld [vmem:[#allocation6 + $0x30] sm:$0xff] }
 0x204   :  { %4008 = vmatpush.bf16.msrb.mxu0 %v5840_v33  ;;  %v6029_v33 = vld [vmem:[#allocation2 + $0xe18] sm:$0xf0]  ;;  %v5776_v16 = vor.u32 %v6658_v46, %v5773_v47  ;;  %v4090_v46 = vld [vmem:[#allocation6 + $0xa8] sm:$0xff] }
 0x205   :  { %4021 = vmatpush.bf16.msrb.mxu1 %v5968_v50  ;;  %v3782_v50 = vpop.f32.mrf.mxu2  ;;  %v3795_v52 = vpop.f32.mrf.mxu3  ;;  %v4100_v59 = vld [vmem:[#allocation6 + $0xf8] sm:$0xff]  ;;  %v4106_v47 = vld [vmem:[#allocation6 + $0x128] sm:$0xff] }
 0x206   :  { %4034 = vmatpush.bf16.msrb.mxu2 %v6096_v51  ;;  %v3716_v51 = vadd.f32 %v7098_v53, %v3703_v36  ;;  %v4116_v62 = vld [vmem:[#allocation6 + $0x178] sm:$0xff] }
 0x207   :  { %4047 = vmatpush.bf16.msrb.mxu3 %v6224_v55  ;;  %v6032_v55 = vor.u32 %v6722_v44, %v6029_v33  ;;  %v4080_v8 = vld [vmem:[#allocation6 + $0x58] sm:$0xff]  ;;  %v4105_v44 = vld [vmem:[#allocation6 + $0x120] sm:$0xff] }
 0x208   :  { %4009 = vmatpush.bf16.msrb.mxu0 %v5824_v60  ;;  %v3729_v56 = vadd.f32 %v7100_v1, %v3716_v51  ;;  %v4083_v60 = vld [vmem:[#allocation6 + $0x70] sm:$0xff]  ;;  %v4092_v32 = vld [vmem:[#allocation6 + $0xb8] sm:$0xff] }
 0x209   :  { %4022 = vmatpush.bf16.msrb.mxu1 %v5952_v61  ;;  %v4099_v61 = vld [vmem:[#allocation6 + $0xf0] sm:$0xff]  ;;  %v4108_v36 = vld [vmem:[#allocation6 + $0x138] sm:$0xff] }
 0x20a   :  { %4035 = vmatpush.bf16.msrb.mxu2 %v6080_v63  ;;  %v3742_v53 = vadd.f32 %v7102_v7, %v3729_v56  ;;  %v4115_v63 = vld [vmem:[#allocation6 + $0x170] sm:$0xff]  ;;  %v4114_v7 = vld [vmem:[#allocation6 + $0x168] sm:$0xff]  ;;  %v4072_v50 = vld [vmem:[#allocation6 + $0x18] sm:$0xff] }
 0x20b   :  { %4048 = vmatpush.bf16.msrb.mxu3 %v6208_v3  ;;  %v4097_v3 = vld [vmem:[#allocation6 + $0xe0] sm:$0xff]  ;;  %v4088_v51 = vld [vmem:[#allocation6 + $0x98] sm:$0xff]  ;;  %v4086_v56 = vld [vmem:[#allocation6 + $0x88] sm:$0xff] }
 0x20c   :  { %4010 = vmatpush.bf16.msrb.mxu0 %v5808_v15  ;;  %v3755_v1 = vadd.f32 %v7108_v42, %v3742_v53  ;;  %v4096_v42 = vld [vmem:[#allocation6 + $0xd8] sm:$0xff]  ;;  %v4078_v15 = vld [vmem:[#allocation6 + $0x48] sm:$0xff] }
 0x20d   :  { %4023 = vmatpush.bf16.msrb.mxu1 %v5936_v21  ;;  %v4104_v49 = vld [vmem:[#allocation6 + $0x118] sm:$0xff] }
 0x20e   :  { %4036 = vmatpush.bf16.msrb.mxu2 %v6064_v19  ;;  %v4077_v19 = vld [vmem:[#allocation6 + $0x40] sm:$0xff] }
 0x20f   :  { %4049 = vmatpush.bf16.msrb.mxu3 %v6192_v27  ;;  %v4076_v27 = vld [vmem:[#allocation6 + $0x38] sm:$0xff] }
 0x210   :  { %4011 = vmatpush.bf16.msrb.mxu0 %v5792_v37  ;;  %v4107_v37 = vld [vmem:[#allocation6 + $0x130] sm:$0xff] }
 0x211   :  { %4024 = vmatpush.bf16.msrb.mxu1 %v5920_v25 }
 0x212   :  { %4037 = vmatpush.bf16.msrb.mxu2 %v6048_v43  ;;  %v4074_v43 = vld [vmem:[#allocation6 + $0x28] sm:$0xff] }
 0x213   :  { %4050 = vmatpush.bf16.msrb.mxu3 %v6176_v29  ;;  %v4073_v29 = vld [vmem:[#allocation6 + $0x20] sm:$0xff] }
 0x214   :  { %4012 = vmatpush.bf16.msrb.mxu0 %v5776_v16  ;;  %v3806_v13 = vpop.f32.mrf.mxu0  ;;  %v4071_v16 = vld [vmem:[#allocation6 + $0x10] sm:$0xff] }
 0x215   :  { %4025 = vmatpush.bf16.msrb.mxu1 %v5904_v54  ;;  %v4087_v54 = vld [vmem:[#allocation6 + $0x90] sm:$0xff] }
 0x216   :  { %4038 = vmatpush.bf16.msrb.mxu2 %v6032_v55  ;;  %v4103_v55 = vld [vmem:[#allocation6 + $0x110] sm:$0xff] }
 0x217   :  { %4051 = vmatpush.bf16.msrb.mxu3 %v6160_v6  ;;  %4013 = vmatmul.bf16.vlgmr.msrb.gmra.mxu0 %v7008_v23  ;;  %v4113_v23 = vld [vmem:[#allocation6 + $0x160] sm:$0xff]  ;;  %v4070_v6 = vld [vmem:[#allocation6 + $0x8] sm:$0xff] }
 0x218   :  { %4137 = vmatpush.msra.mxu0 %v4084_v57  ;;  %4026 = vmatmul.bf16.vlgmr.msrb.gmra.mxu1 %v7012_v31  ;;  %v3768_v31 = vadd.f32 %v7110_v48, %v3755_v1  ;;  %v4110_v48 = vld [vmem:[#allocation6 + $0x148] sm:$0xff]  ;;  %v4061_v57 = vmul.f32 0.1, %v7045_v40 }
 0x219   :  { %4157 = vmatpush.msra.mxu1 %v4100_v59  ;;  %4039 = vmatmul.bf16.vlgmr.msrb.gmra.mxu2 %v7010_v28  ;;  %v4112_v28 = vld [vmem:[#allocation6 + $0x158] sm:$0xff]  ;;  %v4102_v59 = vld [vmem:[#allocation6 + $0x108] sm:$0xff] }
 0x21a   :  { %4177 = vmatpush.msra.mxu2 %v4116_v62  ;;  %4052 = vmatmul.bf16.vlgmr.msrb.gmra.mxu3 %v7014_v35  ;;  %v3819_v35 = vpop.f32.mrf.mxu1  ;;  %v3781_v9 = vadd.f32 %v7112_v4, %v3768_v31  ;;  %v4109_v4 = vld [vmem:[#allocation6 + $0x140] sm:$0xff]  ;;  %v4062_v62 = vmul.f32 0.1, %v7081_v58  ;;  %v4065_v1 = vsel %vm4057_vm0, %v7045_v40, %v4061_v57 }
 0x21b   :  { %4138 = vmatpush.msra.mxu0 %v4083_v60  ;;  %4158 = vmatpush.msra.mxu1 %v4099_v61  ;;  %v4069_v60 = vld [vmem:[#allocation6] sm:$0xff] }
 0x21c   :  { %4178 = vmatpush.msra.mxu2 %v4115_v63  ;;  %v3794_v21 = vadd.f32 %v7114_v10, %v3781_v9  ;;  %v3832_v20 = vpop.f32.mrf.mxu2  ;;  %v3808_v34 = vpop.f32.mrf.mxu0  ;;  %v4091_v10 = vld [vmem:[#allocation6 + $0xb0] sm:$0xff]  ;;  %v4085_v61 = vld [vmem:[#allocation6 + $0x80] sm:$0xff] }
 0x21d   :  { %4139 = vmatpush.msra.mxu0 %v4082_v0  ;;  %4159 = vmatpush.msra.mxu1 %v4098_v2  ;;  %v3845_v22 = vpop.f32.mrf.mxu3  ;;  %v4101_v63 = vld [vmem:[#allocation6 + $0x100] sm:$0xff]  ;;  %v4066_v0 = vsel %vm4058_vm1, %v7081_v58, %v4062_v62  ;;  %v4124_v34 = vld [vmem:[#allocation6 + $0x1b8] sm:$0xff] }
 0x21e   :  { %4179 = vmatpush.msra.mxu2 %v4114_v7  ;;  %v3807_v26 = vadd.f32 %v3806_v13, %v3794_v21  ;;  %v604_v7 = vperm.slane %v7087_v17, 3 }
 0x21f   :  { %4140 = vmatpush.msra.mxu0 %v4081_v11  ;;  %4160 = vmatpush.msra.mxu1 %v4097_v3 }
 0x220   :  { %4180 = vmatpush.msra.mxu2 %v4113_v23  ;;  %v3820_v25 = vadd.f32 %v3819_v35, %v3807_v26 }
 0x221   :  { %4141 = vmatpush.msra.mxu0 %v4080_v8  ;;  %4161 = vmatpush.msra.mxu1 %v4096_v42 }
 0x222   :  { %4181 = vmatpush.msra.mxu2 %v4112_v28  ;;  %v3821_v38 = vpop.f32.mrf.mxu1  ;;  %v3833_v41 = vadd.f32 %v3832_v20, %v3820_v25  ;;  %v4128_v20 = vld [vmem:[#allocation6 + $0x1d8] sm:$0xff] }
 0x223   :  { %4142 = vmatpush.msra.mxu0 %v4079_v39  ;;  %4162 = vmatpush.msra.mxu1 %v4095_v12 }
 0x224   :  { %4182 = vmatpush.msra.mxu2 %v4111_v14  ;;  %v3834_v33 = vpop.f32.mrf.mxu2  ;;  %v3846_v52 = vadd.f32 %v3845_v22, %v3833_v41  ;;  %v4125_v22 = vld [vmem:[#allocation6 + $0x1c0] sm:$0xff] }
 0x225   :  { %4143 = vmatpush.msra.mxu0 %v4078_v15  ;;  %4163 = vmatpush.msra.mxu1 %v4094_v18  ;;  %v3847_v5 = vpop.f32.mrf.mxu3  ;;  %v4132_v18 = vld [vmem:[#allocation6 + $0x1f8] sm:$0xff]  ;;  %v4118_v33 = vld [vmem:[#allocation6 + $0x188] sm:$0xff] }
 0x226   :  { %4183 = vmatpush.msra.mxu2 %v4110_v48  ;;  %v4063_v53 = vmul.f32 0.1, %v3846_v52  ;;  %vm4059_vm2 = vcmp.ge.f32.partialorder %v3846_v52, 0.0  ;;  %v4131_v48 = vld [vmem:[#allocation6 + $0x1f0] sm:$0xff]  ;;  %4197 = vmatpush.msra.mxu3 %v4132_v18 }
 0x227   :  { %4144 = vmatpush.msra.mxu0 %v4077_v19  ;;  %4164 = vmatpush.msra.mxu1 %v4093_v24  ;;  %v4130_v19 = vld [vmem:[#allocation6 + $0x1e8] sm:$0xff]  ;;  %v4129_v24 = vld [vmem:[#allocation6 + $0x1e0] sm:$0xff] }
 0x228   :  { %4184 = vmatpush.msra.mxu2 %v4109_v4  ;;  %v4067_v2 = vsel %vm4059_vm2, %v3846_v52, %v4063_v53  ;;  %4198 = vmatpush.msra.mxu3 %v4131_v48 }
 0x229   :  { %4145 = vmatpush.msra.mxu0 %v4076_v27  ;;  %4165 = vmatpush.msra.mxu1 %v4092_v32  ;;  %v4127_v27 = vld [vmem:[#allocation6 + $0x1d0] sm:$0xff]  ;;  %v4126_v32 = vld [vmem:[#allocation6 + $0x1c8] sm:$0xff] }
 0x22a   :  { %4185 = vmatpush.msra.mxu2 %v4108_v36  ;;  %4199 = vmatpush.msra.mxu3 %v4130_v19 }
 0x22b   :  { %4146 = vmatpush.msra.mxu0 %v4075_v45  ;;  %4166 = vmatpush.msra.mxu1 %v4091_v10  ;;  %v4123_v45 = vld [vmem:[#allocation6 + $0x1b0] sm:$0xff]  ;;  %v4122_v10 = vld [vmem:[#allocation6 + $0x1a8] sm:$0xff] }
 0x22c   :  { %4186 = vmatpush.msra.mxu2 %v4107_v37  ;;  %4200 = vmatpush.msra.mxu3 %v4129_v24  ;;  %v4121_v37 = vld [vmem:[#allocation6 + $0x1a0] sm:$0xff] }
 0x22d   :  { %4147 = vmatpush.msra.mxu0 %v4074_v43  ;;  %4167 = vmatpush.msra.mxu1 %v4090_v46  ;;  %v4120_v46 = vld [vmem:[#allocation6 + $0x198] sm:$0xff] }
 0x22e   :  { %4187 = vmatpush.msra.mxu2 %v4106_v47  ;;  %4201 = vmatpush.msra.mxu3 %v4128_v20 }
 0x22f   :  { %4148 = vmatpush.msra.mxu0 %v4073_v29  ;;  %4168 = vmatpush.msra.mxu1 %v4089_v30  ;;  %v4119_v30 = vld [vmem:[#allocation6 + $0x190] sm:$0xff] }
 0x230   :  { %4188 = vmatpush.msra.mxu2 %v4105_v44  ;;  %4202 = vmatpush.msra.mxu3 %v4127_v27 }
 0x231   :  { %4149 = vmatpush.msra.mxu0 %v4072_v50  ;;  %4169 = vmatpush.msra.mxu1 %v4088_v51  ;;  %v4117_v50 = vld [vmem:[#allocation6 + $0x180] sm:$0xff] }
 0x232   :  { %4189 = vmatpush.msra.mxu2 %v4104_v49  ;;  %4203 = vmatpush.msra.mxu3 %v4126_v32 }
 0x233   :  { %4150 = vmatpush.msra.mxu0 %v4071_v16  ;;  %4170 = vmatpush.msra.mxu1 %v4087_v54 }
 0x234   :  { %4190 = vmatpush.msra.mxu2 %v4103_v55  ;;  %v3858_v11 = vpop.f32.mrf.mxu0  ;;  %4204 = vmatpush.msra.mxu3 %v4125_v22 }
 0x235   :  { %4151 = vmatpush.msra.mxu0 %v4070_v6  ;;  %4171 = vmatpush.msra.mxu1 %v4086_v56  ;;  %v3859_v3 = vadd.f32 %v3858_v11, %v604_v7  ;;  %v3871_v23 = vpop.f32.mrf.mxu1 }
 0x236   :  { %4191 = vmatpush.msra.mxu2 %v4102_v59  ;;  %4205 = vmatpush.msra.mxu3 %v4124_v34 }
 0x237   :  { %4152 = vmatpush.msra.mxu0 %v4069_v60  ;;  %4172 = vmatpush.msra.mxu1 %v4085_v61  ;;  %v3872_v31 = vadd.f32 %v3871_v23, %v3859_v3  ;;  %v6793_v23 = vld [vmem:[#allocation7] ss:$0 sm:$0xff] }
 0x238   :  { %4192 = vmatpush.msra.mxu2 %v4101_v63  ;;  %4153 = vmatmul.f32.vlgmr.msra.gmra.mxu0 %v4065_v1 }
 0x239   :  { %4173 = vmatmul.f32.vlgmr.msra.gmra.mxu1 %v4066_v0  ;;  %4193 = vmatmul.f32.vlgmr.msra.gmra.mxu2 %v4067_v2 }
 0x23a   :  { %4206 = vmatpush.msra.mxu3 %v4123_v45 }
 0x23c   :  { %v3884_v8 = vpop.f32.mrf.mxu2  ;;  %v3860_v40 = vpop.f32.mrf.mxu0  ;;  %4207 = vmatpush.msra.mxu3 %v4122_v10 }
 0x23d   :  { %v3885_v42 = vadd.f32 %v3884_v8, %v3872_v31  ;;  %v3897_v13 = vpop.f32.mrf.mxu3  ;;  %v3873_v35 = vpop.f32.mrf.mxu1 }
 0x23e   :  { %4208 = vmatpush.msra.mxu3 %v4121_v37 }
 0x23f   :  { %v3898_v28 = vadd.f32 %v3897_v13, %v3885_v42 }
 0x240   :  { %4209 = vmatpush.msra.mxu3 %v4120_v46 }
 0x242   :  { %4210 = vmatpush.msra.mxu3 %v4119_v30 }
 0x244   :  { %v3886_v9 = vpop.f32.mrf.mxu2  ;;  %4211 = vmatpush.msra.mxu3 %v4118_v33 }
 0x245   :  { %v3899_v39 = vpop.f32.mrf.mxu3 }
 0x246   :  { %4212 = vmatpush.msra.mxu3 %v4117_v50 }
 0x254   :  { %v3910_v58 = vpop.f32.mrf.mxu0 }
 0x255   :  { %v3923_v12 = vpop.f32.mrf.mxu1  ;;  %v3911_v25 = vadd.f32 %v3910_v58, %v3898_v28 }
 0x257   :  { %v3924_v44 = vadd.f32 %v3923_v12, %v3911_v25 }
 0x25c   :  { %v3936_v14 = vpop.f32.mrf.mxu2  ;;  %v3912_v21 = vpop.f32.mrf.mxu0 }
 0x25d   :  { %v3949_v15 = vpop.f32.mrf.mxu3  ;;  %v3925_v17 = vpop.f32.mrf.mxu1  ;;  %v3937_v51 = vadd.f32 %v3936_v14, %v3924_v44 }
 0x25f   :  { %v3950_v52 = vadd.f32 %v3949_v15, %v3937_v51 }
 0x264   :  { %v3938_v4 = vpop.f32.mrf.mxu2 }
 0x265   :  { %v3951_v26 = vpop.f32.mrf.mxu3 }
 0x274   :  { %v3962_v36 = vpop.f32.mrf.mxu0 }
 0x275   :  { %v3975_v38 = vpop.f32.mrf.mxu1  ;;  %v3963_v16 = vadd.f32 %v3962_v36, %v3950_v52 }
 0x277   :  { %v3976_v54 = vadd.f32 %v3975_v38, %v3963_v16 }
 0x27c   :  { %v3988_v43 = vpop.f32.mrf.mxu2  ;;  %v3964_v41 = vpop.f32.mrf.mxu0 }
 0x27d   :  { %v4001_v47 = vpop.f32.mrf.mxu3  ;;  %v3977_v29 = vpop.f32.mrf.mxu1  ;;  %v3989_v55 = vadd.f32 %v3988_v43, %v3976_v54 }
 0x27f   :  { %v4002_v6 = vadd.f32 %v4001_v47, %v3989_v55 }
 0x284   :  { %v3990_v5 = vpop.f32.mrf.mxu2 }
 0x285   :  { %v4003_v49 = vpop.f32.mrf.mxu3 }
 0x294   :  { %v4014_v56 = vpop.f32.mrf.mxu0 }
 0x295   :  { %v4027_v57 = vpop.f32.mrf.mxu1  ;;  %v4015_v59 = vadd.f32 %v4014_v56, %v4002_v6 }
 0x297   :  { %v4028_v62 = vadd.f32 %v4027_v57, %v4015_v59 }
 0x29c   :  { %v4040_v53 = vpop.f32.mrf.mxu2  ;;  %v4016_v63 = vpop.f32.mrf.mxu0 }
 0x29d   :  { %v4053_v60 = vpop.f32.mrf.mxu3  ;;  %v4041_v61 = vadd.f32 %v4040_v53, %v4028_v62  ;;  %v4029_v1 = vpop.f32.mrf.mxu1 }
 0x29f   :  { %v4054_v0 = vadd.f32 %v4053_v60, %v4041_v61 }
 0x2a1   :  { %vm4060_vm3 = vcmp.ge.f32.partialorder %v4054_v0, 0.0  ;;  %v4064_v2 = vmul.f32 0.1, %v4054_v0 }
 0x2a3   :  { %v4068_v7 = vsel %vm4060_vm3, %v4054_v0, %v4064_v2 }
 0x2a4   :  { %v4042_v11 = vpop.f32.mrf.mxu2  ;;  %4213 = vmatmul.f32.vlgmr.msra.gmra.mxu3 %v4068_v7 }
 0x2a5   :  { %v4055_v3 = vpop.f32.mrf.mxu3 }
 0x2b5   :  { %v4154_v31 = vpop.f32.mrf.mxu0 }
 0x2b6   :  { %v4155_v8 = vadd.f32 %v6793_v23, %v4154_v31  ;;  %v4174_v42 = vpop.f32.mrf.mxu1 }
 0x2b8   :  { %v4175_v28 = vadd.f32 %v4174_v42, %v4155_v8 }
 0x2bc   :  { %v4194_v13 = vpop.f32.mrf.mxu2 }
 0x2bd   :  { %v4195_v40 = vadd.f32 %v4194_v13, %v4175_v28 }
 0x327   :  { %v4214_v35 = vpop.f32.mrf.mxu3 }
 0x328   :  { %v4215_v9 = vadd.f32 %v4214_v35, %v4195_v40 }
 0x32a   :  { %4217 = vst [vmem:[%s7146_s5] sm:$0xff] %v4215_v9 }
 0x32b   :  { %4222 = vsyncpa [#allocation3], 1 }
 0x32c   :  { %4223 = vsyncpa [#allocation5], 1 }
 0x32d   :  { %4224 = vsyncpa [#allocation8], 1 }

</bundles_post_ra>
